<compile_context>
chip_gen: v7x
topology: tpu7x:2x2x1
jax: 0.10.0
libtpu: 0.0.40
codegen_flags: <defaults>
</compile_context>

<pallas_src>
import functools

import numpy as np
import jax
import jax.numpy as jnp
from jax import lax
from jax.experimental import pallas as pl
from jax.experimental.pallas import tpu as pltpu  # noqa: F401  (kept for TPU-specific tuning)


# ----------------------------------------------------------------------------- #
#  In-kernel helpers
# ----------------------------------------------------------------------------- #
def _layer_norm(x, gamma, beta, eps=1e-6):
    mu = jnp.mean(x, axis=-1, keepdims=True)
    xc = x - mu
    var = jnp.mean(xc * xc, axis=-1, keepdims=True)
    return xc * lax.rsqrt(var + eps) * gamma + beta


# ----------------------------------------------------------------------------- #
#  Pallas kernel: full SAITS forward (both DMSA blocks + combining) in one call
# ----------------------------------------------------------------------------- #
def _saits_kernel(
    n_layers, n_heads, d_k, d_v, use_diag_mask,
    x_ref, m_ref, pos_ref,
    we_x_ref, we_m_ref, be_ref,                              # (2, F, D), (2, F, D), (2, 1, D)
    wq_ref, wk_ref, wv_ref, wo_ref,                          # (2L, D, H*dk/dv), (2L, H*dv, D)
    ln1g_ref, ln1b_ref, w1_ref, b1_ref, w2_ref, b2_ref,      # stacked over 2L layers
    ln2g_ref, ln2b_ref,
    wrz_ref, brz_ref,                                        # block-1 reduce_dim_z
    wrb_ref, brb_ref, wrg_ref, brg_ref,                      # block-2 reduce beta / gamma
    wcm_ref, wca_ref, bc_ref,                                # weight_combine split: masks / attn
    imputed_ref, xt1_ref, xt2_ref, xt3_ref,
):
    B, S, F = x_ref.shape
    D = we_x_ref.shape[2]
    BS = B * S

    x2 = x_ref[...].reshape(BS, F)
    m2 = m_ref[...].reshape(BS, F)
    one_minus_m = 1.0 - m2
    pos = pos_ref[...]

    if use_diag_mask:
        row = lax.broadcasted_iota(jnp.int32, (S, S), 0)
        col = lax.broadcasted_iota(jnp.int32, (S, S), 1)
        diag = row == col                                    # masked where attn_mask == 0 (diagonal)
    else:
        diag = None

    def encoder_stack(inp2, blk, mask_attn, emit_attn):
        # -------- embedding: concat([inp, masks]) @ W_emb + b == inp@W[:F] + masks@W[F:] + b
        enc = (
            jnp.dot(inp2, we_x_ref[blk], preferred_element_type=jnp.float32)
            + jnp.dot(m2, we_m_ref[blk], preferred_element_type=jnp.float32)
            + be_ref[blk]
        )                                                    # (BS, D)
        # -------- positional encoding --------
        enc = (enc.reshape(B, S, D) + pos[None, :, :]).reshape(BS, D)

        attn_mean = None
        for li in range(n_layers):
            l = blk * n_layers + li
            # ---- pre-LN multi-head self-attention ----
            xn = _layer_norm(enc, ln1g_ref[l], ln1b_ref[l])
            q = jnp.dot(xn, wq_ref[l], preferred_element_type=jnp.float32)   # temp folded in
            k = jnp.dot(xn, wk_ref[l], preferred_element_type=jnp.float32)
            v = jnp.dot(xn, wv_ref[l], preferred_element_type=jnp.float32)
            q3 = q.reshape(B, S, n_heads * d_k)
            k3 = k.reshape(B, S, n_heads * d_k)
            v3 = v.reshape(B, S, n_heads * d_v)

            ctx_heads = []
            attn_sum = None
            for h in range(n_heads):
                qh = q3[:, :, h * d_k:(h + 1) * d_k]
                kh = k3[:, :, h * d_k:(h + 1) * d_k]
                vh = v3[:, :, h * d_v:(h + 1) * d_v]
                s = jnp.einsum("bqd,bkd->bqk", qh, kh,
                               preferred_element_type=jnp.float32)           # (B, S, S)
                if mask_attn:
                    s = jnp.where(diag[None, :, :], -1e9, s)                 # masked_fill(mask==0, -1e9)
                s = s - jnp.max(s, axis=-1, keepdims=True)
                e = jnp.exp(s)
                attn = e * pl.reciprocal(jnp.sum(e, axis=-1, keepdims=True), approx=True)
                ctx_heads.append(jnp.einsum("bqk,bkd->bqd", attn, vh,
                                            preferred_element_type=jnp.float32))
                if emit_attn and li == n_layers - 1:
                    attn_sum = attn if attn_sum is None else attn_sum + attn

            ctx = jnp.concatenate(ctx_heads, axis=-1).reshape(BS, n_heads * d_v)
            attn_out = jnp.dot(ctx, wo_ref[l], preferred_element_type=jnp.float32)
            y = attn_out + enc                               # residual (dropout == identity)

            # ---- pre-LN position-wise FFN ----
            yn = _layer_norm(y, ln2g_ref[l], ln2b_ref[l])
            hdn = jnp.maximum(
                jnp.dot(yn, w1_ref[l], preferred_element_type=jnp.float32) + b1_ref[l], 0.0)
            enc = jnp.dot(hdn, w2_ref[l], preferred_element_type=jnp.float32) + b2_ref[l] + y

            if emit_attn and li == n_layers - 1:
                attn_mean = attn_sum * (1.0 / n_heads)       # head-averaged (B, S, S)
        return enc, attn_mean

    # ---------------- first DMSA block ----------------
    enc1, _ = encoder_stack(x2, 0, use_diag_mask, False)
    xt1 = jnp.dot(enc1, wrz_ref[...], preferred_element_type=jnp.float32) + brz_ref[...]
    x_prime = m2 * x2 + one_minus_m * xt1

    # ---------------- second DMSA block (no mask, emits attention) ----------------
    enc2, attn_mean = encoder_stack(x_prime, 1, False, True)
    hid = jnp.maximum(
        jnp.dot(enc2, wrb_ref[...], preferred_element_type=jnp.float32) + brb_ref[...], 0.0)
    xt2 = jnp.dot(hid, wrg_ref[...], preferred_element_type=jnp.float32) + brg_ref[...]

    # ---------------- weight_combine + final blend (all in VMEM) ----------------
    # sigmoid(concat([masks, attn]) @ Wc + bc) == sigmoid(masks@Wc[:F] + attn@Wc[F:] + bc)
    attn2 = attn_mean.reshape(BS, S)
    z = (
        jnp.dot(m2, wcm_ref[...], preferred_element_type=jnp.float32)
        + jnp.dot(attn2, wca_ref[...], preferred_element_type=jnp.float32)
        + bc_ref[...]
    )
    comb = 1.0 / (1.0 + jnp.exp(-z))
    xt3 = (1.0 - comb) * xt2 + comb * xt1
    xc = m2 * x2 + one_minus_m * xt3

    imputed_ref[...] = xc.reshape(B, S, F)
    xt1_ref[...] = xt1.reshape(B, S, F)
    xt2_ref[...] = xt2.reshape(B, S, F)
    xt3_ref[...] = xt3.reshape(B, S, F)


def pallas_saits_core(X, masks, pos, packed, *, n_layers, n_heads, d_k, d_v, use_diag_mask):
    """Run the whole SAITS forward on the batch in a single grid-less Pallas call."""
    B, S, F = X.shape
    kernel = functools.partial(
        _saits_kernel, n_layers, n_heads, d_k, d_v, use_diag_mask)
    out_shape = tuple(jax.ShapeDtypeStruct((B, S, F), jnp.float32) for _ in range(4))
    return pl.pallas_call(kernel, out_shape=out_shape)(
        X, masks, pos,
        packed["we_x"], packed["we_m"], packed["be"],
        packed["wq"], packed["wk"], packed["wv"], packed["wo"],
        packed["ln1_g"], packed["ln1_b"], packed["w1"], packed["b1"],
        packed["w2"], packed["b2"], packed["ln2_g"], packed["ln2_b"],
        packed["wr_z"], packed["br_z"],
        packed["wr_b"], packed["br_b"], packed["wr_g"], packed["br_g"],
        packed["wc_m"], packed["wc_a"], packed["bc"],
    )


# ----------------------------------------------------------------------------- #
#  Parameter construction / packing (packing done ONCE, outside jit)
# ----------------------------------------------------------------------------- #
def make_params(key, n_layers, n_steps, n_features, d_model, d_inner, n_heads, d_k, d_v):
    actual_n_features = n_features * 2

    def dense(k, fan_in, fan_out):
        kw, kb = jax.random.split(k)
        w = jax.random.normal(kw, (fan_in, fan_out), jnp.float32) * (1.0 / np.sqrt(fan_in))
        b = jax.random.normal(kb, (fan_out,), jnp.float32) * 0.01
        return w, b

    def encoder_layer_params(k):
        ks = jax.random.split(k, 8)
        s_qk = 1.0 / np.sqrt(d_model)
        return {
            "wq": jax.random.normal(ks[0], (n_heads, d_model, d_k), jnp.float32) * s_qk,
            "wk": jax.random.normal(ks[1], (n_heads, d_model, d_k), jnp.float32) * s_qk,
            "wv": jax.random.normal(ks[2], (n_heads, d_model, d_v), jnp.float32) * s_qk,
            "wo": jax.random.normal(ks[3], (n_heads, d_v, d_model), jnp.float32)
            * (1.0 / np.sqrt(n_heads * d_v)),
            "ln1_g": jnp.ones((1, d_model), jnp.float32),
            "ln1_b": jnp.zeros((1, d_model), jnp.float32),
            "w1": jax.random.normal(ks[4], (d_model, d_inner), jnp.float32) * (1.0 / np.sqrt(d_model)),
            "b1": jnp.reshape(jax.random.normal(ks[5], (d_inner,), jnp.float32) * 0.01, (1, d_inner)),
            "w2": jax.random.normal(ks[6], (d_inner, d_model), jnp.float32) * (1.0 / np.sqrt(d_inner)),
            "b2": jnp.reshape(jax.random.normal(ks[7], (d_model,), jnp.float32) * 0.01, (1, d_model)),
            "ln2_g": jnp.ones((1, d_model), jnp.float32),
            "ln2_b": jnp.zeros((1, d_model), jnp.float32),
        }

    keys = jax.random.split(key, 2 * n_layers + 6)
    params = {
        "block1": [encoder_layer_params(keys[i]) for i in range(n_layers)],
        "block2": [encoder_layer_params(keys[n_layers + i]) for i in range(n_layers)],
    }
    params["embedding_1"] = dense(keys[2 * n_layers + 0], actual_n_features, d_model)
    params["reduce_dim_z"] = dense(keys[2 * n_layers + 1], d_model, n_features)
    params["embedding_2"] = dense(keys[2 * n_layers + 2], actual_n_features, d_model)
    params["reduce_dim_beta"] = dense(keys[2 * n_layers + 3], d_model, n_features)
    params["reduce_dim_gamma"] = dense(keys[2 * n_layers + 4], n_features, n_features)
    params["weight_combine"] = dense(keys[2 * n_layers + 5], n_features + n_steps, n_features)
    return params


def pack_saits_params(params, n_features, d_model, d_k):
    """Stack both blocks' layer weights, fuse heads, fold temperature, split concat-matmuls."""
    F, D = n_features, d_model
    inv_temp = 1.0 / float(np.sqrt(d_k))

    def fuse_heads(w):  # (H, D, d) -> (D, H*d)
        H, Din, d = w.shape
        return jnp.transpose(w, (1, 0, 2)).reshape(Din, H * d)

    layers = params["block1"] + params["block2"]          # block1 layers first, then block2
    packed = {
        "wq": jnp.stack([fuse_heads(p["wq"]) * inv_temp for p in layers]),
        "wk": jnp.stack([fuse_heads(p["wk"]) for p in layers]),
        "wv": jnp.stack([fuse_heads(p["wv"]) for p in layers]),
        "wo": jnp.stack([p["wo"].reshape(-1, p["wo"].shape[-1]) for p in layers]),
        "ln1_g": jnp.stack([p["ln1_g"] for p in layers]),
        "ln1_b": jnp.stack([p["ln1_b"] for p in layers]),
        "w1": jnp.stack([p["w1"] for p in layers]),
        "b1": jnp.stack([p["b1"] for p in layers]),
        "w2": jnp.stack([p["w2"] for p in layers]),
        "b2": jnp.stack([p["b2"] for p in layers]),
        "ln2_g": jnp.stack([p["ln2_g"] for p in layers]),
        "ln2_b": jnp.stack([p["ln2_b"] for p in layers]),
    }
    w_e1, b_e1 = params["embedding_1"]
    w_e2, b_e2 = params["embedding_2"]
    packed["we_x"] = jnp.stack([w_e1[:F], w_e2[:F]])       # concat([X, masks]) split: X part
    packed["we_m"] = jnp.stack([w_e1[F:], w_e2[F:]])       #                          masks part
    packed["be"] = jnp.stack([b_e1.reshape(1, D), b_e2.reshape(1, D)])
    w_z, b_z = params["reduce_dim_z"]
    packed["wr_z"], packed["br_z"] = w_z, b_z.reshape(1, F)
    w_b, b_b = params["reduce_dim_beta"]
    packed["wr_b"], packed["br_b"] = w_b, b_b.reshape(1, F)
    w_g, b_g = params["reduce_dim_gamma"]
    packed["wr_g"], packed["br_g"] = w_g, b_g.reshape(1, F)
    w_c, b_c = params["weight_combine"]
    packed["wc_m"] = w_c[:F]                               # masks part of concat([masks, attn])
    packed["wc_a"] = w_c[F:]                               # attention part
    packed["bc"] = b_c.reshape(1, F)
    return packed


def sinusoid_pos_table(n_position, d_hid):
    pos = np.arange(n_position, dtype=np.float64)[:, None]
    j = np.arange(d_hid)[None, :]
    angle = pos / np.power(10000.0, 2.0 * (j // 2) / d_hid)
    table = np.zeros((n_position, d_hid), dtype=np.float64)
    table[:, 0::2] = np.sin(angle[:, 0::2])
    table[:, 1::2] = np.cos(angle[:, 1::2])
    return jnp.asarray(table, jnp.float32)


# ----------------------------------------------------------------------------- #
#  SAITS forward (losses in plain JAX; everything else inside the Pallas kernel)
# ----------------------------------------------------------------------------- #
def cal_mae(predictions, targets, masks):
    return jnp.sum(jnp.abs(predictions - targets) * masks) / (jnp.sum(masks) + 1e-12)


def saits_forward(packed, pos_table, inputs, cfg, training=True,
                  diagonal_attention_mask=False):
    X = inputs["X"]
    masks = inputs["missing_mask"]
    B, S, F = X.shape
    use_diag = bool((training and cfg["diagonal_attention_mask"])
                    or ((not training) and diagonal_attention_mask))
    pos = pos_table[:S, :]

    imputed, X_tilde_1, X_tilde_2, X_tilde_3 = pallas_saits_core(
        X, masks, pos, packed,
        n_layers=cfg["n_layers"], n_heads=cfg["n_heads"],
        d_k=cfg["d_k"], d_v=cfg["d_v"], use_diag_mask=use_diag)

    if not training:
        return {"imputed_data": imputed}

    ORT_loss = (
        cal_mae(X_tilde_1, X, masks)
        + cal_mae(X_tilde_2, X, masks)
        + cal_mae(X_tilde_3, X, masks)
    ) / 3.0
    MIT_loss = cal_mae(X_tilde_3, inputs["X_intact"], inputs["indicating_mask"])
    loss = cfg["ORT_weight"] * ORT_loss + cfg["MIT_weight"] * MIT_loss
    return {"imputed_data": imputed, "ORT_loss": ORT_loss, "MIT_loss": MIT_loss, "loss": loss}


# ----------------------------------------------------------------------------- #
#  Demo
# ----------------------------------------------------------------------------- #
if __name__ == "__main__":
    cfg = dict(
        n_layers=2, n_steps=8, n_features=4,
        d_model=32, d_inner=64, n_heads=2, d_k=16, d_v=16,
        ORT_weight=1.0, MIT_weight=1.0, diagonal_attention_mask=True,
    )
    B, S, F = 2, cfg["n_steps"], cfg["n_features"]

    key = jax.random.PRNGKey(0)
    k_param, k_x, k_m1, k_m2 = jax.random.split(key, 4)

    params = make_params(
        k_param, cfg["n_layers"], cfg["n_steps"], cfg["n_features"],
        cfg["d_model"], cfg["d_inner"], cfg["n_heads"], cfg["d_k"], cfg["d_v"],
    )
    packed = pack_saits_params(params, cfg["n_features"], cfg["d_model"], cfg["d_k"])
    pos_table = sinusoid_pos_table(cfg["n_steps"], cfg["d_model"])

    X_intact = jax.random.normal(k_x, (B, S, F), jnp.float32)
    missing_mask = (jax.random.uniform(k_m1, (B, S, F)) > 0.2).astype(jnp.float32)
    indicating_mask = (
        (jax.random.uniform(k_m2, (B, S, F)) > 0.7).astype(jnp.float32) * missing_mask
    )
    X = X_intact * missing_mask * (1.0 - indicating_mask)   # observed values only

    inputs = {
        "X": X,
        "missing_mask": missing_mask * (1.0 - indicating_mask),
        "X_intact": X_intact,
        "indicating_mask": indicating_mask,
    }

    @jax.jit
    def run(packed, pos_table, inputs):
        return saits_forward(packed, pos_table, inputs, cfg, training=True)

    results = run(packed, pos_table, inputs)
    jax.block_until_ready(results["imputed_data"])
    jax.block_until_ready(results["loss"])

    assert results["imputed_data"].shape == (B, S, F)
    assert bool(jnp.all(jnp.isfinite(results["imputed_data"])))
    assert bool(jnp.isfinite(results["loss"]))
    print("KERNEL_OK")
</pallas_src>

<mosaic_0001>
module attributes {stable_mosaic.version = 11 : i64} {
  func.func @_saits_kernel(%arg0: memref<2x8x4xf32, #tpu.memory_space<vmem>>, %arg1: memref<2x8x4xf32, #tpu.memory_space<vmem>>, %arg2: memref<8x32xf32, #tpu.memory_space<vmem>>, %arg3: memref<2x4x32xf32, #tpu.memory_space<vmem>>, %arg4: memref<2x4x32xf32, #tpu.memory_space<vmem>>, %arg5: memref<2x1x32xf32, #tpu.memory_space<vmem>>, %arg6: memref<4x32x32xf32, #tpu.memory_space<vmem>>, %arg7: memref<4x32x32xf32, #tpu.memory_space<vmem>>, %arg8: memref<4x32x32xf32, #tpu.memory_space<vmem>>, %arg9: memref<4x32x32xf32, #tpu.memory_space<vmem>>, %arg10: memref<4x1x32xf32, #tpu.memory_space<vmem>>, %arg11: memref<4x1x32xf32, #tpu.memory_space<vmem>>, %arg12: memref<4x32x64xf32, #tpu.memory_space<vmem>>, %arg13: memref<4x1x64xf32, #tpu.memory_space<vmem>>, %arg14: memref<4x64x32xf32, #tpu.memory_space<vmem>>, %arg15: memref<4x1x32xf32, #tpu.memory_space<vmem>>, %arg16: memref<4x1x32xf32, #tpu.memory_space<vmem>>, %arg17: memref<4x1x32xf32, #tpu.memory_space<vmem>>, %arg18: memref<32x4xf32, #tpu.memory_space<vmem>>, %arg19: memref<1x4xf32, #tpu.memory_space<vmem>>, %arg20: memref<32x4xf32, #tpu.memory_space<vmem>>, %arg21: memref<1x4xf32, #tpu.memory_space<vmem>>, %arg22: memref<4x4xf32, #tpu.memory_space<vmem>>, %arg23: memref<1x4xf32, #tpu.memory_space<vmem>>, %arg24: memref<4x4xf32, #tpu.memory_space<vmem>>, %arg25: memref<8x4xf32, #tpu.memory_space<vmem>>, %arg26: memref<1x4xf32, #tpu.memory_space<vmem>>, %arg27: memref<2x8x4xf32, #tpu.memory_space<vmem>>, %arg28: memref<2x8x4xf32, #tpu.memory_space<vmem>>, %arg29: memref<2x8x4xf32, #tpu.memory_space<vmem>>, %arg30: memref<2x8x4xf32, #tpu.memory_space<vmem>>) attributes {dimension_semantics = [], scalar_prefetch = 0 : i64, scratch_operands = 0 : i64, tpu.core_type = #tpu.core_type<tc>} {
    %c0 = arith.constant 0 : index
    %c0_0 = arith.constant 0 : index
    %c0_1 = arith.constant 0 : index
    %0 = vector.load %arg0[%c0, %c0_0, %c0_1] : memref<2x8x4xf32, #tpu.memory_space<vmem>>, vector<2x8x4xf32>
    %1 = vector.shape_cast %0 : vector<2x8x4xf32> to vector<16x4xf32>
    %c0_2 = arith.constant 0 : index
    %c0_3 = arith.constant 0 : index
    %c0_4 = arith.constant 0 : index
    %2 = vector.load %arg1[%c0_2, %c0_3, %c0_4] : memref<2x8x4xf32, #tpu.memory_space<vmem>>, vector<2x8x4xf32>
    %3 = vector.shape_cast %2 : vector<2x8x4xf32> to vector<16x4xf32>
    %cst = arith.constant 1.000000e+00 : f32
    %4 = vector.broadcast %cst : f32 to vector<16x4xf32>
    %5 = arith.subf %4, %3 : vector<16x4xf32>
    %c0_5 = arith.constant 0 : index
    %c0_6 = arith.constant 0 : index
    %6 = vector.load %arg2[%c0_5, %c0_6] : memref<8x32xf32, #tpu.memory_space<vmem>>, vector<8x32xf32>
    %7 = tpu.iota {dimensions = array<i32: 0>} : vector<8x8xi32>
    %8 = tpu.iota {dimensions = array<i32: 1>} : vector<8x8xi32>
    %9 = arith.cmpi eq, %7, %8 : vector<8x8xi32>
    %c0_7 = arith.constant 0 : index
    %c0_8 = arith.constant 0 : index
    %c0_9 = arith.constant 0 : index
    %10 = vector.load %arg3[%c0_7, %c0_8, %c0_9] : memref<2x4x32xf32, #tpu.memory_space<vmem>>, vector<1x4x32xf32>
    %11 = vector.shape_cast %10 : vector<1x4x32xf32> to vector<4x32xf32>
    %cst_10 = arith.constant dense<0.000000e+00> : vector<16x32xf32>
    %12 = tpu.matmul %1, %11, %cst_10 {dimension_numbers = #tpu.dot_dimension_numbers<[1], [0], [0], [1], [0, 0, 1, 1], [], []>} : vector<16x4xf32>, vector<4x32xf32>, vector<16x32xf32> -> vector<16x32xf32>
    %c0_11 = arith.constant 0 : index
    %c0_12 = arith.constant 0 : index
    %c0_13 = arith.constant 0 : index
    %13 = vector.load %arg4[%c0_11, %c0_12, %c0_13] : memref<2x4x32xf32, #tpu.memory_space<vmem>>, vector<1x4x32xf32>
    %14 = vector.shape_cast %13 : vector<1x4x32xf32> to vector<4x32xf32>
    %cst_14 = arith.constant dense<0.000000e+00> : vector<16x32xf32>
    %15 = tpu.matmul %3, %14, %cst_14 {dimension_numbers = #tpu.dot_dimension_numbers<[1], [0], [0], [1], [0, 0, 1, 1], [], []>} : vector<16x4xf32>, vector<4x32xf32>, vector<16x32xf32> -> vector<16x32xf32>
    %16 = arith.addf %12, %15 : vector<16x32xf32>
    %c0_15 = arith.constant 0 : index
    %c0_16 = arith.constant 0 : index
    %c0_17 = arith.constant 0 : index
    %17 = vector.load %arg5[%c0_15, %c0_16, %c0_17] : memref<2x1x32xf32, #tpu.memory_space<vmem>>, vector<1x1x32xf32>
    %18 = vector.shape_cast %17 : vector<1x1x32xf32> to vector<1x32xf32>
    %19 = vector.broadcast %18 : vector<1x32xf32> to vector<16x32xf32>
    %20 = arith.addf %16, %19 : vector<16x32xf32>
    %21 = vector.shape_cast %20 : vector<16x32xf32> to vector<2x8x32xf32>
    %22 = vector.shape_cast %6 : vector<8x32xf32> to vector<1x8x32xf32>
    %23 = vector.broadcast %22 : vector<1x8x32xf32> to vector<2x8x32xf32>
    %24 = arith.addf %21, %23 : vector<2x8x32xf32>
    %25 = vector.shape_cast %24 : vector<2x8x32xf32> to vector<16x32xf32>
    %c0_18 = arith.constant 0 : index
    %c0_19 = arith.constant 0 : index
    %c0_20 = arith.constant 0 : index
    %26 = vector.load %arg10[%c0_18, %c0_19, %c0_20] : memref<4x1x32xf32, #tpu.memory_space<vmem>>, vector<1x1x32xf32>
    %27 = vector.shape_cast %26 : vector<1x1x32xf32> to vector<1x32xf32>
    %c0_21 = arith.constant 0 : index
    %c0_22 = arith.constant 0 : index
    %c0_23 = arith.constant 0 : index
    %28 = vector.load %arg11[%c0_21, %c0_22, %c0_23] : memref<4x1x32xf32, #tpu.memory_space<vmem>>, vector<1x1x32xf32>
    %29 = vector.shape_cast %28 : vector<1x1x32xf32> to vector<1x32xf32>
    %cst_24 = arith.constant dense<0.000000e+00> : vector<16xf32>
    %30 = vector.multi_reduction <add>, %25, %cst_24 [1] : vector<16x32xf32> to vector<16xf32>
    %31 = vector.shape_cast %30 : vector<16xf32> to vector<16x1xf32>
    %cst_25 = arith.constant 3.200000e+01 : f32
    %32 = vector.broadcast %cst_25 : f32 to vector<16x1xf32>
    %33 = arith.divf %31, %32 : vector<16x1xf32>
    %34 = vector.broadcast %33 : vector<16x1xf32> to vector<16x32xf32>
    %35 = arith.subf %25, %34 : vector<16x32xf32>
    %36 = arith.mulf %35, %35 : vector<16x32xf32>
    %cst_26 = arith.constant dense<0.000000e+00> : vector<16xf32>
    %37 = vector.multi_reduction <add>, %36, %cst_26 [1] : vector<16x32xf32> to vector<16xf32>
    %38 = vector.shape_cast %37 : vector<16xf32> to vector<16x1xf32>
    %cst_27 = arith.constant 3.200000e+01 : f32
    %39 = vector.broadcast %cst_27 : f32 to vector<16x1xf32>
    %40 = arith.divf %38, %39 : vector<16x1xf32>
    %cst_28 = arith.constant 9.99999997E-7 : f32
    %41 = vector.broadcast %cst_28 : f32 to vector<16x1xf32>
    %42 = arith.addf %40, %41 : vector<16x1xf32>
    %43 = math.rsqrt %42 : vector<16x1xf32>
    %44 = vector.broadcast %43 : vector<16x1xf32> to vector<16x32xf32>
    %45 = arith.mulf %35, %44 : vector<16x32xf32>
    %46 = vector.broadcast %27 : vector<1x32xf32> to vector<16x32xf32>
    %47 = arith.mulf %45, %46 : vector<16x32xf32>
    %48 = vector.broadcast %29 : vector<1x32xf32> to vector<16x32xf32>
    %49 = arith.addf %47, %48 : vector<16x32xf32>
    %c0_29 = arith.constant 0 : index
    %c0_30 = arith.constant 0 : index
    %c0_31 = arith.constant 0 : index
    %50 = vector.load %arg6[%c0_29, %c0_30, %c0_31] : memref<4x32x32xf32, #tpu.memory_space<vmem>>, vector<1x32x32xf32>
    %51 = vector.shape_cast %50 : vector<1x32x32xf32> to vector<32x32xf32>
    %cst_32 = arith.constant dense<0.000000e+00> : vector<16x32xf32>
    %52 = tpu.matmul %49, %51, %cst_32 {dimension_numbers = #tpu.dot_dimension_numbers<[1], [0], [0], [1], [0, 0, 1, 1], [], []>} : vector<16x32xf32>, vector<32x32xf32>, vector<16x32xf32> -> vector<16x32xf32>
    %c0_33 = arith.constant 0 : index
    %c0_34 = arith.constant 0 : index
    %c0_35 = arith.constant 0 : index
    %53 = vector.load %arg7[%c0_33, %c0_34, %c0_35] : memref<4x32x32xf32, #tpu.memory_space<vmem>>, vector<1x32x32xf32>
    %54 = vector.shape_cast %53 : vector<1x32x32xf32> to vector<32x32xf32>
    %cst_36 = arith.constant dense<0.000000e+00> : vector<16x32xf32>
    %55 = tpu.matmul %49, %54, %cst_36 {dimension_numbers = #tpu.dot_dimension_numbers<[1], [0], [0], [1], [0, 0, 1, 1], [], []>} : vector<16x32xf32>, vector<32x32xf32>, vector<16x32xf32> -> vector<16x32xf32>
    %c0_37 = arith.constant 0 : index
    %c0_38 = arith.constant 0 : index
    %c0_39 = arith.constant 0 : index
    %56 = vector.load %arg8[%c0_37, %c0_38, %c0_39] : memref<4x32x32xf32, #tpu.memory_space<vmem>>, vector<1x32x32xf32>
    %57 = vector.shape_cast %56 : vector<1x32x32xf32> to vector<32x32xf32>
    %cst_40 = arith.constant dense<0.000000e+00> : vector<16x32xf32>
    %58 = tpu.matmul %49, %57, %cst_40 {dimension_numbers = #tpu.dot_dimension_numbers<[1], [0], [0], [1], [0, 0, 1, 1], [], []>} : vector<16x32xf32>, vector<32x32xf32>, vector<16x32xf32> -> vector<16x32xf32>
    %59 = vector.shape_cast %52 : vector<16x32xf32> to vector<2x8x32xf32>
    %60 = vector.shape_cast %55 : vector<16x32xf32> to vector<2x8x32xf32>
    %61 = vector.shape_cast %58 : vector<16x32xf32> to vector<2x8x32xf32>
    %62 = vector.extract_strided_slice %59 {offsets = [0, 0, 0], sizes = [2, 8, 16], strides = [1, 1, 1]} : vector<2x8x32xf32> to vector<2x8x16xf32>
    %63 = vector.extract_strided_slice %60 {offsets = [0, 0, 0], sizes = [2, 8, 16], strides = [1, 1, 1]} : vector<2x8x32xf32> to vector<2x8x16xf32>
    %64 = vector.extract_strided_slice %61 {offsets = [0, 0, 0], sizes = [2, 8, 16], strides = [1, 1, 1]} : vector<2x8x32xf32> to vector<2x8x16xf32>
    "tpu.trace_start"() <{level = 10 : i32, message = "bqd,bkd->bqk"}> : () -> ()
    %cst_41 = arith.constant dense<0.000000e+00> : vector<2x8x8xf32>
    %65 = tpu.matmul %62, %63, %cst_41 {dimension_numbers = #tpu.dot_dimension_numbers<[2], [2], [1], [1], [0, 0, 0, 1, 1, 1], [0], [0]>} : vector<2x8x16xf32>, vector<2x8x16xf32>, vector<2x8x8xf32> -> vector<2x8x8xf32>
    "tpu.trace_stop"() : () -> ()
    %66 = vector.shape_cast %9 : vector<8x8xi1> to vector<1x8x8xi1>
    %cst_42 = arith.constant -1.000000e+09 : f32
    %67 = vector.shape_cast %66 : vector<1x8x8xi1> to vector<1x8x8xi1>
    %68 = vector.broadcast %67 : vector<1x8x8xi1> to vector<2x8x8xi1>
    %69 = vector.broadcast %cst_42 : f32 to vector<2x8x8xf32>
    %70 = arith.select %68, %69, %65 : vector<2x8x8xi1>, vector<2x8x8xf32>
    %cst_43 = arith.constant dense<0xFF800000> : vector<2x8xf32>
    %71 = vector.multi_reduction <maximumf>, %70, %cst_43 [2] : vector<2x8x8xf32> to vector<2x8xf32>
    %72 = vector.shape_cast %71 : vector<2x8xf32> to vector<2x8x1xf32>
    %73 = vector.broadcast %72 : vector<2x8x1xf32> to vector<2x8x8xf32>
    %74 = arith.subf %70, %73 : vector<2x8x8xf32>
    %75 = math.exp %74 : vector<2x8x8xf32>
    %cst_44 = arith.constant dense<0.000000e+00> : vector<2x8xf32>
    %76 = vector.multi_reduction <add>, %75, %cst_44 [2] : vector<2x8x8xf32> to vector<2x8xf32>
    %77 = vector.shape_cast %76 : vector<2x8xf32> to vector<2x8x1xf32>
    %78 = tpu.reciprocal %77 {approx = true} : vector<2x8x1xf32> -> vector<2x8x1xf32>
    %79 = vector.broadcast %78 : vector<2x8x1xf32> to vector<2x8x8xf32>
    %80 = arith.mulf %75, %79 : vector<2x8x8xf32>
    "tpu.trace_start"() <{level = 10 : i32, message = "bqk,bkd->bqd"}> : () -> ()
    %cst_45 = arith.constant dense<0.000000e+00> : vector<2x8x16xf32>
    %81 = tpu.matmul %80, %64, %cst_45 {dimension_numbers = #tpu.dot_dimension_numbers<[2], [1], [1], [2], [0, 0, 0, 1, 1, 2], [0], [0]>} : vector<2x8x8xf32>, vector<2x8x16xf32>, vector<2x8x16xf32> -> vector<2x8x16xf32>
    "tpu.trace_stop"() : () -> ()
    %82 = vector.extract_strided_slice %59 {offsets = [0, 0, 16], sizes = [2, 8, 16], strides = [1, 1, 1]} : vector<2x8x32xf32> to vector<2x8x16xf32>
    %83 = vector.extract_strided_slice %60 {offsets = [0, 0, 16], sizes = [2, 8, 16], strides = [1, 1, 1]} : vector<2x8x32xf32> to vector<2x8x16xf32>
    %84 = vector.extract_strided_slice %61 {offsets = [0, 0, 16], sizes = [2, 8, 16], strides = [1, 1, 1]} : vector<2x8x32xf32> to vector<2x8x16xf32>
    "tpu.trace_start"() <{level = 10 : i32, message = "bqd,bkd->bqk"}> : () -> ()
    %cst_46 = arith.constant dense<0.000000e+00> : vector<2x8x8xf32>
    %85 = tpu.matmul %82, %83, %cst_46 {dimension_numbers = #tpu.dot_dimension_numbers<[2], [2], [1], [1], [0, 0, 0, 1, 1, 1], [0], [0]>} : vector<2x8x16xf32>, vector<2x8x16xf32>, vector<2x8x8xf32> -> vector<2x8x8xf32>
    "tpu.trace_stop"() : () -> ()
    %86 = vector.shape_cast %9 : vector<8x8xi1> to vector<1x8x8xi1>
    %cst_47 = arith.constant -1.000000e+09 : f32
    %87 = vector.shape_cast %86 : vector<1x8x8xi1> to vector<1x8x8xi1>
    %88 = vector.broadcast %87 : vector<1x8x8xi1> to vector<2x8x8xi1>
    %89 = vector.broadcast %cst_47 : f32 to vector<2x8x8xf32>
    %90 = arith.select %88, %89, %85 : vector<2x8x8xi1>, vector<2x8x8xf32>
    %cst_48 = arith.constant dense<0xFF800000> : vector<2x8xf32>
    %91 = vector.multi_reduction <maximumf>, %90, %cst_48 [2] : vector<2x8x8xf32> to vector<2x8xf32>
    %92 = vector.shape_cast %91 : vector<2x8xf32> to vector<2x8x1xf32>
    %93 = vector.broadcast %92 : vector<2x8x1xf32> to vector<2x8x8xf32>
    %94 = arith.subf %90, %93 : vector<2x8x8xf32>
    %95 = math.exp %94 : vector<2x8x8xf32>
    %cst_49 = arith.constant dense<0.000000e+00> : vector<2x8xf32>
    %96 = vector.multi_reduction <add>, %95, %cst_49 [2] : vector<2x8x8xf32> to vector<2x8xf32>
    %97 = vector.shape_cast %96 : vector<2x8xf32> to vector<2x8x1xf32>
    %98 = tpu.reciprocal %97 {approx = true} : vector<2x8x1xf32> -> vector<2x8x1xf32>
    %99 = vector.broadcast %98 : vector<2x8x1xf32> to vector<2x8x8xf32>
    %100 = arith.mulf %95, %99 : vector<2x8x8xf32>
    "tpu.trace_start"() <{level = 10 : i32, message = "bqk,bkd->bqd"}> : () -> ()
    %cst_50 = arith.constant dense<0.000000e+00> : vector<2x8x16xf32>
    %101 = tpu.matmul %100, %84, %cst_50 {dimension_numbers = #tpu.dot_dimension_numbers<[2], [1], [1], [2], [0, 0, 0, 1, 1, 2], [0], [0]>} : vector<2x8x8xf32>, vector<2x8x16xf32>, vector<2x8x16xf32> -> vector<2x8x16xf32>
    "tpu.trace_stop"() : () -> ()
    %102 = tpu.concatenate %81, %101 in 2 : vector<2x8x16xf32>, vector<2x8x16xf32> -> vector<2x8x32xf32>
    %103 = vector.shape_cast %102 : vector<2x8x32xf32> to vector<16x32xf32>
    %c0_51 = arith.constant 0 : index
    %c0_52 = arith.constant 0 : index
    %c0_53 = arith.constant 0 : index
    %104 = vector.load %arg9[%c0_51, %c0_52, %c0_53] : memref<4x32x32xf32, #tpu.memory_space<vmem>>, vector<1x32x32xf32>
    %105 = vector.shape_cast %104 : vector<1x32x32xf32> to vector<32x32xf32>
    %cst_54 = arith.constant dense<0.000000e+00> : vector<16x32xf32>
    %106 = tpu.matmul %103, %105, %cst_54 {dimension_numbers = #tpu.dot_dimension_numbers<[1], [0], [0], [1], [0, 0, 1, 1], [], []>} : vector<16x32xf32>, vector<32x32xf32>, vector<16x32xf32> -> vector<16x32xf32>
    %107 = arith.addf %106, %25 : vector<16x32xf32>
    %c0_55 = arith.constant 0 : index
    %c0_56 = arith.constant 0 : index
    %c0_57 = arith.constant 0 : index
    %108 = vector.load %arg16[%c0_55, %c0_56, %c0_57] : memref<4x1x32xf32, #tpu.memory_space<vmem>>, vector<1x1x32xf32>
    %109 = vector.shape_cast %108 : vector<1x1x32xf32> to vector<1x32xf32>
    %c0_58 = arith.constant 0 : index
    %c0_59 = arith.constant 0 : index
    %c0_60 = arith.constant 0 : index
    %110 = vector.load %arg17[%c0_58, %c0_59, %c0_60] : memref<4x1x32xf32, #tpu.memory_space<vmem>>, vector<1x1x32xf32>
    %111 = vector.shape_cast %110 : vector<1x1x32xf32> to vector<1x32xf32>
    %cst_61 = arith.constant dense<0.000000e+00> : vector<16xf32>
    %112 = vector.multi_reduction <add>, %107, %cst_61 [1] : vector<16x32xf32> to vector<16xf32>
    %113 = vector.shape_cast %112 : vector<16xf32> to vector<16x1xf32>
    %cst_62 = arith.constant 3.200000e+01 : f32
    %114 = vector.broadcast %cst_62 : f32 to vector<16x1xf32>
    %115 = arith.divf %113, %114 : vector<16x1xf32>
    %116 = vector.broadcast %115 : vector<16x1xf32> to vector<16x32xf32>
    %117 = arith.subf %107, %116 : vector<16x32xf32>
    %118 = arith.mulf %117, %117 : vector<16x32xf32>
    %cst_63 = arith.constant dense<0.000000e+00> : vector<16xf32>
    %119 = vector.multi_reduction <add>, %118, %cst_63 [1] : vector<16x32xf32> to vector<16xf32>
    %120 = vector.shape_cast %119 : vector<16xf32> to vector<16x1xf32>
    %cst_64 = arith.constant 3.200000e+01 : f32
    %121 = vector.broadcast %cst_64 : f32 to vector<16x1xf32>
    %122 = arith.divf %120, %121 : vector<16x1xf32>
    %cst_65 = arith.constant 9.99999997E-7 : f32
    %123 = vector.broadcast %cst_65 : f32 to vector<16x1xf32>
    %124 = arith.addf %122, %123 : vector<16x1xf32>
    %125 = math.rsqrt %124 : vector<16x1xf32>
    %126 = vector.broadcast %125 : vector<16x1xf32> to vector<16x32xf32>
    %127 = arith.mulf %117, %126 : vector<16x32xf32>
    %128 = vector.broadcast %109 : vector<1x32xf32> to vector<16x32xf32>
    %129 = arith.mulf %127, %128 : vector<16x32xf32>
    %130 = vector.broadcast %111 : vector<1x32xf32> to vector<16x32xf32>
    %131 = arith.addf %129, %130 : vector<16x32xf32>
    %c0_66 = arith.constant 0 : index
    %c0_67 = arith.constant 0 : index
    %c0_68 = arith.constant 0 : index
    %132 = vector.load %arg12[%c0_66, %c0_67, %c0_68] : memref<4x32x64xf32, #tpu.memory_space<vmem>>, vector<1x32x64xf32>
    %133 = vector.shape_cast %132 : vector<1x32x64xf32> to vector<32x64xf32>
    %cst_69 = arith.constant dense<0.000000e+00> : vector<16x64xf32>
    %134 = tpu.matmul %131, %133, %cst_69 {dimension_numbers = #tpu.dot_dimension_numbers<[1], [0], [0], [1], [0, 0, 1, 1], [], []>} : vector<16x32xf32>, vector<32x64xf32>, vector<16x64xf32> -> vector<16x64xf32>
    %c0_70 = arith.constant 0 : index
    %c0_71 = arith.constant 0 : index
    %c0_72 = arith.constant 0 : index
    %135 = vector.load %arg13[%c0_70, %c0_71, %c0_72] : memref<4x1x64xf32, #tpu.memory_space<vmem>>, vector<1x1x64xf32>
    %136 = vector.shape_cast %135 : vector<1x1x64xf32> to vector<1x64xf32>
    %137 = vector.broadcast %136 : vector<1x64xf32> to vector<16x64xf32>
    %138 = arith.addf %134, %137 : vector<16x64xf32>
    %cst_73 = arith.constant 0.000000e+00 : f32
    %139 = vector.broadcast %cst_73 : f32 to vector<16x64xf32>
    %140 = arith.maximumf %138, %139 : vector<16x64xf32>
    %c0_74 = arith.constant 0 : index
    %c0_75 = arith.constant 0 : index
    %c0_76 = arith.constant 0 : index
    %141 = vector.load %arg14[%c0_74, %c0_75, %c0_76] : memref<4x64x32xf32, #tpu.memory_space<vmem>>, vector<1x64x32xf32>
    %142 = vector.shape_cast %141 : vector<1x64x32xf32> to vector<64x32xf32>
    %cst_77 = arith.constant dense<0.000000e+00> : vector<16x32xf32>
    %143 = tpu.matmul %140, %142, %cst_77 {dimension_numbers = #tpu.dot_dimension_numbers<[1], [0], [0], [1], [0, 0, 1, 1], [], []>} : vector<16x64xf32>, vector<64x32xf32>, vector<16x32xf32> -> vector<16x32xf32>
    %c0_78 = arith.constant 0 : index
    %c0_79 = arith.constant 0 : index
    %c0_80 = arith.constant 0 : index
    %144 = vector.load %arg15[%c0_78, %c0_79, %c0_80] : memref<4x1x32xf32, #tpu.memory_space<vmem>>, vector<1x1x32xf32>
    %145 = vector.shape_cast %144 : vector<1x1x32xf32> to vector<1x32xf32>
    %146 = vector.broadcast %145 : vector<1x32xf32> to vector<16x32xf32>
    %147 = arith.addf %143, %146 : vector<16x32xf32>
    %148 = arith.addf %147, %107 : vector<16x32xf32>
    %c1 = arith.constant 1 : index
    %c0_81 = arith.constant 0 : index
    %c0_82 = arith.constant 0 : index
    %149 = vector.load %arg10[%c1, %c0_81, %c0_82] : memref<4x1x32xf32, #tpu.memory_space<vmem>>, vector<1x1x32xf32>
    %150 = vector.shape_cast %149 : vector<1x1x32xf32> to vector<1x32xf32>
    %c1_83 = arith.constant 1 : index
    %c0_84 = arith.constant 0 : index
    %c0_85 = arith.constant 0 : index
    %151 = vector.load %arg11[%c1_83, %c0_84, %c0_85] : memref<4x1x32xf32, #tpu.memory_space<vmem>>, vector<1x1x32xf32>
    %152 = vector.shape_cast %151 : vector<1x1x32xf32> to vector<1x32xf32>
    %cst_86 = arith.constant dense<0.000000e+00> : vector<16xf32>
    %153 = vector.multi_reduction <add>, %148, %cst_86 [1] : vector<16x32xf32> to vector<16xf32>
    %154 = vector.shape_cast %153 : vector<16xf32> to vector<16x1xf32>
    %cst_87 = arith.constant 3.200000e+01 : f32
    %155 = vector.broadcast %cst_87 : f32 to vector<16x1xf32>
    %156 = arith.divf %154, %155 : vector<16x1xf32>
    %157 = vector.broadcast %156 : vector<16x1xf32> to vector<16x32xf32>
    %158 = arith.subf %148, %157 : vector<16x32xf32>
    %159 = arith.mulf %158, %158 : vector<16x32xf32>
    %cst_88 = arith.constant dense<0.000000e+00> : vector<16xf32>
    %160 = vector.multi_reduction <add>, %159, %cst_88 [1] : vector<16x32xf32> to vector<16xf32>
    %161 = vector.shape_cast %160 : vector<16xf32> to vector<16x1xf32>
    %cst_89 = arith.constant 3.200000e+01 : f32
    %162 = vector.broadcast %cst_89 : f32 to vector<16x1xf32>
    %163 = arith.divf %161, %162 : vector<16x1xf32>
    %cst_90 = arith.constant 9.99999997E-7 : f32
    %164 = vector.broadcast %cst_90 : f32 to vector<16x1xf32>
    %165 = arith.addf %163, %164 : vector<16x1xf32>
    %166 = math.rsqrt %165 : vector<16x1xf32>
    %167 = vector.broadcast %166 : vector<16x1xf32> to vector<16x32xf32>
    %168 = arith.mulf %158, %167 : vector<16x32xf32>
    %169 = vector.broadcast %150 : vector<1x32xf32> to vector<16x32xf32>
    %170 = arith.mulf %168, %169 : vector<16x32xf32>
    %171 = vector.broadcast %152 : vector<1x32xf32> to vector<16x32xf32>
    %172 = arith.addf %170, %171 : vector<16x32xf32>
    %c1_91 = arith.constant 1 : index
    %c0_92 = arith.constant 0 : index
    %c0_93 = arith.constant 0 : index
    %173 = vector.load %arg6[%c1_91, %c0_92, %c0_93] : memref<4x32x32xf32, #tpu.memory_space<vmem>>, vector<1x32x32xf32>
    %174 = vector.shape_cast %173 : vector<1x32x32xf32> to vector<32x32xf32>
    %cst_94 = arith.constant dense<0.000000e+00> : vector<16x32xf32>
    %175 = tpu.matmul %172, %174, %cst_94 {dimension_numbers = #tpu.dot_dimension_numbers<[1], [0], [0], [1], [0, 0, 1, 1], [], []>} : vector<16x32xf32>, vector<32x32xf32>, vector<16x32xf32> -> vector<16x32xf32>
    %c1_95 = arith.constant 1 : index
    %c0_96 = arith.constant 0 : index
    %c0_97 = arith.constant 0 : index
    %176 = vector.load %arg7[%c1_95, %c0_96, %c0_97] : memref<4x32x32xf32, #tpu.memory_space<vmem>>, vector<1x32x32xf32>
    %177 = vector.shape_cast %176 : vector<1x32x32xf32> to vector<32x32xf32>
    %cst_98 = arith.constant dense<0.000000e+00> : vector<16x32xf32>
    %178 = tpu.matmul %172, %177, %cst_98 {dimension_numbers = #tpu.dot_dimension_numbers<[1], [0], [0], [1], [0, 0, 1, 1], [], []>} : vector<16x32xf32>, vector<32x32xf32>, vector<16x32xf32> -> vector<16x32xf32>
    %c1_99 = arith.constant 1 : index
    %c0_100 = arith.constant 0 : index
    %c0_101 = arith.constant 0 : index
    %179 = vector.load %arg8[%c1_99, %c0_100, %c0_101] : memref<4x32x32xf32, #tpu.memory_space<vmem>>, vector<1x32x32xf32>
    %180 = vector.shape_cast %179 : vector<1x32x32xf32> to vector<32x32xf32>
    %cst_102 = arith.constant dense<0.000000e+00> : vector<16x32xf32>
    %181 = tpu.matmul %172, %180, %cst_102 {dimension_numbers = #tpu.dot_dimension_numbers<[1], [0], [0], [1], [0, 0, 1, 1], [], []>} : vector<16x32xf32>, vector<32x32xf32>, vector<16x32xf32> -> vector<16x32xf32>
    %182 = vector.shape_cast %175 : vector<16x32xf32> to vector<2x8x32xf32>
    %183 = vector.shape_cast %178 : vector<16x32xf32> to vector<2x8x32xf32>
    %184 = vector.shape_cast %181 : vector<16x32xf32> to vector<2x8x32xf32>
    %185 = vector.extract_strided_slice %182 {offsets = [0, 0, 0], sizes = [2, 8, 16], strides = [1, 1, 1]} : vector<2x8x32xf32> to vector<2x8x16xf32>
    %186 = vector.extract_strided_slice %183 {offsets = [0, 0, 0], sizes = [2, 8, 16], strides = [1, 1, 1]} : vector<2x8x32xf32> to vector<2x8x16xf32>
    %187 = vector.extract_strided_slice %184 {offsets = [0, 0, 0], sizes = [2, 8, 16], strides = [1, 1, 1]} : vector<2x8x32xf32> to vector<2x8x16xf32>
    "tpu.trace_start"() <{level = 10 : i32, message = "bqd,bkd->bqk"}> : () -> ()
    %cst_103 = arith.constant dense<0.000000e+00> : vector<2x8x8xf32>
    %188 = tpu.matmul %185, %186, %cst_103 {dimension_numbers = #tpu.dot_dimension_numbers<[2], [2], [1], [1], [0, 0, 0, 1, 1, 1], [0], [0]>} : vector<2x8x16xf32>, vector<2x8x16xf32>, vector<2x8x8xf32> -> vector<2x8x8xf32>
    "tpu.trace_stop"() : () -> ()
    %189 = vector.shape_cast %9 : vector<8x8xi1> to vector<1x8x8xi1>
    %cst_104 = arith.constant -1.000000e+09 : f32
    %190 = vector.shape_cast %189 : vector<1x8x8xi1> to vector<1x8x8xi1>
    %191 = vector.broadcast %190 : vector<1x8x8xi1> to vector<2x8x8xi1>
    %192 = vector.broadcast %cst_104 : f32 to vector<2x8x8xf32>
    %193 = arith.select %191, %192, %188 : vector<2x8x8xi1>, vector<2x8x8xf32>
    %cst_105 = arith.constant dense<0xFF800000> : vector<2x8xf32>
    %194 = vector.multi_reduction <maximumf>, %193, %cst_105 [2] : vector<2x8x8xf32> to vector<2x8xf32>
    %195 = vector.shape_cast %194 : vector<2x8xf32> to vector<2x8x1xf32>
    %196 = vector.broadcast %195 : vector<2x8x1xf32> to vector<2x8x8xf32>
    %197 = arith.subf %193, %196 : vector<2x8x8xf32>
    %198 = math.exp %197 : vector<2x8x8xf32>
    %cst_106 = arith.constant dense<0.000000e+00> : vector<2x8xf32>
    %199 = vector.multi_reduction <add>, %198, %cst_106 [2] : vector<2x8x8xf32> to vector<2x8xf32>
    %200 = vector.shape_cast %199 : vector<2x8xf32> to vector<2x8x1xf32>
    %201 = tpu.reciprocal %200 {approx = true} : vector<2x8x1xf32> -> vector<2x8x1xf32>
    %202 = vector.broadcast %201 : vector<2x8x1xf32> to vector<2x8x8xf32>
    %203 = arith.mulf %198, %202 : vector<2x8x8xf32>
    "tpu.trace_start"() <{level = 10 : i32, message = "bqk,bkd->bqd"}> : () -> ()
    %cst_107 = arith.constant dense<0.000000e+00> : vector<2x8x16xf32>
    %204 = tpu.matmul %203, %187, %cst_107 {dimension_numbers = #tpu.dot_dimension_numbers<[2], [1], [1], [2], [0, 0, 0, 1, 1, 2], [0], [0]>} : vector<2x8x8xf32>, vector<2x8x16xf32>, vector<2x8x16xf32> -> vector<2x8x16xf32>
    "tpu.trace_stop"() : () -> ()
    %205 = vector.extract_strided_slice %182 {offsets = [0, 0, 16], sizes = [2, 8, 16], strides = [1, 1, 1]} : vector<2x8x32xf32> to vector<2x8x16xf32>
    %206 = vector.extract_strided_slice %183 {offsets = [0, 0, 16], sizes = [2, 8, 16], strides = [1, 1, 1]} : vector<2x8x32xf32> to vector<2x8x16xf32>
    %207 = vector.extract_strided_slice %184 {offsets = [0, 0, 16], sizes = [2, 8, 16], strides = [1, 1, 1]} : vector<2x8x32xf32> to vector<2x8x16xf32>
    "tpu.trace_start"() <{level = 10 : i32, message = "bqd,bkd->bqk"}> : () -> ()
    %cst_108 = arith.constant dense<0.000000e+00> : vector<2x8x8xf32>
    %208 = tpu.matmul %205, %206, %cst_108 {dimension_numbers = #tpu.dot_dimension_numbers<[2], [2], [1], [1], [0, 0, 0, 1, 1, 1], [0], [0]>} : vector<2x8x16xf32>, vector<2x8x16xf32>, vector<2x8x8xf32> -> vector<2x8x8xf32>
    "tpu.trace_stop"() : () -> ()
    %209 = vector.shape_cast %9 : vector<8x8xi1> to vector<1x8x8xi1>
    %cst_109 = arith.constant -1.000000e+09 : f32
    %210 = vector.shape_cast %209 : vector<1x8x8xi1> to vector<1x8x8xi1>
    %211 = vector.broadcast %210 : vector<1x8x8xi1> to vector<2x8x8xi1>
    %212 = vector.broadcast %cst_109 : f32 to vector<2x8x8xf32>
    %213 = arith.select %211, %212, %208 : vector<2x8x8xi1>, vector<2x8x8xf32>
    %cst_110 = arith.constant dense<0xFF800000> : vector<2x8xf32>
    %214 = vector.multi_reduction <maximumf>, %213, %cst_110 [2] : vector<2x8x8xf32> to vector<2x8xf32>
    %215 = vector.shape_cast %214 : vector<2x8xf32> to vector<2x8x1xf32>
    %216 = vector.broadcast %215 : vector<2x8x1xf32> to vector<2x8x8xf32>
    %217 = arith.subf %213, %216 : vector<2x8x8xf32>
    %218 = math.exp %217 : vector<2x8x8xf32>
    %cst_111 = arith.constant dense<0.000000e+00> : vector<2x8xf32>
    %219 = vector.multi_reduction <add>, %218, %cst_111 [2] : vector<2x8x8xf32> to vector<2x8xf32>
    %220 = vector.shape_cast %219 : vector<2x8xf32> to vector<2x8x1xf32>
    %221 = tpu.reciprocal %220 {approx = true} : vector<2x8x1xf32> -> vector<2x8x1xf32>
    %222 = vector.broadcast %221 : vector<2x8x1xf32> to vector<2x8x8xf32>
    %223 = arith.mulf %218, %222 : vector<2x8x8xf32>
    "tpu.trace_start"() <{level = 10 : i32, message = "bqk,bkd->bqd"}> : () -> ()
    %cst_112 = arith.constant dense<0.000000e+00> : vector<2x8x16xf32>
    %224 = tpu.matmul %223, %207, %cst_112 {dimension_numbers = #tpu.dot_dimension_numbers<[2], [1], [1], [2], [0, 0, 0, 1, 1, 2], [0], [0]>} : vector<2x8x8xf32>, vector<2x8x16xf32>, vector<2x8x16xf32> -> vector<2x8x16xf32>
    "tpu.trace_stop"() : () -> ()
    %225 = tpu.concatenate %204, %224 in 2 : vector<2x8x16xf32>, vector<2x8x16xf32> -> vector<2x8x32xf32>
    %226 = vector.shape_cast %225 : vector<2x8x32xf32> to vector<16x32xf32>
    %c1_113 = arith.constant 1 : index
    %c0_114 = arith.constant 0 : index
    %c0_115 = arith.constant 0 : index
    %227 = vector.load %arg9[%c1_113, %c0_114, %c0_115] : memref<4x32x32xf32, #tpu.memory_space<vmem>>, vector<1x32x32xf32>
    %228 = vector.shape_cast %227 : vector<1x32x32xf32> to vector<32x32xf32>
    %cst_116 = arith.constant dense<0.000000e+00> : vector<16x32xf32>
    %229 = tpu.matmul %226, %228, %cst_116 {dimension_numbers = #tpu.dot_dimension_numbers<[1], [0], [0], [1], [0, 0, 1, 1], [], []>} : vector<16x32xf32>, vector<32x32xf32>, vector<16x32xf32> -> vector<16x32xf32>
    %230 = arith.addf %229, %148 : vector<16x32xf32>
    %c1_117 = arith.constant 1 : index
    %c0_118 = arith.constant 0 : index
    %c0_119 = arith.constant 0 : index
    %231 = vector.load %arg16[%c1_117, %c0_118, %c0_119] : memref<4x1x32xf32, #tpu.memory_space<vmem>>, vector<1x1x32xf32>
    %232 = vector.shape_cast %231 : vector<1x1x32xf32> to vector<1x32xf32>
    %c1_120 = arith.constant 1 : index
    %c0_121 = arith.constant 0 : index
    %c0_122 = arith.constant 0 : index
    %233 = vector.load %arg17[%c1_120, %c0_121, %c0_122] : memref<4x1x32xf32, #tpu.memory_space<vmem>>, vector<1x1x32xf32>
    %234 = vector.shape_cast %233 : vector<1x1x32xf32> to vector<1x32xf32>
    %cst_123 = arith.constant dense<0.000000e+00> : vector<16xf32>
    %235 = vector.multi_reduction <add>, %230, %cst_123 [1] : vector<16x32xf32> to vector<16xf32>
    %236 = vector.shape_cast %235 : vector<16xf32> to vector<16x1xf32>
    %cst_124 = arith.constant 3.200000e+01 : f32
    %237 = vector.broadcast %cst_124 : f32 to vector<16x1xf32>
    %238 = arith.divf %236, %237 : vector<16x1xf32>
    %239 = vector.broadcast %238 : vector<16x1xf32> to vector<16x32xf32>
    %240 = arith.subf %230, %239 : vector<16x32xf32>
    %241 = arith.mulf %240, %240 : vector<16x32xf32>
    %cst_125 = arith.constant dense<0.000000e+00> : vector<16xf32>
    %242 = vector.multi_reduction <add>, %241, %cst_125 [1] : vector<16x32xf32> to vector<16xf32>
    %243 = vector.shape_cast %242 : vector<16xf32> to vector<16x1xf32>
    %cst_126 = arith.constant 3.200000e+01 : f32
    %244 = vector.broadcast %cst_126 : f32 to vector<16x1xf32>
    %245 = arith.divf %243, %244 : vector<16x1xf32>
    %cst_127 = arith.constant 9.99999997E-7 : f32
    %246 = vector.broadcast %cst_127 : f32 to vector<16x1xf32>
    %247 = arith.addf %245, %246 : vector<16x1xf32>
    %248 = math.rsqrt %247 : vector<16x1xf32>
    %249 = vector.broadcast %248 : vector<16x1xf32> to vector<16x32xf32>
    %250 = arith.mulf %240, %249 : vector<16x32xf32>
    %251 = vector.broadcast %232 : vector<1x32xf32> to vector<16x32xf32>
    %252 = arith.mulf %250, %251 : vector<16x32xf32>
    %253 = vector.broadcast %234 : vector<1x32xf32> to vector<16x32xf32>
    %254 = arith.addf %252, %253 : vector<16x32xf32>
    %c1_128 = arith.constant 1 : index
    %c0_129 = arith.constant 0 : index
    %c0_130 = arith.constant 0 : index
    %255 = vector.load %arg12[%c1_128, %c0_129, %c0_130] : memref<4x32x64xf32, #tpu.memory_space<vmem>>, vector<1x32x64xf32>
    %256 = vector.shape_cast %255 : vector<1x32x64xf32> to vector<32x64xf32>
    %cst_131 = arith.constant dense<0.000000e+00> : vector<16x64xf32>
    %257 = tpu.matmul %254, %256, %cst_131 {dimension_numbers = #tpu.dot_dimension_numbers<[1], [0], [0], [1], [0, 0, 1, 1], [], []>} : vector<16x32xf32>, vector<32x64xf32>, vector<16x64xf32> -> vector<16x64xf32>
    %c1_132 = arith.constant 1 : index
    %c0_133 = arith.constant 0 : index
    %c0_134 = arith.constant 0 : index
    %258 = vector.load %arg13[%c1_132, %c0_133, %c0_134] : memref<4x1x64xf32, #tpu.memory_space<vmem>>, vector<1x1x64xf32>
    %259 = vector.shape_cast %258 : vector<1x1x64xf32> to vector<1x64xf32>
    %260 = vector.broadcast %259 : vector<1x64xf32> to vector<16x64xf32>
    %261 = arith.addf %257, %260 : vector<16x64xf32>
    %cst_135 = arith.constant 0.000000e+00 : f32
    %262 = vector.broadcast %cst_135 : f32 to vector<16x64xf32>
    %263 = arith.maximumf %261, %262 : vector<16x64xf32>
    %c1_136 = arith.constant 1 : index
    %c0_137 = arith.constant 0 : index
    %c0_138 = arith.constant 0 : index
    %264 = vector.load %arg14[%c1_136, %c0_137, %c0_138] : memref<4x64x32xf32, #tpu.memory_space<vmem>>, vector<1x64x32xf32>
    %265 = vector.shape_cast %264 : vector<1x64x32xf32> to vector<64x32xf32>
    %cst_139 = arith.constant dense<0.000000e+00> : vector<16x32xf32>
    %266 = tpu.matmul %263, %265, %cst_139 {dimension_numbers = #tpu.dot_dimension_numbers<[1], [0], [0], [1], [0, 0, 1, 1], [], []>} : vector<16x64xf32>, vector<64x32xf32>, vector<16x32xf32> -> vector<16x32xf32>
    %c1_140 = arith.constant 1 : index
    %c0_141 = arith.constant 0 : index
    %c0_142 = arith.constant 0 : index
    %267 = vector.load %arg15[%c1_140, %c0_141, %c0_142] : memref<4x1x32xf32, #tpu.memory_space<vmem>>, vector<1x1x32xf32>
    %268 = vector.shape_cast %267 : vector<1x1x32xf32> to vector<1x32xf32>
    %269 = vector.broadcast %268 : vector<1x32xf32> to vector<16x32xf32>
    %270 = arith.addf %266, %269 : vector<16x32xf32>
    %271 = arith.addf %270, %230 : vector<16x32xf32>
    %c0_143 = arith.constant 0 : index
    %c0_144 = arith.constant 0 : index
    %272 = vector.load %arg18[%c0_143, %c0_144] : memref<32x4xf32, #tpu.memory_space<vmem>>, vector<32x4xf32>
    %cst_145 = arith.constant dense<0.000000e+00> : vector<16x4xf32>
    %273 = tpu.matmul %271, %272, %cst_145 {dimension_numbers = #tpu.dot_dimension_numbers<[1], [0], [0], [1], [0, 0, 1, 1], [], []>} : vector<16x32xf32>, vector<32x4xf32>, vector<16x4xf32> -> vector<16x4xf32>
    %c0_146 = arith.constant 0 : index
    %c0_147 = arith.constant 0 : index
    %274 = vector.load %arg19[%c0_146, %c0_147] : memref<1x4xf32, #tpu.memory_space<vmem>>, vector<1x4xf32>
    %275 = vector.broadcast %274 : vector<1x4xf32> to vector<16x4xf32>
    %276 = arith.addf %273, %275 : vector<16x4xf32>
    %277 = arith.mulf %3, %1 : vector<16x4xf32>
    %278 = arith.mulf %5, %276 : vector<16x4xf32>
    %279 = arith.addf %277, %278 : vector<16x4xf32>
    %c1_148 = arith.constant 1 : index
    %c0_149 = arith.constant 0 : index
    %c0_150 = arith.constant 0 : index
    %280 = vector.load %arg3[%c1_148, %c0_149, %c0_150] : memref<2x4x32xf32, #tpu.memory_space<vmem>>, vector<1x4x32xf32>
    %281 = vector.shape_cast %280 : vector<1x4x32xf32> to vector<4x32xf32>
    %cst_151 = arith.constant dense<0.000000e+00> : vector<16x32xf32>
    %282 = tpu.matmul %279, %281, %cst_151 {dimension_numbers = #tpu.dot_dimension_numbers<[1], [0], [0], [1], [0, 0, 1, 1], [], []>} : vector<16x4xf32>, vector<4x32xf32>, vector<16x32xf32> -> vector<16x32xf32>
    %c1_152 = arith.constant 1 : index
    %c0_153 = arith.constant 0 : index
    %c0_154 = arith.constant 0 : index
    %283 = vector.load %arg4[%c1_152, %c0_153, %c0_154] : memref<2x4x32xf32, #tpu.memory_space<vmem>>, vector<1x4x32xf32>
    %284 = vector.shape_cast %283 : vector<1x4x32xf32> to vector<4x32xf32>
    %cst_155 = arith.constant dense<0.000000e+00> : vector<16x32xf32>
    %285 = tpu.matmul %3, %284, %cst_155 {dimension_numbers = #tpu.dot_dimension_numbers<[1], [0], [0], [1], [0, 0, 1, 1], [], []>} : vector<16x4xf32>, vector<4x32xf32>, vector<16x32xf32> -> vector<16x32xf32>
    %286 = arith.addf %282, %285 : vector<16x32xf32>
    %c1_156 = arith.constant 1 : index
    %c0_157 = arith.constant 0 : index
    %c0_158 = arith.constant 0 : index
    %287 = vector.load %arg5[%c1_156, %c0_157, %c0_158] : memref<2x1x32xf32, #tpu.memory_space<vmem>>, vector<1x1x32xf32>
    %288 = vector.shape_cast %287 : vector<1x1x32xf32> to vector<1x32xf32>
    %289 = vector.broadcast %288 : vector<1x32xf32> to vector<16x32xf32>
    %290 = arith.addf %286, %289 : vector<16x32xf32>
    %291 = vector.shape_cast %290 : vector<16x32xf32> to vector<2x8x32xf32>
    %292 = vector.shape_cast %6 : vector<8x32xf32> to vector<1x8x32xf32>
    %293 = vector.broadcast %292 : vector<1x8x32xf32> to vector<2x8x32xf32>
    %294 = arith.addf %291, %293 : vector<2x8x32xf32>
    %295 = vector.shape_cast %294 : vector<2x8x32xf32> to vector<16x32xf32>
    %c2 = arith.constant 2 : index
    %c0_159 = arith.constant 0 : index
    %c0_160 = arith.constant 0 : index
    %296 = vector.load %arg10[%c2, %c0_159, %c0_160] : memref<4x1x32xf32, #tpu.memory_space<vmem>>, vector<1x1x32xf32>
    %297 = vector.shape_cast %296 : vector<1x1x32xf32> to vector<1x32xf32>
    %c2_161 = arith.constant 2 : index
    %c0_162 = arith.constant 0 : index
    %c0_163 = arith.constant 0 : index
    %298 = vector.load %arg11[%c2_161, %c0_162, %c0_163] : memref<4x1x32xf32, #tpu.memory_space<vmem>>, vector<1x1x32xf32>
    %299 = vector.shape_cast %298 : vector<1x1x32xf32> to vector<1x32xf32>
    %cst_164 = arith.constant dense<0.000000e+00> : vector<16xf32>
    %300 = vector.multi_reduction <add>, %295, %cst_164 [1] : vector<16x32xf32> to vector<16xf32>
    %301 = vector.shape_cast %300 : vector<16xf32> to vector<16x1xf32>
    %cst_165 = arith.constant 3.200000e+01 : f32
    %302 = vector.broadcast %cst_165 : f32 to vector<16x1xf32>
    %303 = arith.divf %301, %302 : vector<16x1xf32>
    %304 = vector.broadcast %303 : vector<16x1xf32> to vector<16x32xf32>
    %305 = arith.subf %295, %304 : vector<16x32xf32>
    %306 = arith.mulf %305, %305 : vector<16x32xf32>
    %cst_166 = arith.constant dense<0.000000e+00> : vector<16xf32>
    %307 = vector.multi_reduction <add>, %306, %cst_166 [1] : vector<16x32xf32> to vector<16xf32>
    %308 = vector.shape_cast %307 : vector<16xf32> to vector<16x1xf32>
    %cst_167 = arith.constant 3.200000e+01 : f32
    %309 = vector.broadcast %cst_167 : f32 to vector<16x1xf32>
    %310 = arith.divf %308, %309 : vector<16x1xf32>
    %cst_168 = arith.constant 9.99999997E-7 : f32
    %311 = vector.broadcast %cst_168 : f32 to vector<16x1xf32>
    %312 = arith.addf %310, %311 : vector<16x1xf32>
    %313 = math.rsqrt %312 : vector<16x1xf32>
    %314 = vector.broadcast %313 : vector<16x1xf32> to vector<16x32xf32>
    %315 = arith.mulf %305, %314 : vector<16x32xf32>
    %316 = vector.broadcast %297 : vector<1x32xf32> to vector<16x32xf32>
    %317 = arith.mulf %315, %316 : vector<16x32xf32>
    %318 = vector.broadcast %299 : vector<1x32xf32> to vector<16x32xf32>
    %319 = arith.addf %317, %318 : vector<16x32xf32>
    %c2_169 = arith.constant 2 : index
    %c0_170 = arith.constant 0 : index
    %c0_171 = arith.constant 0 : index
    %320 = vector.load %arg6[%c2_169, %c0_170, %c0_171] : memref<4x32x32xf32, #tpu.memory_space<vmem>>, vector<1x32x32xf32>
    %321 = vector.shape_cast %320 : vector<1x32x32xf32> to vector<32x32xf32>
    %cst_172 = arith.constant dense<0.000000e+00> : vector<16x32xf32>
    %322 = tpu.matmul %319, %321, %cst_172 {dimension_numbers = #tpu.dot_dimension_numbers<[1], [0], [0], [1], [0, 0, 1, 1], [], []>} : vector<16x32xf32>, vector<32x32xf32>, vector<16x32xf32> -> vector<16x32xf32>
    %c2_173 = arith.constant 2 : index
    %c0_174 = arith.constant 0 : index
    %c0_175 = arith.constant 0 : index
    %323 = vector.load %arg7[%c2_173, %c0_174, %c0_175] : memref<4x32x32xf32, #tpu.memory_space<vmem>>, vector<1x32x32xf32>
    %324 = vector.shape_cast %323 : vector<1x32x32xf32> to vector<32x32xf32>
    %cst_176 = arith.constant dense<0.000000e+00> : vector<16x32xf32>
    %325 = tpu.matmul %319, %324, %cst_176 {dimension_numbers = #tpu.dot_dimension_numbers<[1], [0], [0], [1], [0, 0, 1, 1], [], []>} : vector<16x32xf32>, vector<32x32xf32>, vector<16x32xf32> -> vector<16x32xf32>
    %c2_177 = arith.constant 2 : index
    %c0_178 = arith.constant 0 : index
    %c0_179 = arith.constant 0 : index
    %326 = vector.load %arg8[%c2_177, %c0_178, %c0_179] : memref<4x32x32xf32, #tpu.memory_space<vmem>>, vector<1x32x32xf32>
    %327 = vector.shape_cast %326 : vector<1x32x32xf32> to vector<32x32xf32>
    %cst_180 = arith.constant dense<0.000000e+00> : vector<16x32xf32>
    %328 = tpu.matmul %319, %327, %cst_180 {dimension_numbers = #tpu.dot_dimension_numbers<[1], [0], [0], [1], [0, 0, 1, 1], [], []>} : vector<16x32xf32>, vector<32x32xf32>, vector<16x32xf32> -> vector<16x32xf32>
    %329 = vector.shape_cast %322 : vector<16x32xf32> to vector<2x8x32xf32>
    %330 = vector.shape_cast %325 : vector<16x32xf32> to vector<2x8x32xf32>
    %331 = vector.shape_cast %328 : vector<16x32xf32> to vector<2x8x32xf32>
    %332 = vector.extract_strided_slice %329 {offsets = [0, 0, 0], sizes = [2, 8, 16], strides = [1, 1, 1]} : vector<2x8x32xf32> to vector<2x8x16xf32>
    %333 = vector.extract_strided_slice %330 {offsets = [0, 0, 0], sizes = [2, 8, 16], strides = [1, 1, 1]} : vector<2x8x32xf32> to vector<2x8x16xf32>
    %334 = vector.extract_strided_slice %331 {offsets = [0, 0, 0], sizes = [2, 8, 16], strides = [1, 1, 1]} : vector<2x8x32xf32> to vector<2x8x16xf32>
    "tpu.trace_start"() <{level = 10 : i32, message = "bqd,bkd->bqk"}> : () -> ()
    %cst_181 = arith.constant dense<0.000000e+00> : vector<2x8x8xf32>
    %335 = tpu.matmul %332, %333, %cst_181 {dimension_numbers = #tpu.dot_dimension_numbers<[2], [2], [1], [1], [0, 0, 0, 1, 1, 1], [0], [0]>} : vector<2x8x16xf32>, vector<2x8x16xf32>, vector<2x8x8xf32> -> vector<2x8x8xf32>
    "tpu.trace_stop"() : () -> ()
    %cst_182 = arith.constant dense<0xFF800000> : vector<2x8xf32>
    %336 = vector.multi_reduction <maximumf>, %335, %cst_182 [2] : vector<2x8x8xf32> to vector<2x8xf32>
    %337 = vector.shape_cast %336 : vector<2x8xf32> to vector<2x8x1xf32>
    %338 = vector.broadcast %337 : vector<2x8x1xf32> to vector<2x8x8xf32>
    %339 = arith.subf %335, %338 : vector<2x8x8xf32>
    %340 = math.exp %339 : vector<2x8x8xf32>
    %cst_183 = arith.constant dense<0.000000e+00> : vector<2x8xf32>
    %341 = vector.multi_reduction <add>, %340, %cst_183 [2] : vector<2x8x8xf32> to vector<2x8xf32>
    %342 = vector.shape_cast %341 : vector<2x8xf32> to vector<2x8x1xf32>
    %343 = tpu.reciprocal %342 {approx = true} : vector<2x8x1xf32> -> vector<2x8x1xf32>
    %344 = vector.broadcast %343 : vector<2x8x1xf32> to vector<2x8x8xf32>
    %345 = arith.mulf %340, %344 : vector<2x8x8xf32>
    "tpu.trace_start"() <{level = 10 : i32, message = "bqk,bkd->bqd"}> : () -> ()
    %cst_184 = arith.constant dense<0.000000e+00> : vector<2x8x16xf32>
    %346 = tpu.matmul %345, %334, %cst_184 {dimension_numbers = #tpu.dot_dimension_numbers<[2], [1], [1], [2], [0, 0, 0, 1, 1, 2], [0], [0]>} : vector<2x8x8xf32>, vector<2x8x16xf32>, vector<2x8x16xf32> -> vector<2x8x16xf32>
    "tpu.trace_stop"() : () -> ()
    %347 = vector.extract_strided_slice %329 {offsets = [0, 0, 16], sizes = [2, 8, 16], strides = [1, 1, 1]} : vector<2x8x32xf32> to vector<2x8x16xf32>
    %348 = vector.extract_strided_slice %330 {offsets = [0, 0, 16], sizes = [2, 8, 16], strides = [1, 1, 1]} : vector<2x8x32xf32> to vector<2x8x16xf32>
    %349 = vector.extract_strided_slice %331 {offsets = [0, 0, 16], sizes = [2, 8, 16], strides = [1, 1, 1]} : vector<2x8x32xf32> to vector<2x8x16xf32>
    "tpu.trace_start"() <{level = 10 : i32, message = "bqd,bkd->bqk"}> : () -> ()
    %cst_185 = arith.constant dense<0.000000e+00> : vector<2x8x8xf32>
    %350 = tpu.matmul %347, %348, %cst_185 {dimension_numbers = #tpu.dot_dimension_numbers<[2], [2], [1], [1], [0, 0, 0, 1, 1, 1], [0], [0]>} : vector<2x8x16xf32>, vector<2x8x16xf32>, vector<2x8x8xf32> -> vector<2x8x8xf32>
    "tpu.trace_stop"() : () -> ()
    %cst_186 = arith.constant dense<0xFF800000> : vector<2x8xf32>
    %351 = vector.multi_reduction <maximumf>, %350, %cst_186 [2] : vector<2x8x8xf32> to vector<2x8xf32>
    %352 = vector.shape_cast %351 : vector<2x8xf32> to vector<2x8x1xf32>
    %353 = vector.broadcast %352 : vector<2x8x1xf32> to vector<2x8x8xf32>
    %354 = arith.subf %350, %353 : vector<2x8x8xf32>
    %355 = math.exp %354 : vector<2x8x8xf32>
    %cst_187 = arith.constant dense<0.000000e+00> : vector<2x8xf32>
    %356 = vector.multi_reduction <add>, %355, %cst_187 [2] : vector<2x8x8xf32> to vector<2x8xf32>
    %357 = vector.shape_cast %356 : vector<2x8xf32> to vector<2x8x1xf32>
    %358 = tpu.reciprocal %357 {approx = true} : vector<2x8x1xf32> -> vector<2x8x1xf32>
    %359 = vector.broadcast %358 : vector<2x8x1xf32> to vector<2x8x8xf32>
    %360 = arith.mulf %355, %359 : vector<2x8x8xf32>
    "tpu.trace_start"() <{level = 10 : i32, message = "bqk,bkd->bqd"}> : () -> ()
    %cst_188 = arith.constant dense<0.000000e+00> : vector<2x8x16xf32>
    %361 = tpu.matmul %360, %349, %cst_188 {dimension_numbers = #tpu.dot_dimension_numbers<[2], [1], [1], [2], [0, 0, 0, 1, 1, 2], [0], [0]>} : vector<2x8x8xf32>, vector<2x8x16xf32>, vector<2x8x16xf32> -> vector<2x8x16xf32>
    "tpu.trace_stop"() : () -> ()
    %362 = tpu.concatenate %346, %361 in 2 : vector<2x8x16xf32>, vector<2x8x16xf32> -> vector<2x8x32xf32>
    %363 = vector.shape_cast %362 : vector<2x8x32xf32> to vector<16x32xf32>
    %c2_189 = arith.constant 2 : index
    %c0_190 = arith.constant 0 : index
    %c0_191 = arith.constant 0 : index
    %364 = vector.load %arg9[%c2_189, %c0_190, %c0_191] : memref<4x32x32xf32, #tpu.memory_space<vmem>>, vector<1x32x32xf32>
    %365 = vector.shape_cast %364 : vector<1x32x32xf32> to vector<32x32xf32>
    %cst_192 = arith.constant dense<0.000000e+00> : vector<16x32xf32>
    %366 = tpu.matmul %363, %365, %cst_192 {dimension_numbers = #tpu.dot_dimension_numbers<[1], [0], [0], [1], [0, 0, 1, 1], [], []>} : vector<16x32xf32>, vector<32x32xf32>, vector<16x32xf32> -> vector<16x32xf32>
    %367 = arith.addf %366, %295 : vector<16x32xf32>
    %c2_193 = arith.constant 2 : index
    %c0_194 = arith.constant 0 : index
    %c0_195 = arith.constant 0 : index
    %368 = vector.load %arg16[%c2_193, %c0_194, %c0_195] : memref<4x1x32xf32, #tpu.memory_space<vmem>>, vector<1x1x32xf32>
    %369 = vector.shape_cast %368 : vector<1x1x32xf32> to vector<1x32xf32>
    %c2_196 = arith.constant 2 : index
    %c0_197 = arith.constant 0 : index
    %c0_198 = arith.constant 0 : index
    %370 = vector.load %arg17[%c2_196, %c0_197, %c0_198] : memref<4x1x32xf32, #tpu.memory_space<vmem>>, vector<1x1x32xf32>
    %371 = vector.shape_cast %370 : vector<1x1x32xf32> to vector<1x32xf32>
    %cst_199 = arith.constant dense<0.000000e+00> : vector<16xf32>
    %372 = vector.multi_reduction <add>, %367, %cst_199 [1] : vector<16x32xf32> to vector<16xf32>
    %373 = vector.shape_cast %372 : vector<16xf32> to vector<16x1xf32>
    %cst_200 = arith.constant 3.200000e+01 : f32
    %374 = vector.broadcast %cst_200 : f32 to vector<16x1xf32>
    %375 = arith.divf %373, %374 : vector<16x1xf32>
    %376 = vector.broadcast %375 : vector<16x1xf32> to vector<16x32xf32>
    %377 = arith.subf %367, %376 : vector<16x32xf32>
    %378 = arith.mulf %377, %377 : vector<16x32xf32>
    %cst_201 = arith.constant dense<0.000000e+00> : vector<16xf32>
    %379 = vector.multi_reduction <add>, %378, %cst_201 [1] : vector<16x32xf32> to vector<16xf32>
    %380 = vector.shape_cast %379 : vector<16xf32> to vector<16x1xf32>
    %cst_202 = arith.constant 3.200000e+01 : f32
    %381 = vector.broadcast %cst_202 : f32 to vector<16x1xf32>
    %382 = arith.divf %380, %381 : vector<16x1xf32>
    %cst_203 = arith.constant 9.99999997E-7 : f32
    %383 = vector.broadcast %cst_203 : f32 to vector<16x1xf32>
    %384 = arith.addf %382, %383 : vector<16x1xf32>
    %385 = math.rsqrt %384 : vector<16x1xf32>
    %386 = vector.broadcast %385 : vector<16x1xf32> to vector<16x32xf32>
    %387 = arith.mulf %377, %386 : vector<16x32xf32>
    %388 = vector.broadcast %369 : vector<1x32xf32> to vector<16x32xf32>
    %389 = arith.mulf %387, %388 : vector<16x32xf32>
    %390 = vector.broadcast %371 : vector<1x32xf32> to vector<16x32xf32>
    %391 = arith.addf %389, %390 : vector<16x32xf32>
    %c2_204 = arith.constant 2 : index
    %c0_205 = arith.constant 0 : index
    %c0_206 = arith.constant 0 : index
    %392 = vector.load %arg12[%c2_204, %c0_205, %c0_206] : memref<4x32x64xf32, #tpu.memory_space<vmem>>, vector<1x32x64xf32>
    %393 = vector.shape_cast %392 : vector<1x32x64xf32> to vector<32x64xf32>
    %cst_207 = arith.constant dense<0.000000e+00> : vector<16x64xf32>
    %394 = tpu.matmul %391, %393, %cst_207 {dimension_numbers = #tpu.dot_dimension_numbers<[1], [0], [0], [1], [0, 0, 1, 1], [], []>} : vector<16x32xf32>, vector<32x64xf32>, vector<16x64xf32> -> vector<16x64xf32>
    %c2_208 = arith.constant 2 : index
    %c0_209 = arith.constant 0 : index
    %c0_210 = arith.constant 0 : index
    %395 = vector.load %arg13[%c2_208, %c0_209, %c0_210] : memref<4x1x64xf32, #tpu.memory_space<vmem>>, vector<1x1x64xf32>
    %396 = vector.shape_cast %395 : vector<1x1x64xf32> to vector<1x64xf32>
    %397 = vector.broadcast %396 : vector<1x64xf32> to vector<16x64xf32>
    %398 = arith.addf %394, %397 : vector<16x64xf32>
    %cst_211 = arith.constant 0.000000e+00 : f32
    %399 = vector.broadcast %cst_211 : f32 to vector<16x64xf32>
    %400 = arith.maximumf %398, %399 : vector<16x64xf32>
    %c2_212 = arith.constant 2 : index
    %c0_213 = arith.constant 0 : index
    %c0_214 = arith.constant 0 : index
    %401 = vector.load %arg14[%c2_212, %c0_213, %c0_214] : memref<4x64x32xf32, #tpu.memory_space<vmem>>, vector<1x64x32xf32>
    %402 = vector.shape_cast %401 : vector<1x64x32xf32> to vector<64x32xf32>
    %cst_215 = arith.constant dense<0.000000e+00> : vector<16x32xf32>
    %403 = tpu.matmul %400, %402, %cst_215 {dimension_numbers = #tpu.dot_dimension_numbers<[1], [0], [0], [1], [0, 0, 1, 1], [], []>} : vector<16x64xf32>, vector<64x32xf32>, vector<16x32xf32> -> vector<16x32xf32>
    %c2_216 = arith.constant 2 : index
    %c0_217 = arith.constant 0 : index
    %c0_218 = arith.constant 0 : index
    %404 = vector.load %arg15[%c2_216, %c0_217, %c0_218] : memref<4x1x32xf32, #tpu.memory_space<vmem>>, vector<1x1x32xf32>
    %405 = vector.shape_cast %404 : vector<1x1x32xf32> to vector<1x32xf32>
    %406 = vector.broadcast %405 : vector<1x32xf32> to vector<16x32xf32>
    %407 = arith.addf %403, %406 : vector<16x32xf32>
    %408 = arith.addf %407, %367 : vector<16x32xf32>
    %c3 = arith.constant 3 : index
    %c0_219 = arith.constant 0 : index
    %c0_220 = arith.constant 0 : index
    %409 = vector.load %arg10[%c3, %c0_219, %c0_220] : memref<4x1x32xf32, #tpu.memory_space<vmem>>, vector<1x1x32xf32>
    %410 = vector.shape_cast %409 : vector<1x1x32xf32> to vector<1x32xf32>
    %c3_221 = arith.constant 3 : index
    %c0_222 = arith.constant 0 : index
    %c0_223 = arith.constant 0 : index
    %411 = vector.load %arg11[%c3_221, %c0_222, %c0_223] : memref<4x1x32xf32, #tpu.memory_space<vmem>>, vector<1x1x32xf32>
    %412 = vector.shape_cast %411 : vector<1x1x32xf32> to vector<1x32xf32>
    %cst_224 = arith.constant dense<0.000000e+00> : vector<16xf32>
    %413 = vector.multi_reduction <add>, %408, %cst_224 [1] : vector<16x32xf32> to vector<16xf32>
    %414 = vector.shape_cast %413 : vector<16xf32> to vector<16x1xf32>
    %cst_225 = arith.constant 3.200000e+01 : f32
    %415 = vector.broadcast %cst_225 : f32 to vector<16x1xf32>
    %416 = arith.divf %414, %415 : vector<16x1xf32>
    %417 = vector.broadcast %416 : vector<16x1xf32> to vector<16x32xf32>
    %418 = arith.subf %408, %417 : vector<16x32xf32>
    %419 = arith.mulf %418, %418 : vector<16x32xf32>
    %cst_226 = arith.constant dense<0.000000e+00> : vector<16xf32>
    %420 = vector.multi_reduction <add>, %419, %cst_226 [1] : vector<16x32xf32> to vector<16xf32>
    %421 = vector.shape_cast %420 : vector<16xf32> to vector<16x1xf32>
    %cst_227 = arith.constant 3.200000e+01 : f32
    %422 = vector.broadcast %cst_227 : f32 to vector<16x1xf32>
    %423 = arith.divf %421, %422 : vector<16x1xf32>
    %cst_228 = arith.constant 9.99999997E-7 : f32
    %424 = vector.broadcast %cst_228 : f32 to vector<16x1xf32>
    %425 = arith.addf %423, %424 : vector<16x1xf32>
    %426 = math.rsqrt %425 : vector<16x1xf32>
    %427 = vector.broadcast %426 : vector<16x1xf32> to vector<16x32xf32>
    %428 = arith.mulf %418, %427 : vector<16x32xf32>
    %429 = vector.broadcast %410 : vector<1x32xf32> to vector<16x32xf32>
    %430 = arith.mulf %428, %429 : vector<16x32xf32>
    %431 = vector.broadcast %412 : vector<1x32xf32> to vector<16x32xf32>
    %432 = arith.addf %430, %431 : vector<16x32xf32>
    %c3_229 = arith.constant 3 : index
    %c0_230 = arith.constant 0 : index
    %c0_231 = arith.constant 0 : index
    %433 = vector.load %arg6[%c3_229, %c0_230, %c0_231] : memref<4x32x32xf32, #tpu.memory_space<vmem>>, vector<1x32x32xf32>
    %434 = vector.shape_cast %433 : vector<1x32x32xf32> to vector<32x32xf32>
    %cst_232 = arith.constant dense<0.000000e+00> : vector<16x32xf32>
    %435 = tpu.matmul %432, %434, %cst_232 {dimension_numbers = #tpu.dot_dimension_numbers<[1], [0], [0], [1], [0, 0, 1, 1], [], []>} : vector<16x32xf32>, vector<32x32xf32>, vector<16x32xf32> -> vector<16x32xf32>
    %c3_233 = arith.constant 3 : index
    %c0_234 = arith.constant 0 : index
    %c0_235 = arith.constant 0 : index
    %436 = vector.load %arg7[%c3_233, %c0_234, %c0_235] : memref<4x32x32xf32, #tpu.memory_space<vmem>>, vector<1x32x32xf32>
    %437 = vector.shape_cast %436 : vector<1x32x32xf32> to vector<32x32xf32>
    %cst_236 = arith.constant dense<0.000000e+00> : vector<16x32xf32>
    %438 = tpu.matmul %432, %437, %cst_236 {dimension_numbers = #tpu.dot_dimension_numbers<[1], [0], [0], [1], [0, 0, 1, 1], [], []>} : vector<16x32xf32>, vector<32x32xf32>, vector<16x32xf32> -> vector<16x32xf32>
    %c3_237 = arith.constant 3 : index
    %c0_238 = arith.constant 0 : index
    %c0_239 = arith.constant 0 : index
    %439 = vector.load %arg8[%c3_237, %c0_238, %c0_239] : memref<4x32x32xf32, #tpu.memory_space<vmem>>, vector<1x32x32xf32>
    %440 = vector.shape_cast %439 : vector<1x32x32xf32> to vector<32x32xf32>
    %cst_240 = arith.constant dense<0.000000e+00> : vector<16x32xf32>
    %441 = tpu.matmul %432, %440, %cst_240 {dimension_numbers = #tpu.dot_dimension_numbers<[1], [0], [0], [1], [0, 0, 1, 1], [], []>} : vector<16x32xf32>, vector<32x32xf32>, vector<16x32xf32> -> vector<16x32xf32>
    %442 = vector.shape_cast %435 : vector<16x32xf32> to vector<2x8x32xf32>
    %443 = vector.shape_cast %438 : vector<16x32xf32> to vector<2x8x32xf32>
    %444 = vector.shape_cast %441 : vector<16x32xf32> to vector<2x8x32xf32>
    %445 = vector.extract_strided_slice %442 {offsets = [0, 0, 0], sizes = [2, 8, 16], strides = [1, 1, 1]} : vector<2x8x32xf32> to vector<2x8x16xf32>
    %446 = vector.extract_strided_slice %443 {offsets = [0, 0, 0], sizes = [2, 8, 16], strides = [1, 1, 1]} : vector<2x8x32xf32> to vector<2x8x16xf32>
    %447 = vector.extract_strided_slice %444 {offsets = [0, 0, 0], sizes = [2, 8, 16], strides = [1, 1, 1]} : vector<2x8x32xf32> to vector<2x8x16xf32>
    "tpu.trace_start"() <{level = 10 : i32, message = "bqd,bkd->bqk"}> : () -> ()
    %cst_241 = arith.constant dense<0.000000e+00> : vector<2x8x8xf32>
    %448 = tpu.matmul %445, %446, %cst_241 {dimension_numbers = #tpu.dot_dimension_numbers<[2], [2], [1], [1], [0, 0, 0, 1, 1, 1], [0], [0]>} : vector<2x8x16xf32>, vector<2x8x16xf32>, vector<2x8x8xf32> -> vector<2x8x8xf32>
    "tpu.trace_stop"() : () -> ()
    %cst_242 = arith.constant dense<0xFF800000> : vector<2x8xf32>
    %449 = vector.multi_reduction <maximumf>, %448, %cst_242 [2] : vector<2x8x8xf32> to vector<2x8xf32>
    %450 = vector.shape_cast %449 : vector<2x8xf32> to vector<2x8x1xf32>
    %451 = vector.broadcast %450 : vector<2x8x1xf32> to vector<2x8x8xf32>
    %452 = arith.subf %448, %451 : vector<2x8x8xf32>
    %453 = math.exp %452 : vector<2x8x8xf32>
    %cst_243 = arith.constant dense<0.000000e+00> : vector<2x8xf32>
    %454 = vector.multi_reduction <add>, %453, %cst_243 [2] : vector<2x8x8xf32> to vector<2x8xf32>
    %455 = vector.shape_cast %454 : vector<2x8xf32> to vector<2x8x1xf32>
    %456 = tpu.reciprocal %455 {approx = true} : vector<2x8x1xf32> -> vector<2x8x1xf32>
    %457 = vector.broadcast %456 : vector<2x8x1xf32> to vector<2x8x8xf32>
    %458 = arith.mulf %453, %457 : vector<2x8x8xf32>
    "tpu.trace_start"() <{level = 10 : i32, message = "bqk,bkd->bqd"}> : () -> ()
    %cst_244 = arith.constant dense<0.000000e+00> : vector<2x8x16xf32>
    %459 = tpu.matmul %458, %447, %cst_244 {dimension_numbers = #tpu.dot_dimension_numbers<[2], [1], [1], [2], [0, 0, 0, 1, 1, 2], [0], [0]>} : vector<2x8x8xf32>, vector<2x8x16xf32>, vector<2x8x16xf32> -> vector<2x8x16xf32>
    "tpu.trace_stop"() : () -> ()
    %460 = vector.extract_strided_slice %442 {offsets = [0, 0, 16], sizes = [2, 8, 16], strides = [1, 1, 1]} : vector<2x8x32xf32> to vector<2x8x16xf32>
    %461 = vector.extract_strided_slice %443 {offsets = [0, 0, 16], sizes = [2, 8, 16], strides = [1, 1, 1]} : vector<2x8x32xf32> to vector<2x8x16xf32>
    %462 = vector.extract_strided_slice %444 {offsets = [0, 0, 16], sizes = [2, 8, 16], strides = [1, 1, 1]} : vector<2x8x32xf32> to vector<2x8x16xf32>
    "tpu.trace_start"() <{level = 10 : i32, message = "bqd,bkd->bqk"}> : () -> ()
    %cst_245 = arith.constant dense<0.000000e+00> : vector<2x8x8xf32>
    %463 = tpu.matmul %460, %461, %cst_245 {dimension_numbers = #tpu.dot_dimension_numbers<[2], [2], [1], [1], [0, 0, 0, 1, 1, 1], [0], [0]>} : vector<2x8x16xf32>, vector<2x8x16xf32>, vector<2x8x8xf32> -> vector<2x8x8xf32>
    "tpu.trace_stop"() : () -> ()
    %cst_246 = arith.constant dense<0xFF800000> : vector<2x8xf32>
    %464 = vector.multi_reduction <maximumf>, %463, %cst_246 [2] : vector<2x8x8xf32> to vector<2x8xf32>
    %465 = vector.shape_cast %464 : vector<2x8xf32> to vector<2x8x1xf32>
    %466 = vector.broadcast %465 : vector<2x8x1xf32> to vector<2x8x8xf32>
    %467 = arith.subf %463, %466 : vector<2x8x8xf32>
    %468 = math.exp %467 : vector<2x8x8xf32>
    %cst_247 = arith.constant dense<0.000000e+00> : vector<2x8xf32>
    %469 = vector.multi_reduction <add>, %468, %cst_247 [2] : vector<2x8x8xf32> to vector<2x8xf32>
    %470 = vector.shape_cast %469 : vector<2x8xf32> to vector<2x8x1xf32>
    %471 = tpu.reciprocal %470 {approx = true} : vector<2x8x1xf32> -> vector<2x8x1xf32>
    %472 = vector.broadcast %471 : vector<2x8x1xf32> to vector<2x8x8xf32>
    %473 = arith.mulf %468, %472 : vector<2x8x8xf32>
    "tpu.trace_start"() <{level = 10 : i32, message = "bqk,bkd->bqd"}> : () -> ()
    %cst_248 = arith.constant dense<0.000000e+00> : vector<2x8x16xf32>
    %474 = tpu.matmul %473, %462, %cst_248 {dimension_numbers = #tpu.dot_dimension_numbers<[2], [1], [1], [2], [0, 0, 0, 1, 1, 2], [0], [0]>} : vector<2x8x8xf32>, vector<2x8x16xf32>, vector<2x8x16xf32> -> vector<2x8x16xf32>
    "tpu.trace_stop"() : () -> ()
    %475 = arith.addf %458, %473 : vector<2x8x8xf32>
    %476 = tpu.concatenate %459, %474 in 2 : vector<2x8x16xf32>, vector<2x8x16xf32> -> vector<2x8x32xf32>
    %477 = vector.shape_cast %476 : vector<2x8x32xf32> to vector<16x32xf32>
    %c3_249 = arith.constant 3 : index
    %c0_250 = arith.constant 0 : index
    %c0_251 = arith.constant 0 : index
    %478 = vector.load %arg9[%c3_249, %c0_250, %c0_251] : memref<4x32x32xf32, #tpu.memory_space<vmem>>, vector<1x32x32xf32>
    %479 = vector.shape_cast %478 : vector<1x32x32xf32> to vector<32x32xf32>
    %cst_252 = arith.constant dense<0.000000e+00> : vector<16x32xf32>
    %480 = tpu.matmul %477, %479, %cst_252 {dimension_numbers = #tpu.dot_dimension_numbers<[1], [0], [0], [1], [0, 0, 1, 1], [], []>} : vector<16x32xf32>, vector<32x32xf32>, vector<16x32xf32> -> vector<16x32xf32>
    %481 = arith.addf %480, %408 : vector<16x32xf32>
    %c3_253 = arith.constant 3 : index
    %c0_254 = arith.constant 0 : index
    %c0_255 = arith.constant 0 : index
    %482 = vector.load %arg16[%c3_253, %c0_254, %c0_255] : memref<4x1x32xf32, #tpu.memory_space<vmem>>, vector<1x1x32xf32>
    %483 = vector.shape_cast %482 : vector<1x1x32xf32> to vector<1x32xf32>
    %c3_256 = arith.constant 3 : index
    %c0_257 = arith.constant 0 : index
    %c0_258 = arith.constant 0 : index
    %484 = vector.load %arg17[%c3_256, %c0_257, %c0_258] : memref<4x1x32xf32, #tpu.memory_space<vmem>>, vector<1x1x32xf32>
    %485 = vector.shape_cast %484 : vector<1x1x32xf32> to vector<1x32xf32>
    %cst_259 = arith.constant dense<0.000000e+00> : vector<16xf32>
    %486 = vector.multi_reduction <add>, %481, %cst_259 [1] : vector<16x32xf32> to vector<16xf32>
    %487 = vector.shape_cast %486 : vector<16xf32> to vector<16x1xf32>
    %cst_260 = arith.constant 3.200000e+01 : f32
    %488 = vector.broadcast %cst_260 : f32 to vector<16x1xf32>
    %489 = arith.divf %487, %488 : vector<16x1xf32>
    %490 = vector.broadcast %489 : vector<16x1xf32> to vector<16x32xf32>
    %491 = arith.subf %481, %490 : vector<16x32xf32>
    %492 = arith.mulf %491, %491 : vector<16x32xf32>
    %cst_261 = arith.constant dense<0.000000e+00> : vector<16xf32>
    %493 = vector.multi_reduction <add>, %492, %cst_261 [1] : vector<16x32xf32> to vector<16xf32>
    %494 = vector.shape_cast %493 : vector<16xf32> to vector<16x1xf32>
    %cst_262 = arith.constant 3.200000e+01 : f32
    %495 = vector.broadcast %cst_262 : f32 to vector<16x1xf32>
    %496 = arith.divf %494, %495 : vector<16x1xf32>
    %cst_263 = arith.constant 9.99999997E-7 : f32
    %497 = vector.broadcast %cst_263 : f32 to vector<16x1xf32>
    %498 = arith.addf %496, %497 : vector<16x1xf32>
    %499 = math.rsqrt %498 : vector<16x1xf32>
    %500 = vector.broadcast %499 : vector<16x1xf32> to vector<16x32xf32>
    %501 = arith.mulf %491, %500 : vector<16x32xf32>
    %502 = vector.broadcast %483 : vector<1x32xf32> to vector<16x32xf32>
    %503 = arith.mulf %501, %502 : vector<16x32xf32>
    %504 = vector.broadcast %485 : vector<1x32xf32> to vector<16x32xf32>
    %505 = arith.addf %503, %504 : vector<16x32xf32>
    %c3_264 = arith.constant 3 : index
    %c0_265 = arith.constant 0 : index
    %c0_266 = arith.constant 0 : index
    %506 = vector.load %arg12[%c3_264, %c0_265, %c0_266] : memref<4x32x64xf32, #tpu.memory_space<vmem>>, vector<1x32x64xf32>
    %507 = vector.shape_cast %506 : vector<1x32x64xf32> to vector<32x64xf32>
    %cst_267 = arith.constant dense<0.000000e+00> : vector<16x64xf32>
    %508 = tpu.matmul %505, %507, %cst_267 {dimension_numbers = #tpu.dot_dimension_numbers<[1], [0], [0], [1], [0, 0, 1, 1], [], []>} : vector<16x32xf32>, vector<32x64xf32>, vector<16x64xf32> -> vector<16x64xf32>
    %c3_268 = arith.constant 3 : index
    %c0_269 = arith.constant 0 : index
    %c0_270 = arith.constant 0 : index
    %509 = vector.load %arg13[%c3_268, %c0_269, %c0_270] : memref<4x1x64xf32, #tpu.memory_space<vmem>>, vector<1x1x64xf32>
    %510 = vector.shape_cast %509 : vector<1x1x64xf32> to vector<1x64xf32>
    %511 = vector.broadcast %510 : vector<1x64xf32> to vector<16x64xf32>
    %512 = arith.addf %508, %511 : vector<16x64xf32>
    %cst_271 = arith.constant 0.000000e+00 : f32
    %513 = vector.broadcast %cst_271 : f32 to vector<16x64xf32>
    %514 = arith.maximumf %512, %513 : vector<16x64xf32>
    %c3_272 = arith.constant 3 : index
    %c0_273 = arith.constant 0 : index
    %c0_274 = arith.constant 0 : index
    %515 = vector.load %arg14[%c3_272, %c0_273, %c0_274] : memref<4x64x32xf32, #tpu.memory_space<vmem>>, vector<1x64x32xf32>
    %516 = vector.shape_cast %515 : vector<1x64x32xf32> to vector<64x32xf32>
    %cst_275 = arith.constant dense<0.000000e+00> : vector<16x32xf32>
    %517 = tpu.matmul %514, %516, %cst_275 {dimension_numbers = #tpu.dot_dimension_numbers<[1], [0], [0], [1], [0, 0, 1, 1], [], []>} : vector<16x64xf32>, vector<64x32xf32>, vector<16x32xf32> -> vector<16x32xf32>
    %c3_276 = arith.constant 3 : index
    %c0_277 = arith.constant 0 : index
    %c0_278 = arith.constant 0 : index
    %518 = vector.load %arg15[%c3_276, %c0_277, %c0_278] : memref<4x1x32xf32, #tpu.memory_space<vmem>>, vector<1x1x32xf32>
    %519 = vector.shape_cast %518 : vector<1x1x32xf32> to vector<1x32xf32>
    %520 = vector.broadcast %519 : vector<1x32xf32> to vector<16x32xf32>
    %521 = arith.addf %517, %520 : vector<16x32xf32>
    %522 = arith.addf %521, %481 : vector<16x32xf32>
    %cst_279 = arith.constant 5.000000e-01 : f32
    %523 = vector.broadcast %cst_279 : f32 to vector<2x8x8xf32>
    %524 = arith.mulf %475, %523 : vector<2x8x8xf32>
    %c0_280 = arith.constant 0 : index
    %c0_281 = arith.constant 0 : index
    %525 = vector.load %arg20[%c0_280, %c0_281] : memref<32x4xf32, #tpu.memory_space<vmem>>, vector<32x4xf32>
    %cst_282 = arith.constant dense<0.000000e+00> : vector<16x4xf32>
    %526 = tpu.matmul %522, %525, %cst_282 {dimension_numbers = #tpu.dot_dimension_numbers<[1], [0], [0], [1], [0, 0, 1, 1], [], []>} : vector<16x32xf32>, vector<32x4xf32>, vector<16x4xf32> -> vector<16x4xf32>
    %c0_283 = arith.constant 0 : index
    %c0_284 = arith.constant 0 : index
    %527 = vector.load %arg21[%c0_283, %c0_284] : memref<1x4xf32, #tpu.memory_space<vmem>>, vector<1x4xf32>
    %528 = vector.broadcast %527 : vector<1x4xf32> to vector<16x4xf32>
    %529 = arith.addf %526, %528 : vector<16x4xf32>
    %cst_285 = arith.constant 0.000000e+00 : f32
    %530 = vector.broadcast %cst_285 : f32 to vector<16x4xf32>
    %531 = arith.maximumf %529, %530 : vector<16x4xf32>
    %c0_286 = arith.constant 0 : index
    %c0_287 = arith.constant 0 : index
    %532 = vector.load %arg22[%c0_286, %c0_287] : memref<4x4xf32, #tpu.memory_space<vmem>>, vector<4x4xf32>
    %cst_288 = arith.constant dense<0.000000e+00> : vector<16x4xf32>
    %533 = tpu.matmul %531, %532, %cst_288 {dimension_numbers = #tpu.dot_dimension_numbers<[1], [0], [0], [1], [0, 0, 1, 1], [], []>} : vector<16x4xf32>, vector<4x4xf32>, vector<16x4xf32> -> vector<16x4xf32>
    %c0_289 = arith.constant 0 : index
    %c0_290 = arith.constant 0 : index
    %534 = vector.load %arg23[%c0_289, %c0_290] : memref<1x4xf32, #tpu.memory_space<vmem>>, vector<1x4xf32>
    %535 = vector.broadcast %534 : vector<1x4xf32> to vector<16x4xf32>
    %536 = arith.addf %533, %535 : vector<16x4xf32>
    %537 = vector.shape_cast %524 : vector<2x8x8xf32> to vector<16x8xf32>
    %c0_291 = arith.constant 0 : index
    %c0_292 = arith.constant 0 : index
    %538 = vector.load %arg24[%c0_291, %c0_292] : memref<4x4xf32, #tpu.memory_space<vmem>>, vector<4x4xf32>
    %cst_293 = arith.constant dense<0.000000e+00> : vector<16x4xf32>
    %539 = tpu.matmul %3, %538, %cst_293 {dimension_numbers = #tpu.dot_dimension_numbers<[1], [0], [0], [1], [0, 0, 1, 1], [], []>} : vector<16x4xf32>, vector<4x4xf32>, vector<16x4xf32> -> vector<16x4xf32>
    %c0_294 = arith.constant 0 : index
    %c0_295 = arith.constant 0 : index
    %540 = vector.load %arg25[%c0_294, %c0_295] : memref<8x4xf32, #tpu.memory_space<vmem>>, vector<8x4xf32>
    %cst_296 = arith.constant dense<0.000000e+00> : vector<16x4xf32>
    %541 = tpu.matmul %537, %540, %cst_296 {dimension_numbers = #tpu.dot_dimension_numbers<[1], [0], [0], [1], [0, 0, 1, 1], [], []>} : vector<16x8xf32>, vector<8x4xf32>, vector<16x4xf32> -> vector<16x4xf32>
    %542 = arith.addf %539, %541 : vector<16x4xf32>
    %c0_297 = arith.constant 0 : index
    %c0_298 = arith.constant 0 : index
    %543 = vector.load %arg26[%c0_297, %c0_298] : memref<1x4xf32, #tpu.memory_space<vmem>>, vector<1x4xf32>
    %544 = vector.broadcast %543 : vector<1x4xf32> to vector<16x4xf32>
    %545 = arith.addf %542, %544 : vector<16x4xf32>
    %cst_299 = arith.constant 0.000000e+00 : f32
    %546 = vector.broadcast %cst_299 : f32 to vector<16x4xf32>
    %547 = arith.subf %546, %545 : vector<16x4xf32>
    %548 = math.exp %547 : vector<16x4xf32>
    %cst_300 = arith.constant 1.000000e+00 : f32
    %549 = vector.broadcast %cst_300 : f32 to vector<16x4xf32>
    %550 = arith.addf %549, %548 : vector<16x4xf32>
    %cst_301 = arith.constant 1.000000e+00 : f32
    %551 = vector.broadcast %cst_301 : f32 to vector<16x4xf32>
    %552 = arith.divf %551, %550 : vector<16x4xf32>
    %cst_302 = arith.constant 1.000000e+00 : f32
    %553 = vector.broadcast %cst_302 : f32 to vector<16x4xf32>
    %554 = arith.subf %553, %552 : vector<16x4xf32>
    %555 = arith.mulf %554, %536 : vector<16x4xf32>
    %556 = arith.mulf %552, %276 : vector<16x4xf32>
    %557 = arith.addf %555, %556 : vector<16x4xf32>
    %558 = arith.mulf %3, %1 : vector<16x4xf32>
    %559 = arith.mulf %5, %557 : vector<16x4xf32>
    %560 = arith.addf %558, %559 : vector<16x4xf32>
    %561 = vector.shape_cast %560 : vector<16x4xf32> to vector<2x8x4xf32>
    %c0_303 = arith.constant 0 : index
    %c0_304 = arith.constant 0 : index
    %c0_305 = arith.constant 0 : index
    %562 = vector.load %arg27[%c0_303, %c0_304, %c0_305] : memref<2x8x4xf32, #tpu.memory_space<vmem>>, vector<2x8x4xf32>
    tpu.vector_store %arg27[%c0_303, %c0_304, %c0_305], %561 {strides = array<i32>} : memref<2x8x4xf32, #tpu.memory_space<vmem>>, vector<2x8x4xf32>,
    %563 = vector.shape_cast %276 : vector<16x4xf32> to vector<2x8x4xf32>
    %c0_306 = arith.constant 0 : index
    %c0_307 = arith.constant 0 : index
    %c0_308 = arith.constant 0 : index
    %564 = vector.load %arg28[%c0_306, %c0_307, %c0_308] : memref<2x8x4xf32, #tpu.memory_space<vmem>>, vector<2x8x4xf32>
    tpu.vector_store %arg28[%c0_306, %c0_307, %c0_308], %563 {strides = array<i32>} : memref<2x8x4xf32, #tpu.memory_space<vmem>>, vector<2x8x4xf32>,
    %565 = vector.shape_cast %536 : vector<16x4xf32> to vector<2x8x4xf32>
    %c0_309 = arith.constant 0 : index
    %c0_310 = arith.constant 0 : index
    %c0_311 = arith.constant 0 : index
    %566 = vector.load %arg29[%c0_309, %c0_310, %c0_311] : memref<2x8x4xf32, #tpu.memory_space<vmem>>, vector<2x8x4xf32>
    tpu.vector_store %arg29[%c0_309, %c0_310, %c0_311], %565 {strides = array<i32>} : memref<2x8x4xf32, #tpu.memory_space<vmem>>, vector<2x8x4xf32>,
    %567 = vector.shape_cast %557 : vector<16x4xf32> to vector<2x8x4xf32>
    %c0_312 = arith.constant 0 : index
    %c0_313 = arith.constant 0 : index
    %c0_314 = arith.constant 0 : index
    %568 = vector.load %arg30[%c0_312, %c0_313, %c0_314] : memref<2x8x4xf32, #tpu.memory_space<vmem>>, vector<2x8x4xf32>
    tpu.vector_store %arg30[%c0_312, %c0_313, %c0_314], %567 {strides = array<i32>} : memref<2x8x4xf32, #tpu.memory_space<vmem>>, vector<2x8x4xf32>,
    return
  }
}

</mosaic_0001>

<bundles_post_ra>
// kernel: run.1
= control target key start
LH: loop header
LB: loop body
LE: loop exit
PB: predicated region body
PF: predicated region fallthrough
CT: control target
= control target key end

     0   :  { %s7635_s6 = smov 1   ;;  %s7636_s10 = smov 2   ;;  %s8513_s0 = inlined_call_operand.smem [shape: u32[31], index: -1, kind: input, shape index: {}] }
   0x1   :  { %s7681_s5 = sld [smem:[%s8513_s0]]   ;;  %s7637_s14 = smov 3  }
   0x2   :  { %s7686_s9 = sld [smem:[%s8513_s0 + %s7635_s6]]   ;;  %s7638_s18 = smov 4  }
   0x3   :  { %s7691_s13 = sld [smem:[%s8513_s0 + %s7636_s10]]   ;;  %s7639_s22 = smov 5  }
   0x4   :  { %s7696_s17 = sld [smem:[%s8513_s0 + %s7637_s14]]   ;;  %s7640_s26 = smov 6  }
   0x5   :  { %s7701_s21 = sld [smem:[%s8513_s0 + %s7638_s18]]   ;;  %s7641_s30 = smov 7  }
   0x6   :  { %s7706_s25 = sld [smem:[%s8513_s0 + %s7639_s22]]   ;;  %s7642_s4 = smov 8  }
   0x7   :  { %s7711_s29 = sld [smem:[%s8513_s0 + %s7640_s26]]   ;;  %s7643_s10 = smov 9  }
   0x8   :  { %s7716_s3 = sld [smem:[%s8513_s0 + %s7641_s30]]   ;;  %s7644_s15 = smov 10  }
   0x9   :  { %s7721_s8 = sld [smem:[%s8513_s0 + %s7642_s4]]   ;;  %s7645_s20 = smov 11  }
   0xa   :  { %s7726_s14 = sld [smem:[%s8513_s0 + %s7643_s10]]   ;;  %s7646_s26 = smov 12  }
   0xb   :  { %s7731_s19 = sld [smem:[%s8513_s0 + %s7644_s15]]   ;;  %s7647_s1 = smov 13  }
   0xc   :  { %s7736_s24 = sld [smem:[%s8513_s0 + %s7645_s20]]   ;;  %s7648_s7 = smov 14  }
   0xd   :  { %s7741_s30 = sld [smem:[%s8513_s0 + %s7646_s26]]   ;;  %s7649_s15 = smov 15  }
   0xe   :  { %s7746_s6 = sld [smem:[%s8513_s0 + %s7647_s1]]   ;;  %s7650_s22 = smov 16  }
   0xf   :  { %s7751_s12 = sld [smem:[%s8513_s0 + %s7648_s7]]   ;;  %s7651_s28 = smov 17  }
  0x10   :  { %s7756_s20 = sld [smem:[%s8513_s0 + %s7649_s15]]   ;;  %s7652_s7 = smov 18  }
  0x11   :  { %s7761_s27 = sld [smem:[%s8513_s0 + %s7650_s22]]   ;;  %s7653_s15 = smov 19  }
  0x12   :  { %s7766_s4 = sld [smem:[%s8513_s0 + %s7651_s28]]   ;;  %s7654_s22 = smov 20  }
  0x13   :  { %s7655_s28 = smov 21  }
  0x14   :  { %8520 = sst [smem:[#allocation8_spill]] %s7746_s6 }
  0x15   :  { %s7771_s6 = sld [smem:[%s8513_s0 + %s7652_s7]]   ;;  %s7656_s7 = smov 22  }
  0x16   :  { %8521 = sst [smem:[#allocation9_spill]] %s7756_s20 }
  0x17   :  { %8522 = sst [smem:[#allocation10_spill]] %s7761_s27 }
  0x18   :  { %8523 = sst [smem:[#allocation11_spill]] %s7766_s4 }
  0x19   :  { %s7776_s20 = sld [smem:[%s8513_s0 + %s7653_s15]]   ;;  %s7657_s15 = smov 23  }
  0x1a   :  { %s7781_s27 = sld [smem:[%s8513_s0 + %s7654_s22]]   ;;  %s7658_s22 = smov 24  }
  0x1b   :  { %8524 = sst [smem:[#allocation12_spill]] %s7771_s6 }
  0x1c   :  { %s7786_s4 = sld [smem:[%s8513_s0 + %s7655_s28]]   ;;  %s7659_s28 = smov 25  }
  0x1d   :  { %s7791_s6 = sld [smem:[%s8513_s0 + %s7656_s7]]   ;;  %s7660_s7 = smov 26  }
  0x1f   :  { %8525 = sst [smem:[#allocation13_spill]] %s7776_s20 }
  0x20   :  { %8526 = sst [smem:[#allocation14_spill]] %s7781_s27 }
  0x21   :  { %s7796_s20 = sld [smem:[%s8513_s0 + %s7657_s15]]   ;;  %s7661_s15 = smov 27  }
  0x22   :  { %8527 = sst [smem:[#allocation15_spill]] %s7786_s4 }
  0x23   :  { %8528 = sst [smem:[#allocation16_spill]] %s7791_s6 }
  0x24   :  { %s7801_s27 = sld [smem:[%s8513_s0 + %s7658_s22]]   ;;  %s7662_s22 = smov 28  }
  0x25   :  { %s7806_s4 = sld [smem:[%s8513_s0 + %s7659_s28]]   ;;  %s7663_s28 = smov 29  }
  0x26   :  { %s7811_s6 = sld [smem:[%s8513_s0 + %s7660_s7]]   ;;  %s7664_s7 = smov 30  }
  0x27   :  { %8529 = sst [smem:[#allocation17_spill]] %s7796_s20 }
  0x28   :  { %s7816_s20 = sld [smem:[%s8513_s0 + %s7661_s15]]  }
  0x2a   :  { %8530 = sst [smem:[#allocation18_spill]] %s7801_s27 }
  0x2b   :  { %8531 = sst [smem:[#allocation19_spill]] %s7806_s4 }
  0x2c   :  { %8532 = sst [smem:[#allocation20_spill]] %s7811_s6 }
  0x2d   :  { %s7821_s27 = sld [smem:[%s8513_s0 + %s7662_s22]]  }
  0x2e   :  { %s7826_s4 = sld [smem:[%s8513_s0 + %s7663_s28]]  }
  0x2f   :  { %s7831_s6 = sld [smem:[%s8513_s0 + %s7664_s7]]  }
  0x30   :  { %67 = vsyncpa [#allocation3], 0 }
  0x31   :  { %68 = vsyncpa [#allocation5], 0  ;;  %s7665_s15 = smov [#allocation2]   ;;  %s7587_s18 = scalar_lea.hbm %s7726_s14, 2048 }
  0x32   :  { %s92_s16 = sshll.u32 %s7665_s15, 4  ;;  %p7588_p0 = scmp.ne.s32.totalorder %s7726_s14, %s7587_s18  ;;  %s93_s16 = int_to_ptr.vmem [resolvable:$true] %s92_s16 }
  0x33   :  { %p7591_p1 = scmp.lt.u32.totalorder %s7587_s18, %s7726_s14 }
  0x35   :  { %p7593_p2 = pnand %p7591_p1, %p7588_p0 }
  0x37   :  { %7596 = shalt.err (!%p7593_p2)
}
  0x38   :  { %s7597_s22 = scalar_lea.vmem %s93_s16, 2048  ;;  %p7602_p4 = scmp.lt.s32.totalorder %s93_s16, %s93_s16 }
  0x39   :  { %p7598_p3 = scmp.ne.s32.totalorder %s93_s16, %s7597_s22  ;;  %p7603_p5 = scmp.lt.s32.totalorder %s7597_s22, %s7597_s22 }
  0x3b   :  { %p7604_p6 = por %p7603_p5, %p7602_p4 }
  0x3d   :  { %p7605_p7 = pnand %p7604_p6, %p7598_p3 }
  0x3f   :  { %7608 = shalt.err (!%p7605_p7)
}
  0x40   :  { %s7666_s0 = smov 128   ;;  %s7667_s23 = smov 8  }
  0x41   :  { %98 = dma.hbm_to_vmem [thread:$0]  %s7726_s14, 2048, %s93_s16, [#allocation3], %s7666_s0, %s7666_s0, %s7667_s23  }
  0x42   :  { %s7668_s26 = smov [#allocation4]   ;;  %s7609_s1 = scalar_lea.hbm %s7741_s30, 2048 }
  0x43   :  { %s108_s28 = sshll.u32 %s7668_s26, 4  ;;  %p7610_p8 = scmp.ne.s32.totalorder %s7741_s30, %s7609_s1  ;;  %s109_s28 = int_to_ptr.vmem [resolvable:$true] %s108_s28 }
  0x44   :  { %p7613_p9 = scmp.lt.u32.totalorder %s7609_s1, %s7741_s30 }
  0x46   :  { %p7615_p10 = pnand %p7613_p9, %p7610_p8 }
  0x48   :  { %7618 = shalt.err (!%p7615_p10)
}
  0x49   :  { %s7619_s2 = scalar_lea.vmem %s109_s28, 2048  ;;  %p7624_p12 = scmp.lt.s32.totalorder %s109_s28, %s109_s28 }
  0x4a   :  { %p7620_p11 = scmp.ne.s32.totalorder %s109_s28, %s7619_s2  ;;  %p7625_p13 = scmp.lt.s32.totalorder %s7619_s2, %s7619_s2 }
  0x4c   :  { %p7626_p0 = por %p7625_p13, %p7624_p12 }
  0x4e   :  { %p7627_p1 = pnand %p7626_p0, %p7620_p11 }
  0x50   :  { %7630 = shalt.err (!%p7627_p1)
}
  0x51   :  { %114 = dma.hbm_to_vmem [thread:$0]  %s7741_s30, 2048, %s109_s28, [#allocation5], %s7666_s0, %s7666_s0, %s7667_s23  }
  0x52   :  { %7631 = dma.done.wait [#allocation3], 2048  }
  0x53   :  { %7632 = vsyncadd [#allocation3], 4294965248 }
  0x54   :  { %7633 = dma.done.wait [#allocation5], 2048  }
  0x55   :  { %7634 = vsyncadd [#allocation5], 4294965248  ;;  %vm170_vm0 = vcmask 1043456   ;;  %vm163_vm1 = vcmask 31744   ;;  %v162_v0 = vld [vmem:[%s7701_s21] sm:$0xf] }
  0x56   :  { %v151_v1 = vld [vmem:[%s7686_s9] sm:$0xff]  ;;  %v152_v2 = vld [vmem:[%s7686_s9 + $0x8] sm:$0xff]  ;;  %6679 = vmatprep.subr.msk.mxu0 %vm170_vm0, %v162_v0  ;;  %vm346_vm2 = vcmask 261120   ;;  %v392_v31 = vld [vmem:[%s7711_s29 + $0x10] sm:$0xff]  ;;  %v7669_v60 = vmov 0.0   ;;  %vm7670_vm3 = vmmov 0  }
  0x57   :  { %6681 = vmatprep.mubr.msk.f32.mxu0 %vm163_vm1, %v151_v1  ;;  %v161_v3 = vld [vmem:[%s7696_s17] sm:$0xf]  ;;  %6680 = vmatpush3.msk.msra.mxu0 %vm170_vm0, %v162_v0  ;;  %v150_v5 = vld [vmem:[%s7681_s5 + $0x8] sm:$0xff]  ;;  %v393_v32 = vld [vmem:[%s7711_s29 + $0x18] sm:$0xff]  ;;  %vm633_vm4 = vcmask 130048   ;;  %vm790_vm6 = vcmask 64512  }
  0x58   :  { %v149_v4 = vld [vmem:[%s7681_s5] sm:$0xff]  ;;  %6682 = vmatmul.mubr.msk.f32.vlgmr.msra.gmra.mrb[0].mxu0 %vm163_vm1, %v152_v2  ;;  %6684 = vmatprep.subr.msk.mxu0 %vm170_vm0, %v161_v3  ;;  %v391_v27 = vld [vmem:[%s7711_s29 + $0x8] sm:$0xff]  ;;  %v7196_v34 = vpack.c.bf16 %v393_v32, %v392_v31  ;;  %v477_v35 = vld [vmem:[%s7716_s3 + $0x10] sm:$0xff]  ;;  %s7671_s14 = smov 112   ;;  %s7672_s30 = smov 16   ;;  %vm1541_vm7 = vcmask 523264  }
  0x59   :  { %6685 = vmatpush3.msk.msra.mxu0 %vm170_vm0, %v161_v3  ;;  %6686 = vmatprep.mubr.msk.f32.mxu0 %vm163_vm1, %v149_v4  ;;  %v6197_v6 = vld [vmem:[%s7706_s25] ss:$0 sm:$0xff]  ;;  %v476_v30 = vld [vmem:[%s7716_s3 + $0x8] sm:$0xff]  ;;  %v478_v36 = vld [vmem:[%s7716_s3 + $0x18] sm:$0xff]  ;;  %v156_v3 = vlaneseq  ;;  %s8535_s7 = sld [smem:[#allocation10_spill]]  ;;  %s8536_s10 = sld [smem:[#allocation11_spill]] }
  0x5a   :  { %v155_v8 = vld [vmem:[%s7691_s13] sm:$0xff]  ;;  %v7204_v37 = vpack.c.bf16 %v478_v36, %v477_v35  ;;  %v555_v39 = vld [vmem:[%s7721_s8 + $0x8] sm:$0xff]  ;;  %v556_v55 = vld [vmem:[%s7721_s8 + $0x10] sm:$0xff]  ;;  %s8537_s11 = sld [smem:[#allocation8_spill]]  ;;  %s8538_s15 = sld [smem:[#allocation9_spill]] }
  0x5b   :  { %v390_v26 = vld [vmem:[%s7711_s29] sm:$0xff]  ;;  %v557_v56 = vld [vmem:[%s7721_s8 + $0x18] sm:$0xff]  ;;  %v157_v4 = vshrl.u32 %v156_v3, 7  ;;  %s8539_s16 = sld [smem:[#allocation12_spill]]  ;;  %s8540_s18 = sld [smem:[#allocation13_spill]] }
  0x5c   :  { %v475_v28 = vld [vmem:[%s7716_s3] sm:$0xff]  ;;  %v7192_v29 = vpack.c.bf16 %v391_v27, %v390_v26  ;;  %v7212_v59 = vpack.c.bf16 %v557_v56, %v556_v55 }
  0x5d   :  { %v7200_v33 = vpack.c.bf16 %v476_v30, %v475_v28  ;;  %v554_v38 = vld [vmem:[%s7721_s8] sm:$0xff] }
  0x5e   :  { %7193 = vmatprep.subr.bf16.mxu1 %v7192_v29  ;;  %v7208_v40 = vpack.c.bf16 %v555_v39, %v554_v38  ;;  %v6198_v48 = vld [vmem:[%s7731_s19] ss:$0 sm:$0xff] }
  0x5f   :  { %7195 = vmatpush3.bf16.msra.mxu1 %v7192_v29  ;;  %7201 = vmatprep.subr.bf16.mxu0 %v7200_v33  ;;  %v6199_v50 = vld [vmem:[%s7736_s24] ss:$0 sm:$0xff] }
  0x60   :  { %6687 = vmatmul.mubr.msk.f32.vlgmr.msra.gmra.mrb[0].mxu0 %vm163_vm1, %v150_v5  ;;  %7197 = vmatprep.subr.bf16.mxu1 %v7196_v34  ;;  %v159_v5 = vand.u32 127, %v156_v3 }
  0x61   :  { %7203 = vmatpush3.bf16.msra.mxu0 %v7200_v33 }
  0x62   :  { %7205 = vmatprep.subr.bf16.mxu0 %v7204_v37  ;;  %vm7913_vm5 = vcmp.eq.s32.totalorder %v157_v4, %v159_v5  ;;  %v1303_v5 = vld [vmem:[#allocation2] sm:$0xff] }
  0x63   :  { %7199 = vmatpush3.bf16.msra.mxu1 %v7196_v34 }
  0x64   :  { %7209 = vmatprep.subr.bf16.mxu1 %v7208_v40 }
  0x65   :  { %7207 = vmatpush3.bf16.msra.mxu0 %v7204_v37 }
  0x66   :  { %6722 = vmatprep.subr.mxu0 %v7669_v60 }
 0x133   :  { %v6688_v7 = vpop.f32.mrb[0].mxu0 }
 0x134   :  { %v324_v9 = vpop.f32.mrb[1].mxu0  ;;  %v341_v10 = vadd.f32 %v6688_v7, %v6197_v6 }
 0x135   :  { %v340_v11 = vadd.f32 %v6197_v6, %v324_v9 }
 0x136   :  { %v7859_v13 = vadd.f32 %v341_v10, %v155_v8 }
 0x137   :  { %v7857_v12 = vadd.f32 %v340_v11, %v155_v8 }
 0x138   :  { %v350_v15 = vsel %vm346_vm2, %v7859_v13, 0.0 }
 0x139   :  { %v347_v14 = vsel %vm346_vm2, %v7857_v12, 0.0 }
 0x13a   :  { %348 = vadd.xlane.f32.xlu0 %v347_v14 }
 0x13e   :  { %351 = vadd.xlane.f32.xlu0 %v350_v15 }
 0x1c7   :  { %v349_v16 = vpop.xlane.xlu0 %348 }
 0x1c8   :  { %v354_v17 = vmul.f32 0.03125, %v349_v16 }
 0x1ca   :  { %v356_v18 = vsub.f32 %v7857_v12, %v354_v17 }
 0x1cb   :  { %v352_v19 = vpop.xlane.xlu0 %351 }
 0x1cc   :  { %v355_v20 = vmul.f32 0.03125, %v352_v19  ;;  %v358_v21 = vmul.f32 %v356_v18, %v356_v18 }
 0x1ce   :  { %v357_v22 = vsub.f32 %v7859_v13, %v355_v20  ;;  %v360_v23 = vsel %vm346_vm2, %v358_v21, 0.0 }
 0x1cf   :  { %361 = vadd.xlane.f32.xlu1 %v360_v23 }
 0x1d0   :  { %v359_v24 = vmul.f32 %v357_v22, %v357_v22 }
 0x1d2   :  { %v363_v25 = vsel %vm346_vm2, %v359_v24, 0.0 }
 0x1d3   :  { %364 = vadd.xlane.f32.xlu1 %v363_v25 }
 0x25c   :  { %v362_v41 = vpop.xlane.xlu1 %361 }
 0x25d   :  { %v366_v42 = vmul.f32 0.03125, %v362_v41 }
 0x25f   :  { %v368_v43 = vadd.f32 1e-06, %v366_v42 }
 0x260   :  { %v365_v44 = vpop.xlane.xlu1 %364 }
 0x261   :  { %7476 = vrsqrt.f32 %v368_v43  ;;  %v367_v45 = vmul.f32 0.03125, %v365_v44 }
 0x263   :  { %v369_v46 = vadd.f32 1e-06, %v367_v45 }
 0x265   :  { %7478 = vrsqrt.f32 %v369_v46 }
 0x26b   :  { %v7477_v47 = vpop.eup %7476 }
 0x26c   :  { %v372_v49 = vmul.f32 %v7477_v47, %v356_v18 }
 0x26e   :  { %v380_v51 = vmul.f32 %v6198_v48, %v372_v49 }
 0x26f   :  { %v7479_v52 = vpop.eup %7478 }
 0x270   :  { %v373_v53 = vmul.f32 %v7479_v52, %v357_v22  ;;  %v388_v54 = vadd.f32 %v6199_v50, %v380_v51 }
 0x272   :  { %v381_v57 = vmul.f32 %v6198_v48, %v373_v53  ;;  %6697 = vmatprep.mubr.msk.f32.mxu1 %vm346_vm2, %v388_v54  ;;  %6708 = vmatprep.mubr.msk.f32.mxu0 %vm346_vm2, %v388_v54 }
 0x274   :  { %v389_v58 = vadd.f32 %v6199_v50, %v381_v57 }
 0x276   :  { %6698 = vmatmul.mubr.msk.f32.vlgmr.msra.gmra.mrb[0].mxu1 %vm346_vm2, %v389_v58  ;;  %6709 = vmatmul.mubr.msk.f32.vlgmr.msra.gmra.mrb[2].mxu0 %vm346_vm2, %v389_v58 }
 0x277   :  { %7211 = vmatpush3.bf16.msra.mxu1 %v7208_v40  ;;  %6719 = vmatprep.mubr.msk.f32.mxu1 %vm346_vm2, %v388_v54 }
 0x278   :  { %7213 = vmatprep.subr.bf16.mxu1 %v7212_v59  ;;  %6724 = vmatprep.mubr.msk.f32.mxu0 %vm7670_vm3, %v7669_v60 }
 0x27b   :  { %7215 = vmatpush3.bf16.msra.mxu1 %v7212_v59 }
 0x27c   :  { %6737 = vmatprep.subr.mxu1 %v7669_v60 }
 0x27e   :  { %6720 = vmatmul.mubr.msk.f32.vlgmr.msra.gmra.mrb[2].mxu1 %vm346_vm2, %v389_v58 }
 0x27f   :  { %6739 = vmatprep.mubr.msk.f32.mxu1 %vm7670_vm3, %v7669_v60 }
 0x349   :  { %v6699_v61 = vpop.f32.mrb[0].mxu1  ;;  %v6710_v62 = vpop.f32.mrb[2].mxu0 }
 0x34a   :  { %v466_v63 = vpop.f32.mrb[1].mxu1  ;;  %v545_v0 = vpop.f32.mrb[3].mxu0 }
 0x34b   :  { %6723 = vmatpush3.xpose.msk.msra.mxu0 %vm633_vm4, %v545_v0 }
 0x34c   :  { %6727 = vmatprep.subr.mxu0 %v7669_v60 }
 0x34e   :  { %6725 = vmatmul.mubr.msk.f32.vlgmr.msra.gmra.mrb[4].mxu0 %vm633_vm4, %v466_v63 }
 0x34f   :  { %6728 = vmatpush3.xpose.msk.msra.mxu0 %vm633_vm4, %v6710_v62  ;;  %6729 = vmatprep.mubr.msk.f32.mxu0 %vm7670_vm3, %v7669_v60 }
 0x350   :  { %6732 = vmatprep.subr.mxu0 %v7669_v60 }
 0x351   :  { %v7902_v1 = vpop.f32.mrb[2].mxu1 }
 0x352   :  { %v7904_v2 = vpop.f32.mrb[3].mxu1  ;;  %6738 = vmatpush3.msra.mxu1 %v7902_v1  ;;  %6730 = vmatmul.mubr.msk.f32.vlgmr.msra.gmra.mrb[6].mxu0 %vm633_vm4, %v6699_v61 }
 0x353   :  { %6733 = vmatpush3.msra.mxu0 %v7904_v2  ;;  %6734 = vmatprep.mubr.msk.f32.mxu0 %vm7670_vm3, %v7669_v60 }
 0x354   :  { %6742 = vmatprep.subr.mxu0 %v7669_v60  ;;  %6747 = vmatprep.subr.mxu1 %v7669_v60 }
 0x421   :  { %v706_v7 = vpop.f32.mrb[4].mxu0 }
 0x422   :  { %v788_v8 = vsel %vm7913_vm5, -1e+09, %v706_v7  ;;  %v6726_v9 = vpop.f32.mrb[5].mxu0  ;;  %v1304_v7 = vld [vmem:[#allocation2 + $0x8] sm:$0xff] }
 0x423   :  { %v791_v10 = vsel %vm790_vm6, %v788_v8, -inf  ;;  %v1306_v9 = vld [vmem:[#allocation2 + $0x18] sm:$0xff] }
 0x424   :  { %792 = vmax.xlane.f32.xlu0 %v791_v10 }
 0x425   :  { %v782_v11 = vpop.f32.mrb[6].mxu0 }
 0x426   :  { %v789_v14 = vsel %vm7913_vm5, -1e+09, %v782_v11  ;;  %v6731_v15 = vpop.f32.mrb[7].mxu0 }
 0x427   :  { %v794_v16 = vsel %vm790_vm6, %v789_v14, -inf }
 0x428   :  { %795 = vmax.xlane.f32.xlu1 %v794_v16 }
 0x439   :  { %1039 = vrot.lane.b32.xlu1 %v6710_v62, %s7671_s14 }
 0x43d   :  { %959 = vrot.lane.b32.xlu1 %v466_v63, %s7671_s14 }
 0x4b1   :  { %v793_v17 = vpop.xlane.xlu0 %792 }
 0x4b2   :  { %v797_v18 = vsub.f32 %v788_v8, %v793_v17  ;;  %v7216_v8 = vpack.c.bf16 %v1304_v7, %v1303_v5  ;;  %v1533_v5 = vld [vmem:[%s7751_s12 + $0x38] sm:$0xff] }
 0x4b4   :  { %v799_v19 = vmul.f32 1.442695, %v797_v18 }
 0x4b5   :  { %v796_v20 = vpop.xlane.xlu1 %795 }
 0x4b6   :  { %7480 = vpow2.f32 %v799_v19  ;;  %v798_v21 = vsub.f32 %v789_v14, %v796_v20 }
 0x4b8   :  { %v801_v22 = vmul.f32 1.442695, %v798_v21 }
 0x4b9   :  { %v1040_v27 = vpop.permute.xlu1 %1039 }
 0x4ba   :  { %7482 = vpow2.f32 %v801_v22 }
 0x4bd   :  { %v960_v28 = vpop.permute.xlu1 %959 }
 0x4c0   :  { %v7481_v23 = vpop.eup %7480 }
 0x4c1   :  { %v803_v24 = vsel %vm790_vm6, %v7481_v23, 0.0 }
 0x4c2   :  { %804 = vadd.xlane.f32.xlu0 %v803_v24 }
 0x4c4   :  { %v7483_v25 = vpop.eup %7482 }
 0x4c5   :  { %v806_v26 = vsel %vm790_vm6, %v7483_v25, 0.0 }
 0x4c6   :  { %807 = vadd.xlane.f32.xlu1 %v806_v26 }
 0x4d7   :  { %1037 = vrot.lane.b32.xlu1 %v6699_v61, %s7671_s14 }
 0x4d8   :  { %961 = vrot.lane.b32.xlu0 %v545_v0, %s7671_s14 }
 0x54f   :  { %v805_v29 = vpop.xlane.xlu0 %804 }
 0x550   :  { %7484 = vrcp.f32 %v805_v29 }
 0x553   :  { %v808_v30 = vpop.xlane.xlu1 %807  ;;  %v962_v33 = vpop.permute.xlu0 %961 }
 0x554   :  { %7486 = vrcp.f32 %v808_v30 }
 0x557   :  { %v1038_v36 = vpop.permute.xlu1 %1037 }
 0x55a   :  { %v7485_v31 = vpop.eup %7484 }
 0x55b   :  { %v811_v32 = vmul.f32 %v7485_v31, %v7481_v23 }
 0x55d   :  { %6735 = vmatmul.mubr.msk.f32.vlgmr.msra.gmra.mrb[8].mxu0 %vm790_vm6, %v811_v32 }
 0x55e   :  { %v7487_v34 = vpop.eup %7486  ;;  %6743 = vmatpush3.xpose.msk.msra.mxu0 %vm633_vm4, %v962_v33  ;;  %6744 = vmatprep.mubr.msk.f32.mxu0 %vm7670_vm3, %v7669_v60 }
 0x55f   :  { %v812_v35 = vmul.f32 %v7487_v34, %v7483_v25  ;;  %6752 = vmatprep.subr.mxu0 %v7669_v60 }
 0x561   :  { %6740 = vmatmul.mubr.msk.f32.vlgmr.msra.gmra.mrb[4].mxu1 %vm790_vm6, %v812_v35  ;;  %6745 = vmatmul.mubr.msk.f32.vlgmr.msra.gmra.mrb[10].mxu0 %vm633_vm4, %v960_v28  ;;  %v1432_v35 = vld [vmem:[#allocation4] sm:$0xff] }
 0x562   :  { %6748 = vmatpush3.xpose.msk.msra.mxu1 %vm633_vm4, %v1040_v27  ;;  %6749 = vmatprep.mubr.msk.f32.mxu1 %vm7670_vm3, %v7669_v60 }
 0x563   :  { %6757 = vmatprep.subr.mxu1 %v7669_v60  ;;  %6754 = vmatprep.mubr.msk.f32.mxu0 %vm7670_vm3, %v7669_v60 }
 0x565   :  { %6750 = vmatmul.mubr.msk.f32.vlgmr.msra.gmra.mrb[6].mxu1 %vm633_vm4, %v1038_v36  ;;  %v1433_v36 = vld [vmem:[#allocation4 + $0x8] sm:$0xff] }
 0x566   :  { %6759 = vmatprep.mubr.msk.f32.mxu1 %vm7670_vm3, %v7669_v60 }
 0x630   :  { %v7945_v37 = vpop.f32.mrb[8].mxu0 }
 0x631   :  { %v6736_v38 = vpop.f32.mrb[9].mxu0 }
 0x632   :  { %v1434_v38 = vld [vmem:[#allocation4 + $0x10] sm:$0xff] }
 0x634   :  { %v7947_v39 = vpop.f32.mrb[4].mxu1  ;;  %v1033_v40 = vpop.f32.mrb[10].mxu0 }
 0x635   :  { %v1115_v41 = vsel %vm7913_vm5, -1e+09, %v1033_v40  ;;  %v6741_v42 = vpop.f32.mrb[5].mxu1  ;;  %v6746_v43 = vpop.f32.mrb[11].mxu0 }
 0x636   :  { %v1117_v44 = vsel %vm790_vm6, %v1115_v41, -inf  ;;  %v1527_v42 = vld [vmem:[%s7751_s12 + $0x8] sm:$0xff]  ;;  %v1528_v43 = vld [vmem:[%s7751_s12 + $0x10] sm:$0xff] }
 0x637   :  { %1118 = vmax.xlane.f32.xlu0 %v1117_v44 }
 0x638   :  { %v1111_v45 = vpop.f32.mrb[6].mxu1 }
 0x639   :  { %v1116_v46 = vsel %vm7913_vm5, -1e+09, %v1111_v45  ;;  %v6751_v47 = vpop.f32.mrb[7].mxu1  ;;  %v1529_v45 = vld [vmem:[%s7751_s12 + $0x18] sm:$0xff] }
 0x63a   :  { %v1120_v48 = vsel %vm790_vm6, %v1116_v46, -inf  ;;  %v1530_v47 = vld [vmem:[%s7751_s12 + $0x20] sm:$0xff] }
 0x63b   :  { %1121 = vmax.xlane.f32.xlu1 %v1120_v48  ;;  %v1531_v48 = vld [vmem:[%s7751_s12 + $0x28] sm:$0xff] }
 0x64c   :  { %1217 = vrot.lane.b32.xlu1 %v7902_v1, %s7671_s14 }
 0x6c4   :  { %v1119_v49 = vpop.xlane.xlu0 %1118 }
 0x6c5   :  { %v1123_v50 = vsub.f32 %v1115_v41, %v1119_v49  ;;  %v1526_v41 = vld [vmem:[%s7751_s12] sm:$0xff]  ;;  %v7240_v49 = vpack.c.bf16 %v1531_v48, %v1530_v47 }
 0x6c6   :  { %v7232_v44 = vpack.c.bf16 %v1527_v42, %v1526_v41  ;;  %v6246_v41 = vld [vmem:[%s7721_s8 + $0x30] sm:$0xff] }
 0x6c7   :  { %v1125_v51 = vmul.f32 1.442695, %v1123_v50 }
 0x6c8   :  { %v1122_v52 = vpop.xlane.xlu1 %1121 }
 0x6c9   :  { %7488 = vpow2.f32 %v1125_v51  ;;  %v1124_v53 = vsub.f32 %v1116_v46, %v1122_v52  ;;  %v7236_v46 = vpack.c.bf16 %v1529_v45, %v1528_v43  ;;  %v6247_v43 = vld [vmem:[%s7721_s8 + $0x38] sm:$0xff]  ;;  %v6238_v45 = vld [vmem:[%s7716_s3 + $0x20] sm:$0xff] }
 0x6cb   :  { %v1127_v54 = vmul.f32 1.442695, %v1124_v53 }
 0x6cc   :  { %v1218_v55 = vpop.permute.xlu1 %1217 }
 0x6cd   :  { %7490 = vpow2.f32 %v1127_v54  ;;  %6758 = vmatpush3.msra.mxu1 %v1218_v55 }
 0x6d3   :  { %v7489_v56 = vpop.eup %7488 }
 0x6d4   :  { %v1129_v57 = vsel %vm790_vm6, %v7489_v56, 0.0 }
 0x6d5   :  { %1130 = vadd.xlane.f32.xlu0 %v1129_v57  ;;  %v6220_v57 = vld [vmem:[%s8535_s7] ss:$0 sm:$0xff] }
 0x6d7   :  { %v7491_v58 = vpop.eup %7490 }
 0x6d8   :  { %v1132_v59 = vsel %vm790_vm6, %v7491_v58, 0.0 }
 0x6d9   :  { %1133 = vadd.xlane.f32.xlu0 %v1132_v59  ;;  %v6221_v59 = vld [vmem:[%s8536_s10] ss:$0 sm:$0xff] }
 0x6ef   :  { %1140 = vrot.lane.b32.xlu0 %v7904_v2, %s7671_s14  ;;  %v1305_v2 = vld [vmem:[#allocation2 + $0x10] sm:$0xff] }
 0x6f0   :  { %v7220_v10 = vpack.c.bf16 %v1306_v9, %v1305_v2 }
 0x762   :  { %v1131_v61 = vpop.xlane.xlu0 %1130 }
 0x763   :  { %7492 = vrcp.f32 %v1131_v61 }
 0x766   :  { %v1134_v62 = vpop.xlane.xlu0 %1133 }
 0x767   :  { %7494 = vrcp.f32 %v1134_v62 }
 0x76a   :  { %v1141_v63 = vpop.permute.xlu0 %1140 }
 0x76b   :  { %6753 = vmatpush3.msra.mxu0 %v1141_v63 }
 0x76c   :  { %7217 = vmatprep.subr.bf16.mxu0 %v7216_v8 }
 0x76d   :  { %v7493_v0 = vpop.eup %7492 }
 0x76e   :  { %v1137_v1 = vmul.f32 %v7493_v0, %v7489_v56 }
 0x770   :  { %6755 = vmatmul.mubr.msk.f32.vlgmr.msra.gmra.mrb[12].mxu0 %vm790_vm6, %v1137_v1 }
 0x771   :  { %v7495_v3 = vpop.eup %7494  ;;  %7219 = vmatpush3.bf16.msra.mxu0 %v7216_v8  ;;  %v6222_v8 = vld [vmem:[%s8537_s11] ss:$0 sm:$0xff] }
 0x772   :  { %v1138_v4 = vmul.f32 %v7495_v3, %v7491_v58  ;;  %7221 = vmatprep.subr.bf16.mxu0 %v7220_v10 }
 0x774   :  { %6760 = vmatmul.mubr.msk.f32.vlgmr.msra.gmra.mrb[8].mxu1 %vm790_vm6, %v1138_v4  ;;  %v1532_v4 = vld [vmem:[%s7751_s12 + $0x30] sm:$0xff] }
 0x775   :  { %7223 = vmatpush3.bf16.msra.mxu0 %v7220_v10  ;;  %v7244_v7 = vpack.c.bf16 %v1533_v5, %v1532_v4 }
 0x776   :  { %7233 = vmatprep.subr.bf16.mxu0 %v7232_v44 }
 0x843   :  { %v1212_v11 = vpop.f32.mrb[12].mxu0 }
 0x844   :  { %1295 = vrot.lane.b32.xlu1 %v1212_v11, %s7672_s30  ;;  %v6756_v14 = vpop.f32.mrb[13].mxu0 }
 0x847   :  { %v1289_v15 = vpop.f32.mrb[8].mxu1 }
 0x848   :  { %v6761_v16 = vpop.f32.mrb[9].mxu1  ;;  %1297 = vrot.lane.b32.xlu1 %v1289_v15, %s7672_s30 }
 0x849   :  { %v6225_v16 = vld [vmem:[%s8538_s15] ss:$0 sm:$0xff] }
 0x8b6   :  { %v1296_v17 = vpop.permute.xlu1 %1295 }
 0x8b7   :  { %v1301_v18 = vsel %vm633_vm4, %v7945_v37, %v1296_v17  ;;  %v7224_v37 = vpack.c.bf16 %v1433_v36, %v1432_v35  ;;  %v6244_v36 = vld [vmem:[%s7721_s8 + $0x20] sm:$0xff] }
 0x8b8   :  { %6770 = vmatprep.mubr.msk.f32.mxu0 %vm346_vm2, %v1301_v18 }
 0x8b9   :  { %7225 = vmatprep.subr.bf16.mxu1 %v7224_v37 }
 0x8ba   :  { %v1298_v19 = vpop.permute.xlu1 %1297  ;;  %7227 = vmatpush3.bf16.msra.mxu1 %v7224_v37  ;;  %v6245_v37 = vld [vmem:[%s7721_s8 + $0x28] sm:$0xff] }
 0x8bb   :  { %v1302_v20 = vsel %vm633_vm4, %v7947_v39, %v1298_v19  ;;  %v1435_v39 = vld [vmem:[#allocation4 + $0x18] sm:$0xff] }
 0x8bc   :  { %6771 = vmatmul.mubr.msk.f32.vlgmr.msra.gmra.mrb[14].mxu0 %vm346_vm2, %v1302_v20  ;;  %v7228_v40 = vpack.c.bf16 %v1435_v39, %v1434_v38  ;;  %v7264_v38 = vpack.c.bf16 %v6245_v37, %v6244_v36  ;;  %v6234_v39 = vld [vmem:[%s7711_s29 + $0x30] sm:$0xff] }
 0x8bd   :  { %7235 = vmatpush3.bf16.msra.mxu0 %v7232_v44  ;;  %v7268_v44 = vpack.c.bf16 %v6247_v43, %v6246_v41 }
 0x8be   :  { %7229 = vmatprep.subr.bf16.mxu1 %v7228_v40  ;;  %7237 = vmatprep.subr.bf16.mxu0 %v7236_v46 }
 0x8bf   :  { %7231 = vmatpush3.bf16.msra.mxu1 %v7228_v40  ;;  %v6235_v40 = vld [vmem:[%s7711_s29 + $0x38] sm:$0xff] }
 0x8c0   :  { %v7252_v42 = vpack.c.bf16 %v6235_v40, %v6234_v39 }
 0x8c1   :  { %7239 = vmatpush3.bf16.msra.mxu0 %v7236_v46  ;;  %v6239_v46 = vld [vmem:[%s7716_s3 + $0x28] sm:$0xff] }
 0x8c2   :  { %7241 = vmatprep.subr.bf16.mxu0 %v7240_v49  ;;  %v7256_v47 = vpack.c.bf16 %v6239_v46, %v6238_v45 }
 0x8c5   :  { %7243 = vmatpush3.bf16.msra.mxu0 %v7240_v49 }
 0x8c6   :  { %7245 = vmatprep.subr.bf16.mxu0 %v7244_v7 }
 0x8c9   :  { %7247 = vmatpush3.bf16.msra.mxu0 %v7244_v7 }
 0x8ca   :  { %7265 = vmatprep.subr.bf16.mxu0 %v7264_v38 }
 0x98f   :  { %v6772_v21 = vpop.f32.mrb[14].mxu0 }
 0x990   :  { %v7972_v22 = vadd.f32 %v6772_v21, %v7859_v13  ;;  %v1379_v23 = vpop.f32.mrb[15].mxu0 }
 0x991   :  { %v7975_v24 = vadd.f32 %v1379_v23, %v7857_v12 }
 0x992   :  { %v1393_v25 = vsel %vm346_vm2, %v7972_v22, 0.0 }
 0x993   :  { %1394 = vadd.xlane.f32.xlu1 %v1393_v25  ;;  %v1390_v26 = vsel %vm346_vm2, %v7975_v24, 0.0 }
 0x994   :  { %1391 = vadd.xlane.f32.xlu0 %v1390_v26 }
 0xa20   :  { %v1395_v27 = vpop.xlane.xlu1 %1394 }
 0xa21   :  { %v1397_v28 = vmul.f32 0.03125, %v1395_v27  ;;  %v1392_v29 = vpop.xlane.xlu0 %1391 }
 0xa22   :  { %v1396_v30 = vmul.f32 0.03125, %v1392_v29 }
 0xa23   :  { %v1399_v31 = vsub.f32 %v7972_v22, %v1397_v28 }
 0xa24   :  { %v1398_v13 = vsub.f32 %v7975_v24, %v1396_v30 }
 0xa25   :  { %v1401_v33 = vmul.f32 %v1399_v31, %v1399_v31 }
 0xa26   :  { %v1400_v32 = vmul.f32 %v1398_v13, %v1398_v13 }
 0xa27   :  { %v1405_v34 = vsel %vm346_vm2, %v1401_v33, 0.0  ;;  %v6232_v33 = vld [vmem:[%s7711_s29 + $0x20] sm:$0xff] }
 0xa28   :  { %v1402_v12 = vsel %vm346_vm2, %v1400_v32, 0.0 }
 0xa29   :  { %1403 = vadd.xlane.f32.xlu0 %v1402_v12 }
 0xa2d   :  { %1406 = vadd.xlane.f32.xlu0 %v1405_v34  ;;  %v6233_v34 = vld [vmem:[%s7711_s29 + $0x28] sm:$0xff] }
 0xa2e   :  { %v7248_v35 = vpack.c.bf16 %v6233_v34, %v6232_v33 }
 0xa30   :  { %7249 = vmatprep.subr.bf16.mxu1 %v7248_v35 }
 0xab6   :  { %v1404_v50 = vpop.xlane.xlu0 %1403 }
 0xab7   :  { %v1408_v51 = vmul.f32 0.03125, %v1404_v50 }
 0xab9   :  { %v1410_v52 = vadd.f32 1e-06, %v1408_v51 }
 0xaba   :  { %v1407_v53 = vpop.xlane.xlu0 %1406 }
 0xabb   :  { %7496 = vrsqrt.f32 %v1410_v52  ;;  %v1409_v54 = vmul.f32 0.03125, %v1407_v53 }
 0xabd   :  { %v1411_v55 = vadd.f32 1e-06, %v1409_v54 }
 0xabf   :  { %7498 = vrsqrt.f32 %v1411_v55  ;;  %v6230_v55 = vld [vmem:[%s7731_s19 + $0x1] ss:$0 sm:$0xff] }
 0xac5   :  { %v7497_v56 = vpop.eup %7496 }
 0xac6   :  { %v1414_v58 = vmul.f32 %v7497_v56, %v1398_v13 }
 0xac8   :  { %v1422_v61 = vmul.f32 %v6220_v57, %v1414_v58 }
 0xac9   :  { %v7499_v62 = vpop.eup %7498 }
 0xaca   :  { %v1415_v63 = vmul.f32 %v7499_v62, %v1399_v31  ;;  %v1430_v0 = vadd.f32 %v6221_v59, %v1422_v61 }
 0xacc   :  { %v1423_v1 = vmul.f32 %v6220_v57, %v1415_v63  ;;  %6781 = vmatprep.mubr.msk.f32.mxu1 %vm346_vm2, %v1430_v0  ;;  %v6240_v63 = vld [vmem:[%s7716_s3 + $0x30] sm:$0xff]  ;;  %v6241_v0 = vld [vmem:[%s7716_s3 + $0x38] sm:$0xff] }
 0xacd   :  { %v7260_v4 = vpack.c.bf16 %v6241_v0, %v6240_v63 }
 0xace   :  { %v1431_v3 = vadd.f32 %v6221_v59, %v1423_v1  ;;  %v6231_v59 = vld [vmem:[%s7736_s24 + $0x1] ss:$0 sm:$0xff] }
 0xad0   :  { %6782 = vmatmul.mubr.msk.f32.vlgmr.msra.gmra.mrb[10].mxu1 %vm346_vm2, %v1431_v3 }
 0xad1   :  { %7251 = vmatpush3.bf16.msra.mxu1 %v7248_v35 }
 0xad2   :  { %7253 = vmatprep.subr.bf16.mxu1 %v7252_v42 }
 0xad5   :  { %7255 = vmatpush3.bf16.msra.mxu1 %v7252_v42 }
 0xad6   :  { %7257 = vmatprep.subr.bf16.mxu1 %v7256_v47 }
 0xba3   :  { %v6783_v2 = vpop.f32.mrb[10].mxu1 }
 0xba4   :  { %v1521_v9 = vadd.f32 %v6783_v2, %v6222_v8  ;;  %v1515_v10 = vpop.f32.mrb[11].mxu1 }
 0xba5   :  { %v1516_v11 = vadd.f32 %v6222_v8, %v1515_v10 }
 0xba6   :  { %v1525_v15 = vmax.f32 %v1521_v9, 0.0 }
 0xba7   :  { %v1524_v14 = vmax.f32 %v1516_v11, 0.0 }
 0xba9   :  { %6800 = vmatprep.mubr.msk.f32.mxu0 %vm1541_vm7, %v1524_v14 }
 0xbaa   :  { %6801 = vmatmul.mubr.msk.f32.vlgmr.msra.gmra.mrb[16].mxu0 %vm1541_vm7, %v1525_v15 }
 0xbab   :  { %7267 = vmatpush3.bf16.msra.mxu0 %v7264_v38 }
 0xbac   :  { %7269 = vmatprep.subr.bf16.mxu0 %v7268_v44 }
 0xbaf   :  { %7271 = vmatpush3.bf16.msra.mxu0 %v7268_v44 }
 0xbb0   :  { %6846 = vmatprep.subr.mxu0 %v7669_v60 }
 0xc7d   :  { %v6802_v17 = vpop.f32.mrb[16].mxu0 }
 0xc7e   :  { %v1620_v18 = vadd.f32 %v6802_v17, %v6225_v16  ;;  %v1614_v19 = vpop.f32.mrb[17].mxu0 }
 0xc7f   :  { %v1615_v20 = vadd.f32 %v6225_v16, %v1614_v19 }
 0xc80   :  { %v8002_v21 = vadd.f32 %v1620_v18, %v7972_v22 }
 0xc81   :  { %v8005_v23 = vadd.f32 %v1615_v20, %v7975_v24 }
 0xc82   :  { %v1632_v25 = vsel %vm346_vm2, %v8002_v21, 0.0 }
 0xc83   :  { %1633 = vadd.xlane.f32.xlu1 %v1632_v25  ;;  %v1629_v26 = vsel %vm346_vm2, %v8005_v23, 0.0 }
 0xc84   :  { %1630 = vadd.xlane.f32.xlu0 %v1629_v26 }
 0xd10   :  { %v1634_v27 = vpop.xlane.xlu1 %1633 }
 0xd11   :  { %v1636_v28 = vmul.f32 0.03125, %v1634_v27  ;;  %v1631_v29 = vpop.xlane.xlu0 %1630 }
 0xd12   :  { %v1635_v22 = vmul.f32 0.03125, %v1631_v29 }
 0xd13   :  { %v1638_v24 = vsub.f32 %v8002_v21, %v1636_v28 }
 0xd14   :  { %v1637_v30 = vsub.f32 %v8005_v23, %v1635_v22 }
 0xd15   :  { %v1640_v31 = vmul.f32 %v1638_v24, %v1638_v24 }
 0xd16   :  { %v1639_v13 = vmul.f32 %v1637_v30, %v1637_v30 }
 0xd17   :  { %v1644_v32 = vsel %vm346_vm2, %v1640_v31, 0.0 }
 0xd18   :  { %1645 = vadd.xlane.f32.xlu1 %v1644_v32  ;;  %v1641_v12 = vsel %vm346_vm2, %v1639_v13, 0.0 }
 0xd19   :  { %1642 = vadd.xlane.f32.xlu0 %v1641_v12 }
 0xda5   :  { %v1646_v48 = vpop.xlane.xlu1 %1645 }
 0xda6   :  { %v1648_v49 = vmul.f32 0.03125, %v1646_v48  ;;  %v1643_v50 = vpop.xlane.xlu0 %1642 }
 0xda7   :  { %v1647_v51 = vmul.f32 0.03125, %v1643_v50 }
 0xda8   :  { %v1650_v52 = vadd.f32 1e-06, %v1648_v49 }
 0xda9   :  { %v1649_v53 = vadd.f32 1e-06, %v1647_v51 }
 0xdaa   :  { %7500 = vrsqrt.f32 %v1650_v52 }
 0xdab   :  { %7502 = vrsqrt.f32 %v1649_v53 }
 0xdb4   :  { %v7501_v54 = vpop.eup %7500 }
 0xdb5   :  { %v7503_v56 = vpop.eup %7502  ;;  %v1654_v57 = vmul.f32 %v7501_v54, %v1638_v24 }
 0xdb6   :  { %v1653_v58 = vmul.f32 %v7503_v56, %v1637_v30 }
 0xdb7   :  { %v1662_v61 = vmul.f32 %v6230_v55, %v1654_v57 }
 0xdb8   :  { %v1661_v62 = vmul.f32 %v6230_v55, %v1653_v58 }
 0xdb9   :  { %v1670_v3 = vadd.f32 %v6231_v59, %v1662_v61 }
 0xdba   :  { %v1669_v1 = vadd.f32 %v6231_v59, %v1661_v62 }
 0xdbc   :  { %6811 = vmatprep.mubr.msk.f32.mxu1 %vm346_vm2, %v1669_v1  ;;  %6833 = vmatprep.mubr.msk.f32.mxu0 %vm346_vm2, %v1669_v1 }
 0xdbd   :  { %6812 = vmatmul.mubr.msk.f32.vlgmr.msra.gmra.mrb[12].mxu1 %vm346_vm2, %v1670_v3  ;;  %6834 = vmatmul.mubr.msk.f32.vlgmr.msra.gmra.mrb[18].mxu0 %vm346_vm2, %v1670_v3 }
 0xdbe   :  { %7259 = vmatpush3.bf16.msra.mxu1 %v7256_v47  ;;  %6822 = vmatprep.mubr.msk.f32.mxu1 %vm346_vm2, %v1669_v1 }
 0xdbf   :  { %7261 = vmatprep.subr.bf16.mxu1 %v7260_v4  ;;  %6848 = vmatprep.mubr.msk.f32.mxu0 %vm7670_vm3, %v7669_v60 }
 0xdc2   :  { %7263 = vmatpush3.bf16.msra.mxu1 %v7260_v4 }
 0xdc3   :  { %6836 = vmatprep.subr.mxu1 %v7669_v60 }
 0xdc5   :  { %6823 = vmatmul.mubr.msk.f32.vlgmr.msra.gmra.mrb[14].mxu1 %vm346_vm2, %v1670_v3 }
 0xdc6   :  { %6838 = vmatprep.mubr.msk.f32.mxu1 %vm7670_vm3, %v7669_v60 }
 0xe90   :  { %v6813_v5 = vpop.f32.mrb[12].mxu1  ;;  %v8041_v7 = vpop.f32.mrb[18].mxu0 }
 0xe91   :  { %v1748_v8 = vpop.f32.mrb[13].mxu1  ;;  %v8043_v2 = vpop.f32.mrb[19].mxu0 }
 0xe92   :  { %6847 = vmatpush3.msra.mxu0 %v8043_v2 }
 0xe93   :  { %6856 = vmatprep.subr.mxu0 %v7669_v60 }
 0xe98   :  { %v6824_v9 = vpop.f32.mrb[14].mxu1 }
 0xe99   :  { %v1828_v10 = vpop.f32.mrb[15].mxu1 }
 0xe9a   :  { %6837 = vmatpush3.xpose.msk.msra.mxu1 %vm633_vm4, %v1828_v10 }
 0xe9b   :  { %6841 = vmatprep.subr.mxu1 %v7669_v60 }
 0xe9d   :  { %6839 = vmatmul.mubr.msk.f32.vlgmr.msra.gmra.mrb[16].mxu1 %vm633_vm4, %v1748_v8 }
 0xe9e   :  { %6842 = vmatpush3.xpose.msk.msra.mxu1 %vm633_vm4, %v6824_v9  ;;  %6843 = vmatprep.mubr.msk.f32.mxu1 %vm7670_vm3, %v7669_v60 }
 0xe9f   :  { %6851 = vmatprep.subr.mxu1 %v7669_v60 }
 0xea1   :  { %6844 = vmatmul.mubr.msk.f32.vlgmr.msra.gmra.mrb[18].mxu1 %vm633_vm4, %v6813_v5 }
 0xea2   :  { %6852 = vmatpush3.msra.mxu1 %v8041_v7  ;;  %6853 = vmatprep.mubr.msk.f32.mxu1 %vm7670_vm3, %v7669_v60 }
 0xea3   :  { %6861 = vmatprep.subr.mxu1 %v7669_v60 }
 0xf70   :  { %v1989_v11 = vpop.f32.mrb[16].mxu1 }
 0xf71   :  { %v2069_v14 = vsel %vm7913_vm5, -1e+09, %v1989_v11  ;;  %v6840_v15 = vpop.f32.mrb[17].mxu1 }
 0xf72   :  { %v2071_v16 = vsel %vm790_vm6, %v2069_v14, -inf }
 0xf73   :  { %2072 = vmax.xlane.f32.xlu0 %v2071_v16 }
 0xf74   :  { %v2065_v17 = vpop.f32.mrb[18].mxu1 }
 0xf75   :  { %v2070_v18 = vsel %vm7913_vm5, -1e+09, %v2065_v17  ;;  %v6845_v19 = vpop.f32.mrb[19].mxu1 }
 0xf76   :  { %v2074_v20 = vsel %vm790_vm6, %v2070_v18, -inf }
 0xf77   :  { %2075 = vmax.xlane.f32.xlu1 %v2074_v20 }
 0xf88   :  { %2319 = vrot.lane.b32.xlu1 %v6824_v9, %s7671_s14  ;;  %v2584_v9 = vld [vmem:[#allocation2 + $0x20] sm:$0xff] }
 0xf8c   :  { %2239 = vrot.lane.b32.xlu1 %v1748_v8, %s7671_s14 }
0x1000   :  { %v2073_v25 = vpop.xlane.xlu0 %2072 }
0x1001   :  { %v2077_v26 = vsub.f32 %v2069_v14, %v2073_v25  ;;  %v2587_v14 = vld [vmem:[#allocation2 + $0x38] sm:$0xff] }
0x1003   :  { %v2079_v27 = vmul.f32 1.442695, %v2077_v26 }
0x1004   :  { %v2076_v28 = vpop.xlane.xlu1 %2075 }
0x1005   :  { %7504 = vpow2.f32 %v2079_v27  ;;  %v2078_v29 = vsub.f32 %v2070_v18, %v2076_v28 }
0x1007   :  { %v2081_v22 = vmul.f32 1.442695, %v2078_v29 }
0x1008   :  { %v2320_v32 = vpop.permute.xlu1 %2319 }
0x1009   :  { %7506 = vpow2.f32 %v2081_v22 }
0x100c   :  { %v2240_v12 = vpop.permute.xlu1 %2239 }
0x100f   :  { %v7505_v24 = vpop.eup %7504 }
0x1010   :  { %v2083_v30 = vsel %vm790_vm6, %v7505_v24, 0.0 }
0x1011   :  { %2084 = vadd.xlane.f32.xlu0 %v2083_v30 }
0x1013   :  { %v7507_v31 = vpop.eup %7506 }
0x1014   :  { %v2086_v13 = vsel %vm790_vm6, %v7507_v31, 0.0 }
0x1015   :  { %2087 = vadd.xlane.f32.xlu1 %v2086_v13 }
0x1026   :  { %2317 = vrot.lane.b32.xlu1 %v6813_v5, %s7671_s14 }
0x1027   :  { %2241 = vrot.lane.b32.xlu0 %v1828_v10, %s7671_s14  ;;  %v2585_v10 = vld [vmem:[#allocation2 + $0x28] sm:$0xff] }
0x1028   :  { %v7272_v11 = vpack.c.bf16 %v2585_v10, %v2584_v9  ;;  %v2911_v10 = vld [vmem:[%s8539_s16] sm:$0xff] }
0x109e   :  { %v2085_v33 = vpop.xlane.xlu0 %2084 }
0x109f   :  { %7508 = vrcp.f32 %v2085_v33 }
0x10a2   :  { %v2088_v34 = vpop.xlane.xlu1 %2087  ;;  %v2242_v37 = vpop.permute.xlu0 %2241 }
0x10a3   :  { %7510 = vrcp.f32 %v2088_v34 }
0x10a6   :  { %v2318_v40 = vpop.permute.xlu1 %2317 }
0x10a9   :  { %v7509_v35 = vpop.eup %7508 }
0x10aa   :  { %v2091_v36 = vmul.f32 %v7509_v35, %v7505_v24 }
0x10ac   :  { %6849 = vmatmul.mubr.msk.f32.vlgmr.msra.gmra.mrb[20].mxu0 %vm790_vm6, %v2091_v36 }
0x10ad   :  { %v7511_v38 = vpop.eup %7510  ;;  %6857 = vmatpush3.xpose.msk.msra.mxu0 %vm633_vm4, %v2242_v37  ;;  %6858 = vmatprep.mubr.msk.f32.mxu0 %vm7670_vm3, %v7669_v60 }
0x10ae   :  { %v2092_v39 = vmul.f32 %v7511_v38, %v7507_v31  ;;  %6866 = vmatprep.subr.mxu0 %v7669_v60  ;;  %v2716_v38 = vld [vmem:[#allocation4 + $0x20] sm:$0xff] }
0x10b0   :  { %6854 = vmatmul.mubr.msk.f32.vlgmr.msra.gmra.mrb[20].mxu1 %vm790_vm6, %v2092_v39  ;;  %6859 = vmatmul.mubr.msk.f32.vlgmr.msra.gmra.mrb[22].mxu0 %vm633_vm4, %v2240_v12  ;;  %v2717_v39 = vld [vmem:[#allocation4 + $0x28] sm:$0xff] }
0x10b1   :  { %6862 = vmatpush3.xpose.msk.msra.mxu1 %vm633_vm4, %v2320_v32  ;;  %6863 = vmatprep.mubr.msk.f32.mxu1 %vm7670_vm3, %v7669_v60 }
0x10b2   :  { %6871 = vmatprep.subr.mxu1 %v7669_v60  ;;  %6868 = vmatprep.mubr.msk.f32.mxu0 %vm7670_vm3, %v7669_v60 }
0x10b4   :  { %6864 = vmatmul.mubr.msk.f32.vlgmr.msra.gmra.mrb[22].mxu1 %vm633_vm4, %v2318_v40  ;;  %v7280_v40 = vpack.c.bf16 %v2717_v39, %v2716_v38  ;;  %v7582_v39 = vld [vmem:[%s7681_s5] sm:$0xff] }
0x10b5   :  { %6873 = vmatprep.mubr.msk.f32.mxu1 %vm7670_vm3, %v7669_v60 }
0x117f   :  { %v2162_v41 = vpop.f32.mrb[20].mxu0 }
0x1180   :  { %v6850_v42 = vpop.f32.mrb[21].mxu0 }
0x1181   :  { %v2719_v42 = vld [vmem:[#allocation4 + $0x38] sm:$0xff] }
0x1183   :  { %v8087_v43 = vpop.f32.mrb[20].mxu1  ;;  %v2313_v44 = vpop.f32.mrb[22].mxu0 }
0x1184   :  { %v2395_v45 = vsel %vm7913_vm5, -1e+09, %v2313_v44  ;;  %v6855_v46 = vpop.f32.mrb[21].mxu1  ;;  %v6860_v47 = vpop.f32.mrb[23].mxu0  ;;  %v6272_v44 = vld [vmem:[%s7751_s12 + $0x40] sm:$0xff] }
0x1185   :  { %v2397_v48 = vsel %vm790_vm6, %v2395_v45, -inf  ;;  %v6274_v46 = vld [vmem:[%s7751_s12 + $0x50] sm:$0xff] }
0x1186   :  { %2398 = vmax.xlane.f32.xlu0 %v2397_v48  ;;  %v6275_v48 = vld [vmem:[%s7751_s12 + $0x58] sm:$0xff] }
0x1187   :  { %v2391_v49 = vpop.f32.mrb[22].mxu1 }
0x1188   :  { %v2396_v50 = vsel %vm7913_vm5, -1e+09, %v2391_v49  ;;  %v6865_v51 = vpop.f32.mrb[23].mxu1  ;;  %v7292_v49 = vpack.c.bf16 %v6275_v48, %v6274_v46  ;;  %v6296_v48 = vld [vmem:[%s7706_s25 + $0x1] ss:$0 sm:$0xff]  ;;  %s8545_s25 = sld [smem:[#allocation18_spill]] }
0x1189   :  { %v2400_v52 = vsel %vm790_vm6, %v2396_v50, -inf  ;;  %v6277_v51 = vld [vmem:[%s7751_s12 + $0x68] sm:$0xff] }
0x118a   :  { %2401 = vmax.xlane.f32.xlu1 %v2400_v52 }
0x119b   :  { %2497 = vrot.lane.b32.xlu1 %v8041_v7, %s7671_s14 }
0x1213   :  { %v2399_v53 = vpop.xlane.xlu0 %2398 }
0x1214   :  { %v2403_v54 = vsub.f32 %v2395_v45, %v2399_v53  ;;  %v6273_v45 = vld [vmem:[%s7751_s12 + $0x48] sm:$0xff] }
0x1215   :  { %v7288_v47 = vpack.c.bf16 %v6273_v45, %v6272_v44 }
0x1216   :  { %v2405_v55 = vmul.f32 1.442695, %v2403_v54 }
0x1217   :  { %v2402_v56 = vpop.xlane.xlu1 %2401 }
0x1218   :  { %7512 = vpow2.f32 %v2405_v55  ;;  %v2404_v57 = vsub.f32 %v2396_v50, %v2402_v56  ;;  %v6276_v50 = vld [vmem:[%s7751_s12 + $0x60] sm:$0xff] }
0x1219   :  { %v7296_v52 = vpack.c.bf16 %v6277_v51, %v6276_v50 }
0x121a   :  { %v2407_v58 = vmul.f32 1.442695, %v2404_v57 }
0x121b   :  { %v2498_v59 = vpop.permute.xlu1 %2497 }
0x121c   :  { %7514 = vpow2.f32 %v2407_v58  ;;  %6872 = vmatpush3.msra.mxu1 %v2498_v59 }
0x121d   :  { %7281 = vmatprep.subr.bf16.mxu1 %v7280_v40 }
0x1222   :  { %v7513_v61 = vpop.eup %7512 }
0x1223   :  { %v2409_v6 = vsel %vm790_vm6, %v7513_v61, 0.0 }
0x1224   :  { %2410 = vadd.xlane.f32.xlu0 %v2409_v6 }
0x1226   :  { %v7515_v62 = vpop.eup %7514 }
0x1227   :  { %v2412_v63 = vsel %vm790_vm6, %v7515_v62, 0.0 }
0x1228   :  { %2413 = vadd.xlane.f32.xlu0 %v2412_v63 }
0x123e   :  { %2420 = vrot.lane.b32.xlu0 %v8043_v2, %s7671_s14  ;;  %v2586_v2 = vld [vmem:[#allocation2 + $0x30] sm:$0xff] }
0x123f   :  { %v7276_v15 = vpack.c.bf16 %v2587_v14, %v2586_v2  ;;  %v6269_v14 = vld [vmem:[%s8537_s11 + $0x1] ss:$0 sm:$0xff] }
0x12b1   :  { %v2411_v0 = vpop.xlane.xlu0 %2410 }
0x12b2   :  { %7516 = vrcp.f32 %v2411_v0 }
0x12b5   :  { %v2414_v1 = vpop.xlane.xlu0 %2413 }
0x12b6   :  { %7518 = vrcp.f32 %v2414_v1 }
0x12b9   :  { %v2421_v3 = vpop.permute.xlu0 %2420 }
0x12ba   :  { %6867 = vmatpush3.msra.mxu0 %v2421_v3 }
0x12bb   :  { %7273 = vmatprep.subr.bf16.mxu0 %v7272_v11 }
0x12bc   :  { %v7517_v4 = vpop.eup %7516 }
0x12bd   :  { %v2417_v5 = vmul.f32 %v7517_v4, %v7513_v61  ;;  %v6266_v61 = vld [vmem:[%s8535_s7 + $0x1] ss:$0 sm:$0xff] }
0x12bf   :  { %6869 = vmatmul.mubr.msk.f32.vlgmr.msra.gmra.mrb[24].mxu0 %vm790_vm6, %v2417_v5 }
0x12c0   :  { %v7519_v7 = vpop.eup %7518  ;;  %7275 = vmatpush3.bf16.msra.mxu0 %v7272_v11  ;;  %v2912_v11 = vld [vmem:[%s8539_s16 + $0x8] sm:$0xff] }
0x12c1   :  { %v2418_v8 = vmul.f32 %v7519_v7, %v7515_v62  ;;  %7277 = vmatprep.subr.bf16.mxu0 %v7276_v15  ;;  %v6267_v62 = vld [vmem:[%s8536_s10 + $0x1] ss:$0 sm:$0xff]  ;;  %v6278_v7 = vld [vmem:[%s7751_s12 + $0x70] sm:$0xff]  ;;  %v7304_v2 = vpack.c.bf16 %v2912_v11, %v2911_v10  ;;  %v6308_v10 = vld [vmem:[%s7716_s3 + $0x48] sm:$0xff] }
0x12c3   :  { %6874 = vmatmul.mubr.msk.f32.vlgmr.msra.gmra.mrb[24].mxu1 %vm790_vm6, %v2418_v8  ;;  %v6279_v8 = vld [vmem:[%s7751_s12 + $0x78] sm:$0xff] }
0x12c4   :  { %7279 = vmatpush3.bf16.msra.mxu0 %v7276_v15  ;;  %7283 = vmatpush3.bf16.msra.mxu1 %v7280_v40  ;;  %v7300_v9 = vpack.c.bf16 %v6279_v8, %v6278_v7  ;;  %v6302_v7 = vld [vmem:[%s7711_s29 + $0x48] sm:$0xff] }
0x12c5   :  { %7289 = vmatprep.subr.bf16.mxu0 %v7288_v47 }
0x1392   :  { %v2492_v16 = vpop.f32.mrb[24].mxu0 }
0x1393   :  { %2575 = vrot.lane.b32.xlu1 %v2492_v16, %s7672_s30  ;;  %v6870_v17 = vpop.f32.mrb[25].mxu0 }
0x1396   :  { %v2569_v18 = vpop.f32.mrb[24].mxu1 }
0x1397   :  { %2577 = vrot.lane.b32.xlu1 %v2569_v18, %s7672_s30  ;;  %v6875_v19 = vpop.f32.mrb[25].mxu1 }
0x1405   :  { %v2576_v20 = vpop.permute.xlu1 %2575 }
0x1406   :  { %v2581_v25 = vsel %vm633_vm4, %v2162_v41, %v2576_v20  ;;  %v2718_v41 = vld [vmem:[#allocation4 + $0x30] sm:$0xff] }
0x1407   :  { %6884 = vmatprep.mubr.msk.f32.mxu0 %vm346_vm2, %v2581_v25  ;;  %v2913_v25 = vld [vmem:[%s8539_s16 + $0x10] sm:$0xff] }
0x1409   :  { %v2578_v26 = vpop.permute.xlu1 %2577 }
0x140a   :  { %v2582_v27 = vsel %vm633_vm4, %v8087_v43, %v2578_v26  ;;  %v7284_v43 = vpack.c.bf16 %v2719_v42, %v2718_v41  ;;  %v2914_v26 = vld [vmem:[%s8539_s16 + $0x18] sm:$0xff]  ;;  %v7583_v42 = vld [vmem:[%s7681_s5 + $0x8] sm:$0xff]  ;;  %s8541_s5 = sld [smem:[#allocation14_spill]] }
0x140b   :  { %6885 = vmatmul.mubr.msk.f32.vlgmr.msra.gmra.mrb[26].mxu0 %vm346_vm2, %v2582_v27  ;;  %v7308_v27 = vpack.c.bf16 %v2914_v26, %v2913_v25 }
0x140c   :  { %7285 = vmatprep.subr.bf16.mxu1 %v7284_v43  ;;  %7291 = vmatpush3.bf16.msra.mxu0 %v7288_v47 }
0x140d   :  { %7287 = vmatpush3.bf16.msra.mxu1 %v7284_v43  ;;  %7293 = vmatprep.subr.bf16.mxu0 %v7292_v49 }
0x140e   :  { %7305 = vmatprep.subr.bf16.mxu1 %v7304_v2 }
0x1410   :  { %7295 = vmatpush3.bf16.msra.mxu0 %v7292_v49 }
0x1411   :  { %7297 = vmatprep.subr.bf16.mxu0 %v7296_v52 }
0x1414   :  { %7299 = vmatpush3.bf16.msra.mxu0 %v7296_v52 }
0x1415   :  { %7301 = vmatprep.subr.bf16.mxu0 %v7300_v9 }
0x1418   :  { %7303 = vmatpush3.bf16.msra.mxu0 %v7300_v9  ;;  %v6307_v9 = vld [vmem:[%s7716_s3 + $0x40] sm:$0xff] }
0x1419   :  { %v7320_v11 = vpack.c.bf16 %v6308_v10, %v6307_v9 }
0x14de   :  { %v6886_v28 = vpop.f32.mrb[26].mxu0 }
0x14df   :  { %v8111_v29 = vadd.f32 %v6886_v28, %v8002_v21  ;;  %v2660_v22 = vpop.f32.mrb[27].mxu0  ;;  %v6288_v28 = vld [vmem:[%s7701_s21 + $0x4] sm:$0xf]  ;;  %s8544_s21 = sld [smem:[#allocation15_spill]] }
0x14e0   :  { %v8114_v24 = vadd.f32 %v2660_v22, %v8005_v23  ;;  %v6281_v22 = vld [vmem:[%s8538_s15 + $0x1] ss:$0 sm:$0xff] }
0x14e1   :  { %v2676_v30 = vsel %vm346_vm2, %v8111_v29, 0.0 }
0x14e2   :  { %2677 = vadd.xlane.f32.xlu1 %v2676_v30  ;;  %v2673_v31 = vsel %vm346_vm2, %v8114_v24, 0.0 }
0x14e3   :  { %2674 = vadd.xlane.f32.xlu0 %v2673_v31 }
0x156f   :  { %v2678_v13 = vpop.xlane.xlu1 %2677 }
0x1570   :  { %v2680_v32 = vmul.f32 0.03125, %v2678_v13  ;;  %v2675_v12 = vpop.xlane.xlu0 %2674 }
0x1571   :  { %v2679_v33 = vmul.f32 0.03125, %v2675_v12 }
0x1572   :  { %v2682_v34 = vsub.f32 %v8111_v29, %v2680_v32 }
0x1573   :  { %v2681_v21 = vsub.f32 %v8114_v24, %v2679_v33 }
0x1574   :  { %v2684_v36 = vmul.f32 %v2682_v34, %v2682_v34 }
0x1575   :  { %v2683_v35 = vmul.f32 %v2681_v21, %v2681_v21 }
0x1576   :  { %v2688_v37 = vsel %vm346_vm2, %v2684_v36, 0.0 }
0x1577   :  { %v2685_v23 = vsel %vm346_vm2, %v2683_v35, 0.0 }
0x1578   :  { %2686 = vadd.xlane.f32.xlu0 %v2685_v23 }
0x157c   :  { %2689 = vadd.xlane.f32.xlu0 %v2688_v37 }
0x1605   :  { %v2687_v53 = vpop.xlane.xlu0 %2686 }
0x1606   :  { %v2691_v54 = vmul.f32 0.03125, %v2687_v53  ;;  %v7584_v53 = vld [vmem:[%s7691_s13] sm:$0xff]  ;;  %s8542_s13 = sld [smem:[#allocation16_spill]] }
0x1608   :  { %v2693_v55 = vadd.f32 1e-06, %v2691_v54 }
0x1609   :  { %v2690_v56 = vpop.xlane.xlu0 %2689 }
0x160a   :  { %7520 = vrsqrt.f32 %v2693_v55  ;;  %v2692_v57 = vmul.f32 0.03125, %v2690_v56 }
0x160c   :  { %v2694_v58 = vadd.f32 1e-06, %v2692_v57 }
0x160e   :  { %7522 = vrsqrt.f32 %v2694_v58 }
0x1614   :  { %v7521_v59 = vpop.eup %7520 }
0x1615   :  { %v2697_v6 = vmul.f32 %v7521_v59, %v2681_v21  ;;  %v8157_v21 = vld [vmem:[%s7686_s9 + $0x8] sm:$0xff] }
0x1616   :  { %v154_v35 = vsub.f32 1.0, %v8157_v21  ;;  %v8177_v43 = vmul.f32 %v7583_v42, %v8157_v21  ;;  %v6316_v42 = vld [vmem:[%s7721_s8 + $0x58] sm:$0xff] }
0x1617   :  { %v2705_v63 = vmul.f32 %v6266_v61, %v2697_v6 }
0x1618   :  { %v7523_v0 = vpop.eup %7522 }
0x1619   :  { %v2698_v1 = vmul.f32 %v7523_v0, %v2682_v34  ;;  %v2713_v3 = vadd.f32 %v6267_v62, %v2705_v63  ;;  %v8152_v34 = vld [vmem:[%s7686_s9] sm:$0xff] }
0x161a   :  { %v153_v36 = vsub.f32 1.0, %v8152_v34  ;;  %v8171_v40 = vmul.f32 %v7582_v39, %v8152_v34  ;;  %v6315_v39 = vld [vmem:[%s7721_s8 + $0x50] sm:$0xff] }
0x161b   :  { %v2706_v4 = vmul.f32 %v6266_v61, %v2698_v1  ;;  %6895 = vmatprep.mubr.msk.f32.mxu1 %vm346_vm2, %v2713_v3 }
0x161d   :  { %v2714_v5 = vadd.f32 %v6267_v62, %v2706_v4 }
0x161f   :  { %6896 = vmatmul.mubr.msk.f32.vlgmr.msra.gmra.mrb[26].mxu1 %vm346_vm2, %v2714_v5  ;;  %v6301_v5 = vld [vmem:[%s7711_s29 + $0x40] sm:$0xff] }
0x1620   :  { %7307 = vmatpush3.bf16.msra.mxu1 %v7304_v2  ;;  %v7312_v8 = vpack.c.bf16 %v6302_v7, %v6301_v5  ;;  %v6303_v2 = vld [vmem:[%s7711_s29 + $0x50] sm:$0xff] }
0x1621   :  { %7309 = vmatprep.subr.bf16.mxu1 %v7308_v27 }
0x1622   :  { %7313 = vmatprep.subr.bf16.mxu0 %v7312_v8 }
0x1624   :  { %7311 = vmatpush3.bf16.msra.mxu1 %v7308_v27 }
0x1625   :  { %6928 = vmatprep.subr.msk.mxu1 %vm170_vm0, %v6288_v28 }
0x16f2   :  { %v6897_v15 = vpop.f32.mrb[26].mxu1 }
0x16f3   :  { %v2806_v16 = vadd.f32 %v6897_v15, %v6269_v14  ;;  %v2800_v17 = vpop.f32.mrb[27].mxu1  ;;  %v6309_v15 = vld [vmem:[%s7716_s3 + $0x50] sm:$0xff] }
0x16f4   :  { %v2801_v18 = vadd.f32 %v6269_v14, %v2800_v17  ;;  %v6304_v14 = vld [vmem:[%s7711_s29 + $0x58] sm:$0xff] }
0x16f5   :  { %v2810_v20 = vmax.f32 %v2806_v16, 0.0  ;;  %v7316_v16 = vpack.c.bf16 %v6304_v14, %v6303_v2  ;;  %v6310_v17 = vld [vmem:[%s7716_s3 + $0x58] sm:$0xff] }
0x16f6   :  { %v2809_v19 = vmax.f32 %v2801_v18, 0.0  ;;  %v7324_v18 = vpack.c.bf16 %v6310_v17, %v6309_v15 }
0x16f8   :  { %6914 = vmatprep.mubr.msk.f32.mxu0 %vm1541_vm7, %v2809_v19  ;;  %v6313_v19 = vld [vmem:[%s7721_s8 + $0x40] sm:$0xff] }
0x16f9   :  { %6915 = vmatmul.mubr.msk.f32.vlgmr.msra.gmra.mrb[28].mxu0 %vm1541_vm7, %v2810_v20  ;;  %v6314_v20 = vld [vmem:[%s7721_s8 + $0x48] sm:$0xff] }
0x16fa   :  { %7315 = vmatpush3.bf16.msra.mxu0 %v7312_v8  ;;  %v7328_v25 = vpack.c.bf16 %v6314_v20, %v6313_v19 }
0x16fb   :  { %7317 = vmatprep.subr.bf16.mxu0 %v7316_v16 }
0x16fe   :  { %7319 = vmatpush3.bf16.msra.mxu0 %v7316_v16 }
0x16ff   :  { %7329 = vmatprep.subr.bf16.mxu0 %v7328_v25 }
0x17cc   :  { %v6916_v30 = vpop.f32.mrb[28].mxu0 }
0x17cd   :  { %v2906_v31 = vadd.f32 %v6916_v30, %v6281_v22  ;;  %v2900_v13 = vpop.f32.mrb[29].mxu0 }
0x17ce   :  { %v2901_v32 = vadd.f32 %v6281_v22, %v2900_v13 }
0x17cf   :  { %v2910_v33 = vadd.f32 %v2906_v31, %v8111_v29  ;;  %v6287_v29 = vld [vmem:[%s7696_s17 + $0x4] sm:$0xf]  ;;  %s8543_s17 = sld [smem:[#allocation19_spill]] }
0x17d0   :  { %v2909_v12 = vadd.f32 %v2901_v32, %v8114_v24  ;;  %v6284_v24 = vld [vmem:[%s8540_s18] ss:$0 sm:$0xff]  ;;  %v6299_v32 = vld [vmem:[%s7731_s19 + $0x2] ss:$0 sm:$0xff] }
0x17d2   :  { %6925 = vmatprep.mubr.msk.f32.mxu1 %vm346_vm2, %v2909_v12 }
0x17d3   :  { %6926 = vmatmul.mubr.msk.f32.vlgmr.msra.gmra.mrb[28].mxu1 %vm346_vm2, %v2910_v33 }
0x17d4   :  { %6929 = vmatpush3.msk.msra.mxu1 %vm170_vm0, %v6288_v28  ;;  %6930 = vmatprep.mubr.msk.f32.mxu1 %vm163_vm1, %v8152_v34 }
0x17d5   :  { %6933 = vmatprep.subr.msk.mxu1 %vm170_vm0, %v6287_v29 }
0x17d7   :  { %6931 = vmatmul.mubr.msk.f32.vlgmr.msra.gmra.mrb[30].mxu1 %vm163_vm1, %v8157_v21 }
0x17d8   :  { %6934 = vmatpush3.msk.msra.mxu1 %vm170_vm0, %v6287_v29 }
0x17d9   :  { %7321 = vmatprep.subr.bf16.mxu1 %v7320_v11 }
0x18a6   :  { %v6927_v23 = vpop.f32.mrb[28].mxu1 }
0x18a7   :  { %v8167_v37 = vadd.f32 %v6927_v23, %v6284_v24  ;;  %v2994_v38 = vpop.f32.mrb[29].mxu1 }
0x18a8   :  { %v8173_v41 = vadd.f32 %v6284_v24, %v2994_v38  ;;  %v6300_v24 = vld [vmem:[%s7736_s24 + $0x2] ss:$0 sm:$0xff] }
0x18a9   :  { %v3006_v44 = vmul.f32 %v8167_v37, %v154_v35  ;;  %6138 = vst.msk [vmem:[%s7821_s27 + $0x8] sm:$0xff] %vm163_vm1, %v8167_v37 }
0x18aa   :  { %v3005_v45 = vmul.f32 %v8173_v41, %v153_v36  ;;  %6137 = vst.msk [vmem:[%s7821_s27] sm:$0xff] %vm163_vm1, %v8173_v41 }
0x18ab   :  { %v3008_v47 = vadd.f32 %v3006_v44, %v8177_v43 }
0x18ac   :  { %v3007_v46 = vadd.f32 %v3005_v45, %v8171_v40 }
0x18ae   :  { %6935 = vmatprep.mubr.msk.f32.mxu1 %vm163_vm1, %v3007_v46  ;;  %v7332_v46 = vpack.c.bf16 %v6316_v42, %v6315_v39 }
0x18af   :  { %6936 = vmatmul.mubr.msk.f32.vlgmr.msra.gmra.mrb[30].mxu1 %vm163_vm1, %v3008_v47 }
0x18b0   :  { %7323 = vmatpush3.bf16.msra.mxu1 %v7320_v11 }
0x18b1   :  { %7325 = vmatprep.subr.bf16.mxu1 %v7324_v18 }
0x18b4   :  { %7327 = vmatpush3.bf16.msra.mxu1 %v7324_v18 }
0x18b5   :  { %6971 = vmatprep.subr.mxu1 %v7669_v60 }
0x1982   :  { %v6937_v49 = vpop.f32.mrb[30].mxu1 }
0x1983   :  { %v3184_v50 = vadd.f32 %v6937_v49, %v6296_v48  ;;  %v3166_v51 = vpop.f32.mrb[31].mxu1 }
0x1984   :  { %v3183_v52 = vadd.f32 %v6296_v48, %v3166_v51 }
0x1985   :  { %v8197_v54 = vadd.f32 %v7584_v53, %v3184_v50 }
0x1986   :  { %v8199_v55 = vadd.f32 %v7584_v53, %v3183_v52 }
0x1987   :  { %v3194_v56 = vsel %vm346_vm2, %v8197_v54, 0.0 }
0x1988   :  { %3195 = vadd.xlane.f32.xlu1 %v3194_v56  ;;  %v3191_v57 = vsel %vm346_vm2, %v8199_v55, 0.0 }
0x1989   :  { %3192 = vadd.xlane.f32.xlu0 %v3191_v57 }
0x1a15   :  { %v3196_v58 = vpop.xlane.xlu1 %3195 }
0x1a16   :  { %v3198_v59 = vmul.f32 0.03125, %v3196_v58  ;;  %v3193_v61 = vpop.xlane.xlu0 %3192 }
0x1a17   :  { %v3197_v6 = vmul.f32 0.03125, %v3193_v61 }
0x1a18   :  { %v3200_v62 = vsub.f32 %v8197_v54, %v3198_v59 }
0x1a19   :  { %v3199_v63 = vsub.f32 %v8199_v55, %v3197_v6 }
0x1a1a   :  { %v3202_v0 = vmul.f32 %v3200_v62, %v3200_v62 }
0x1a1b   :  { %v3201_v1 = vmul.f32 %v3199_v63, %v3199_v63 }
0x1a1c   :  { %v3206_v3 = vsel %vm346_vm2, %v3202_v0, 0.0 }
0x1a1d   :  { %3207 = vadd.xlane.f32.xlu1 %v3206_v3  ;;  %v3203_v4 = vsel %vm346_vm2, %v3201_v1, 0.0 }
0x1a1e   :  { %3204 = vadd.xlane.f32.xlu0 %v3203_v4 }
0x1aaa   :  { %v3208_v26 = vpop.xlane.xlu1 %3207 }
0x1aab   :  { %v3210_v27 = vmul.f32 0.03125, %v3208_v26  ;;  %v3205_v28 = vpop.xlane.xlu0 %3204 }
0x1aac   :  { %v3209_v22 = vmul.f32 0.03125, %v3205_v28 }
0x1aad   :  { %v3212_v30 = vadd.f32 1e-06, %v3210_v27 }
0x1aae   :  { %v3211_v31 = vadd.f32 1e-06, %v3209_v22 }
0x1aaf   :  { %7524 = vrsqrt.f32 %v3212_v30 }
0x1ab0   :  { %7526 = vrsqrt.f32 %v3211_v31 }
0x1ab9   :  { %v7525_v13 = vpop.eup %7524 }
0x1aba   :  { %v7527_v12 = vpop.eup %7526  ;;  %v3216_v33 = vmul.f32 %v7525_v13, %v3200_v62 }
0x1abb   :  { %v3215_v29 = vmul.f32 %v7527_v12, %v3199_v63 }
0x1abc   :  { %v3224_v23 = vmul.f32 %v6299_v32, %v3216_v33 }
0x1abd   :  { %v3223_v38 = vmul.f32 %v6299_v32, %v3215_v29 }
0x1abe   :  { %v3232_v45 = vadd.f32 %v6300_v24, %v3224_v23 }
0x1abf   :  { %v3231_v44 = vadd.f32 %v6300_v24, %v3223_v38 }
0x1ac1   :  { %6946 = vmatprep.mubr.msk.f32.mxu0 %vm346_vm2, %v3231_v44  ;;  %6957 = vmatprep.mubr.msk.f32.mxu1 %vm346_vm2, %v3231_v44 }
0x1ac2   :  { %6947 = vmatmul.mubr.msk.f32.vlgmr.msra.gmra.mrb[30].mxu0 %vm346_vm2, %v3232_v45  ;;  %6958 = vmatmul.mubr.msk.f32.vlgmr.msra.gmra.mrb[32].mxu1 %vm346_vm2, %v3232_v45 }
0x1ac3   :  { %7331 = vmatpush3.bf16.msra.mxu0 %v7328_v25  ;;  %6968 = vmatprep.mubr.msk.f32.mxu0 %vm346_vm2, %v3231_v44 }
0x1ac4   :  { %7333 = vmatprep.subr.bf16.mxu0 %v7332_v46  ;;  %6973 = vmatprep.mubr.msk.f32.mxu1 %vm7670_vm3, %v7669_v60 }
0x1ac7   :  { %7335 = vmatpush3.bf16.msra.mxu0 %v7332_v46 }
0x1ac8   :  { %6981 = vmatprep.subr.mxu0 %v7669_v60 }
0x1aca   :  { %6969 = vmatmul.mubr.msk.f32.vlgmr.msra.gmra.mrb[32].mxu0 %vm346_vm2, %v3232_v45 }
0x1acb   :  { %6983 = vmatprep.mubr.msk.f32.mxu0 %vm7670_vm3, %v7669_v60 }
0x1b95   :  { %v6948_v47 = vpop.f32.mrb[30].mxu0  ;;  %v6959_v48 = vpop.f32.mrb[32].mxu1 }
0x1b96   :  { %v3310_v49 = vpop.f32.mrb[31].mxu0  ;;  %v3390_v50 = vpop.f32.mrb[33].mxu1 }
0x1b97   :  { %6972 = vmatpush3.xpose.msk.msra.mxu1 %vm633_vm4, %v3390_v50 }
0x1b98   :  { %6976 = vmatprep.subr.mxu1 %v7669_v60 }
0x1b9a   :  { %6974 = vmatmul.mubr.msk.f32.vlgmr.msra.gmra.mrb[34].mxu1 %vm633_vm4, %v3310_v49 }
0x1b9b   :  { %6977 = vmatpush3.xpose.msk.msra.mxu1 %vm633_vm4, %v6959_v48  ;;  %6978 = vmatprep.mubr.msk.f32.mxu1 %vm7670_vm3, %v7669_v60 }
0x1b9c   :  { %6986 = vmatprep.subr.mxu1 %v7669_v60 }
0x1b9d   :  { %v8242_v51 = vpop.f32.mrb[32].mxu0 }
0x1b9e   :  { %v8244_v52 = vpop.f32.mrb[33].mxu0  ;;  %6979 = vmatmul.mubr.msk.f32.vlgmr.msra.gmra.mrb[36].mxu1 %vm633_vm4, %v6948_v47 }
0x1b9f   :  { %6982 = vmatpush3.msra.mxu0 %v8244_v52  ;;  %6987 = vmatpush3.msra.mxu1 %v8242_v51 }
0x1ba0   :  { %6991 = vmatprep.subr.mxu0 %v7669_v60  ;;  %6988 = vmatprep.mubr.msk.f32.mxu1 %vm7670_vm3, %v7669_v60 }
0x1ba1   :  { %6996 = vmatprep.subr.mxu1 %v7669_v60 }
0x1c6d   :  { %v3551_v53 = vpop.f32.mrb[34].mxu1 }
0x1c6e   :  { %v6975_v56 = vpop.f32.mrb[35].mxu1  ;;  %v3631_v57 = vsel %vm790_vm6, %v3551_v53, -inf }
0x1c6f   :  { %3632 = vmax.xlane.f32.xlu0 %v3631_v57  ;;  %v4142_v57 = vld [vmem:[#allocation2 + $0x40] sm:$0xff] }
0x1c71   :  { %v3627_v58 = vpop.f32.mrb[36].mxu1 }
0x1c72   :  { %v6980_v59 = vpop.f32.mrb[37].mxu1  ;;  %v3634_v61 = vsel %vm790_vm6, %v3627_v58, -inf }
0x1c73   :  { %3635 = vmax.xlane.f32.xlu1 %v3634_v61  ;;  %v4145_v61 = vld [vmem:[#allocation2 + $0x58] sm:$0xff] }
0x1c84   :  { %3879 = vrot.lane.b32.xlu1 %v6959_v48, %s7671_s14 }
0x1c88   :  { %3799 = vrot.lane.b32.xlu1 %v3310_v49, %s7671_s14 }
0x1cfc   :  { %v3633_v6 = vpop.xlane.xlu0 %3632 }
0x1cfd   :  { %v3637_v62 = vsub.f32 %v3551_v53, %v3633_v6 }
0x1cff   :  { %v3639_v63 = vmul.f32 1.442695, %v3637_v62 }
0x1d00   :  { %v3636_v0 = vpop.xlane.xlu1 %3635 }
0x1d01   :  { %7528 = vpow2.f32 %v3639_v63  ;;  %v3638_v1 = vsub.f32 %v3627_v58, %v3636_v0  ;;  %v4143_v58 = vld [vmem:[#allocation2 + $0x48] sm:$0xff] }
0x1d02   :  { %v7336_v59 = vpack.c.bf16 %v4143_v58, %v4142_v57 }
0x1d03   :  { %v3641_v3 = vmul.f32 1.442695, %v3638_v1 }
0x1d04   :  { %v3880_v9 = vpop.permute.xlu1 %3879 }
0x1d05   :  { %7530 = vpow2.f32 %v3641_v3 }
0x1d08   :  { %v3800_v10 = vpop.permute.xlu1 %3799 }
0x1d0b   :  { %v7529_v4 = vpop.eup %7528 }
0x1d0c   :  { %v3643_v5 = vsel %vm790_vm6, %v7529_v4, 0.0 }
0x1d0d   :  { %3644 = vadd.xlane.f32.xlu0 %v3643_v5 }
0x1d0f   :  { %v7531_v7 = vpop.eup %7530 }
0x1d10   :  { %v3646_v8 = vsel %vm790_vm6, %v7531_v7, 0.0 }
0x1d11   :  { %3647 = vadd.xlane.f32.xlu1 %v3646_v8 }
0x1d22   :  { %3877 = vrot.lane.b32.xlu1 %v6948_v47, %s7671_s14 }
0x1d23   :  { %3801 = vrot.lane.b32.xlu0 %v3390_v50, %s7671_s14 }
0x1d9a   :  { %v3645_v11 = vpop.xlane.xlu0 %3644 }
0x1d9b   :  { %7532 = vrcp.f32 %v3645_v11 }
0x1d9e   :  { %v3648_v2 = vpop.xlane.xlu1 %3647  ;;  %v3802_v16 = vpop.permute.xlu0 %3801 }
0x1d9f   :  { %7534 = vrcp.f32 %v3648_v2 }
0x1da2   :  { %v3878_v19 = vpop.permute.xlu1 %3877 }
0x1da5   :  { %v7533_v14 = vpop.eup %7532 }
0x1da6   :  { %v3651_v15 = vmul.f32 %v7533_v14, %v7529_v4 }
0x1da8   :  { %6984 = vmatmul.mubr.msk.f32.vlgmr.msra.gmra.mrb[34].mxu0 %vm790_vm6, %v3651_v15 }
0x1da9   :  { %v7535_v17 = vpop.eup %7534  ;;  %6992 = vmatpush3.xpose.msk.msra.mxu0 %vm633_vm4, %v3802_v16  ;;  %6993 = vmatprep.mubr.msk.f32.mxu0 %vm7670_vm3, %v7669_v60 }
0x1daa   :  { %v3652_v18 = vmul.f32 %v7535_v17, %v7531_v7  ;;  %7001 = vmatprep.subr.mxu0 %v7669_v60 }
0x1dac   :  { %6989 = vmatmul.mubr.msk.f32.vlgmr.msra.gmra.mrb[38].mxu1 %vm790_vm6, %v3652_v18  ;;  %6994 = vmatmul.mubr.msk.f32.vlgmr.msra.gmra.mrb[36].mxu0 %vm633_vm4, %v3800_v10 }
0x1dad   :  { %6997 = vmatpush3.xpose.msk.msra.mxu1 %vm633_vm4, %v3880_v9  ;;  %6998 = vmatprep.mubr.msk.f32.mxu1 %vm7670_vm3, %v7669_v60 }
0x1dae   :  { %7006 = vmatprep.subr.mxu1 %v7669_v60  ;;  %7003 = vmatprep.mubr.msk.f32.mxu0 %vm7670_vm3, %v7669_v60 }
0x1db0   :  { %6999 = vmatmul.mubr.msk.f32.vlgmr.msra.gmra.mrb[40].mxu1 %vm633_vm4, %v3878_v19 }
0x1db1   :  { %7008 = vmatprep.mubr.msk.f32.mxu1 %vm7670_vm3, %v7669_v60 }
0x1e7b   :  { %v3722_v20 = vpop.f32.mrb[34].mxu0 }
0x1e7c   :  { %v6985_v25 = vpop.f32.mrb[35].mxu0 }
0x1e7f   :  { %v3795_v26 = vpop.f32.mrb[38].mxu1  ;;  %v3873_v27 = vpop.f32.mrb[36].mxu0 }
0x1e80   :  { %v6990_v28 = vpop.f32.mrb[39].mxu1  ;;  %v6995_v22 = vpop.f32.mrb[37].mxu0  ;;  %v3955_v30 = vsel %vm790_vm6, %v3873_v27, -inf }
0x1e81   :  { %3956 = vmax.xlane.f32.xlu0 %v3955_v30  ;;  %v4275_v28 = vld [vmem:[#allocation4 + $0x48] sm:$0xff]  ;;  %v4276_v30 = vld [vmem:[#allocation4 + $0x50] sm:$0xff] }
0x1e83   :  { %v3951_v31 = vpop.f32.mrb[40].mxu1 }
0x1e84   :  { %v7000_v13 = vpop.f32.mrb[41].mxu1  ;;  %v3958_v32 = vsel %vm790_vm6, %v3951_v31, -inf }
0x1e85   :  { %3959 = vmax.xlane.f32.xlu1 %v3958_v32  ;;  %v6341_v32 = vld [vmem:[%s7751_s12 + $0x80] sm:$0xff] }
0x1e96   :  { %4055 = vrot.lane.b32.xlu1 %v8242_v51, %s7671_s14 }
0x1f0e   :  { %v3957_v12 = vpop.xlane.xlu0 %3956 }
0x1f0f   :  { %v3961_v33 = vsub.f32 %v3873_v27, %v3957_v12  ;;  %v4274_v27 = vld [vmem:[#allocation4 + $0x40] sm:$0xff]  ;;  %v6342_v12 = vld [vmem:[%s7751_s12 + $0x88] sm:$0xff] }
0x1f10   :  { %v7344_v22 = vpack.c.bf16 %v4275_v28, %v4274_v27 }
0x1f11   :  { %v3963_v29 = vmul.f32 1.442695, %v3961_v33  ;;  %v6343_v33 = vld [vmem:[%s7751_s12 + $0x90] sm:$0xff] }
0x1f12   :  { %v3960_v24 = vpop.xlane.xlu1 %3959 }
0x1f13   :  { %7536 = vpow2.f32 %v3963_v29  ;;  %v3962_v23 = vsub.f32 %v3951_v31, %v3960_v24  ;;  %v4277_v31 = vld [vmem:[#allocation4 + $0x58] sm:$0xff]  ;;  %v7352_v29 = vpack.c.bf16 %v6342_v12, %v6341_v32  ;;  %v6358_v32 = vld [vmem:[%s7711_s29 + $0x68] sm:$0xff] }
0x1f14   :  { %v7348_v13 = vpack.c.bf16 %v4277_v31, %v4276_v30  ;;  %v6344_v24 = vld [vmem:[%s7751_s12 + $0x98] sm:$0xff] }
0x1f15   :  { %v3965_v38 = vmul.f32 1.442695, %v3962_v23  ;;  %v7356_v23 = vpack.c.bf16 %v6344_v24, %v6343_v33  ;;  %v6369_v33 = vld [vmem:[%s7721_s8 + $0x60] sm:$0xff] }
0x1f16   :  { %v4056_v39 = vpop.permute.xlu1 %4055 }
0x1f17   :  { %7538 = vpow2.f32 %v3965_v38  ;;  %7007 = vmatpush3.msra.mxu1 %v4056_v39  ;;  %v6345_v38 = vld [vmem:[%s7751_s12 + $0xa0] sm:$0xff]  ;;  %v6346_v39 = vld [vmem:[%s7751_s12 + $0xa8] sm:$0xff] }
0x1f18   :  { %7345 = vmatprep.subr.bf16.mxu1 %v7344_v22 }
0x1f1d   :  { %v7537_v42 = vpop.eup %7536 }
0x1f1e   :  { %v3967_v44 = vsel %vm790_vm6, %v7537_v42, 0.0 }
0x1f1f   :  { %3968 = vadd.xlane.f32.xlu0 %v3967_v44 }
0x1f21   :  { %v7539_v45 = vpop.eup %7538 }
0x1f22   :  { %v3970_v46 = vsel %vm790_vm6, %v7539_v45, 0.0 }
0x1f23   :  { %3971 = vadd.xlane.f32.xlu0 %v3970_v46 }
0x1f39   :  { %3978 = vrot.lane.b32.xlu0 %v8244_v52, %s7671_s14  ;;  %v4144_v52 = vld [vmem:[#allocation2 + $0x50] sm:$0xff] }
0x1f3a   :  { %v7340_v6 = vpack.c.bf16 %v4145_v61, %v4144_v52 }
0x1fac   :  { %v3969_v47 = vpop.xlane.xlu0 %3968 }
0x1fad   :  { %7540 = vrcp.f32 %v3969_v47 }
0x1fb0   :  { %v3972_v48 = vpop.xlane.xlu0 %3971 }
0x1fb1   :  { %7542 = vrcp.f32 %v3972_v48 }
0x1fb4   :  { %v3979_v49 = vpop.permute.xlu0 %3978 }
0x1fb5   :  { %7002 = vmatpush3.msra.mxu0 %v3979_v49 }
0x1fb6   :  { %7337 = vmatprep.subr.bf16.mxu0 %v7336_v59 }
0x1fb7   :  { %v7541_v50 = vpop.eup %7540 }
0x1fb8   :  { %v3975_v51 = vmul.f32 %v7541_v50, %v7537_v42  ;;  %v7360_v42 = vpack.c.bf16 %v6346_v39, %v6345_v38  ;;  %v6360_v38 = vld [vmem:[%s7711_s29 + $0x78] sm:$0xff]  ;;  %v6371_v39 = vld [vmem:[%s7721_s8 + $0x70] sm:$0xff] }
0x1fba   :  { %7004 = vmatmul.mubr.msk.f32.vlgmr.msra.gmra.mrb[38].mxu0 %vm790_vm6, %v3975_v51  ;;  %v6335_v51 = vld [vmem:[%s8535_s7 + $0x2] ss:$0 sm:$0xff] }
0x1fbb   :  { %v7543_v53 = vpop.eup %7542  ;;  %7339 = vmatpush3.bf16.msra.mxu0 %v7336_v59 }
0x1fbc   :  { %v3976_v56 = vmul.f32 %v7543_v53, %v7539_v45  ;;  %7341 = vmatprep.subr.bf16.mxu0 %v7340_v6 }
0x1fbe   :  { %7009 = vmatmul.mubr.msk.f32.vlgmr.msra.gmra.mrb[42].mxu1 %vm790_vm6, %v3976_v56  ;;  %v6336_v56 = vld [vmem:[%s8536_s10 + $0x2] ss:$0 sm:$0xff] }
0x1fbf   :  { %7343 = vmatpush3.bf16.msra.mxu0 %v7340_v6  ;;  %7347 = vmatpush3.bf16.msra.mxu1 %v7344_v22 }
0x1fc0   :  { %7349 = vmatprep.subr.bf16.mxu1 %v7348_v13  ;;  %7353 = vmatprep.subr.bf16.mxu0 %v7352_v29 }
0x1fc3   :  { %7351 = vmatpush3.bf16.msra.mxu1 %v7348_v13  ;;  %v6357_v13 = vld [vmem:[%s7711_s29 + $0x60] sm:$0xff] }
0x1fc4   :  { %v7368_v12 = vpack.c.bf16 %v6358_v32, %v6357_v13 }
0x1fc6   :  { %7369 = vmatprep.subr.bf16.mxu1 %v7368_v12 }
0x208d   :  { %v4050_v62 = vpop.f32.mrb[38].mxu0 }
0x208e   :  { %4133 = vrot.lane.b32.xlu1 %v4050_v62, %s7672_s30  ;;  %v7005_v63 = vpop.f32.mrb[39].mxu0  ;;  %v6347_v62 = vld [vmem:[%s7751_s12 + $0xb0] sm:$0xff] }
0x208f   :  { %v6348_v63 = vld [vmem:[%s7751_s12 + $0xb8] sm:$0xff] }
0x2091   :  { %v4127_v0 = vpop.f32.mrb[42].mxu1 }
0x2092   :  { %v7010_v1 = vpop.f32.mrb[43].mxu1  ;;  %4135 = vrot.lane.b32.xlu1 %v4127_v0, %s7672_s30  ;;  %v7364_v0 = vpack.c.bf16 %v6348_v63, %v6347_v62  ;;  %v6356_v62 = vld [vmem:[%s7736_s24 + $0x3] ss:$0 sm:$0xff] }
0x2093   :  { %v6338_v1 = vld [vmem:[%s8537_s11 + $0x2] ss:$0 sm:$0xff] }
0x2100   :  { %v4134_v3 = vpop.permute.xlu1 %4133 }
0x2101   :  { %v4139_v4 = vsel %vm633_vm4, %v3722_v20, %v4134_v3 }
0x2102   :  { %7019 = vmatprep.mubr.msk.f32.mxu0 %vm346_vm2, %v4139_v4 }
0x2104   :  { %v4136_v5 = vpop.permute.xlu1 %4135 }
0x2105   :  { %v4140_v7 = vsel %vm633_vm4, %v3795_v26, %v4136_v5 }
0x2106   :  { %7020 = vmatmul.mubr.msk.f32.vlgmr.msra.gmra.mrb[40].mxu0 %vm346_vm2, %v4140_v7 }
0x2107   :  { %7355 = vmatpush3.bf16.msra.mxu0 %v7352_v29  ;;  %v6370_v29 = vld [vmem:[%s7721_s8 + $0x68] sm:$0xff] }
0x2108   :  { %7357 = vmatprep.subr.bf16.mxu0 %v7356_v23  ;;  %v7384_v24 = vpack.c.bf16 %v6370_v29, %v6369_v33 }
0x210b   :  { %7359 = vmatpush3.bf16.msra.mxu0 %v7356_v23  ;;  %v6359_v23 = vld [vmem:[%s7711_s29 + $0x70] sm:$0xff]  ;;  %s8546_s29 = sld [smem:[#allocation17_spill]] }
0x210c   :  { %7361 = vmatprep.subr.bf16.mxu0 %v7360_v42 }
0x210f   :  { %7363 = vmatpush3.bf16.msra.mxu0 %v7360_v42  ;;  %v7372_v42 = vpack.c.bf16 %v6360_v38, %v6359_v23 }
0x2110   :  { %7365 = vmatprep.subr.bf16.mxu0 %v7364_v0 }
0x2113   :  { %7367 = vmatpush3.bf16.msra.mxu0 %v7364_v0 }
0x2114   :  { %7385 = vmatprep.subr.bf16.mxu0 %v7384_v24 }
0x21d9   :  { %v7021_v8 = vpop.f32.mrb[40].mxu0 }
0x21da   :  { %v8294_v9 = vadd.f32 %v7021_v8, %v8197_v54  ;;  %v4218_v10 = vpop.f32.mrb[41].mxu0 }
0x21db   :  { %v8297_v11 = vadd.f32 %v4218_v10, %v8199_v55 }
0x21dc   :  { %v4234_v2 = vsel %vm346_vm2, %v8294_v9, 0.0 }
0x21dd   :  { %4235 = vadd.xlane.f32.xlu1 %v4234_v2  ;;  %v4231_v14 = vsel %vm346_vm2, %v8297_v11, 0.0  ;;  %v6350_v2 = vld [vmem:[%s8538_s15 + $0x2] ss:$0 sm:$0xff] }
0x21de   :  { %4232 = vadd.xlane.f32.xlu0 %v4231_v14 }
0x226a   :  { %v4236_v15 = vpop.xlane.xlu1 %4235 }
0x226b   :  { %v4238_v16 = vmul.f32 0.03125, %v4236_v15  ;;  %v4233_v17 = vpop.xlane.xlu0 %4232 }
0x226c   :  { %v4237_v18 = vmul.f32 0.03125, %v4233_v17 }
0x226d   :  { %v4240_v19 = vsub.f32 %v8294_v9, %v4238_v16 }
0x226e   :  { %v4239_v54 = vsub.f32 %v8297_v11, %v4237_v18 }
0x226f   :  { %v4242_v25 = vmul.f32 %v4240_v19, %v4240_v19 }
0x2270   :  { %v4241_v20 = vmul.f32 %v4239_v54, %v4239_v54 }
0x2271   :  { %v4246_v26 = vsel %vm346_vm2, %v4242_v25, 0.0 }
0x2272   :  { %v4243_v55 = vsel %vm346_vm2, %v4241_v20, 0.0 }
0x2273   :  { %4244 = vadd.xlane.f32.xlu0 %v4243_v55 }
0x2277   :  { %4247 = vadd.xlane.f32.xlu0 %v4246_v26 }
0x2300   :  { %v4245_v44 = vpop.xlane.xlu0 %4244 }
0x2301   :  { %v4249_v45 = vmul.f32 0.03125, %v4245_v44  ;;  %v6372_v44 = vld [vmem:[%s7721_s8 + $0x78] sm:$0xff] }
0x2303   :  { %v4251_v46 = vadd.f32 1e-06, %v4249_v45  ;;  %v7388_v45 = vpack.c.bf16 %v6372_v44, %v6371_v39 }
0x2304   :  { %v4248_v47 = vpop.xlane.xlu0 %4247 }
0x2305   :  { %7544 = vrsqrt.f32 %v4251_v46  ;;  %v4250_v48 = vmul.f32 0.03125, %v4248_v47  ;;  %v6363_v46 = vld [vmem:[%s7716_s3 + $0x60] sm:$0xff]  ;;  %v6364_v47 = vld [vmem:[%s7716_s3 + $0x68] sm:$0xff] }
0x2307   :  { %v4252_v49 = vadd.f32 1e-06, %v4250_v48  ;;  %v7376_v48 = vpack.c.bf16 %v6364_v47, %v6363_v46 }
0x2309   :  { %7546 = vrsqrt.f32 %v4252_v49 }
0x230f   :  { %v7545_v50 = vpop.eup %7544 }
0x2310   :  { %v4255_v53 = vmul.f32 %v7545_v50, %v4239_v54 }
0x2312   :  { %v4263_v57 = vmul.f32 %v6335_v51, %v4255_v53 }
0x2313   :  { %v7547_v58 = vpop.eup %7546 }
0x2314   :  { %v4256_v59 = vmul.f32 %v7547_v58, %v4240_v19  ;;  %v4271_v52 = vadd.f32 %v6336_v56, %v4263_v57 }
0x2316   :  { %v4264_v61 = vmul.f32 %v6335_v51, %v4256_v59  ;;  %7030 = vmatprep.mubr.msk.f32.mxu1 %vm346_vm2, %v4271_v52  ;;  %v6355_v59 = vld [vmem:[%s7731_s19 + $0x3] ss:$0 sm:$0xff] }
0x2318   :  { %v4272_v6 = vadd.f32 %v6336_v56, %v4264_v61 }
0x231a   :  { %7031 = vmatmul.mubr.msk.f32.vlgmr.msra.gmra.mrb[44].mxu1 %vm346_vm2, %v4272_v6 }
0x231b   :  { %7371 = vmatpush3.bf16.msra.mxu1 %v7368_v12 }
0x231c   :  { %7373 = vmatprep.subr.bf16.mxu1 %v7372_v42 }
0x231f   :  { %7375 = vmatpush3.bf16.msra.mxu1 %v7372_v42 }
0x2320   :  { %7377 = vmatprep.subr.bf16.mxu1 %v7376_v48 }
0x23ed   :  { %v7032_v3 = vpop.f32.mrb[44].mxu1 }
0x23ee   :  { %v4364_v4 = vadd.f32 %v7032_v3, %v6338_v1  ;;  %v4358_v5 = vpop.f32.mrb[45].mxu1  ;;  %v6366_v3 = vld [vmem:[%s7716_s3 + $0x78] sm:$0xff] }
0x23ef   :  { %v4359_v7 = vadd.f32 %v6338_v1, %v4358_v5  ;;  %v6365_v1 = vld [vmem:[%s7716_s3 + $0x70] sm:$0xff]  ;;  %s8547_s3 = sld [smem:[#allocation20_spill]] }
0x23f0   :  { %v4368_v10 = vmax.f32 %v4364_v4, 0.0 }
0x23f1   :  { %v4367_v8 = vmax.f32 %v4359_v7, 0.0  ;;  %v7380_v7 = vpack.c.bf16 %v6366_v3, %v6365_v1 }
0x23f3   :  { %7049 = vmatprep.mubr.msk.f32.mxu0 %vm1541_vm7, %v4367_v8 }
0x23f4   :  { %7050 = vmatmul.mubr.msk.f32.vlgmr.msra.gmra.mrb[42].mxu0 %vm1541_vm7, %v4368_v10 }
0x23f5   :  { %7387 = vmatpush3.bf16.msra.mxu0 %v7384_v24 }
0x23f6   :  { %7389 = vmatprep.subr.bf16.mxu0 %v7388_v45 }
0x23f9   :  { %7391 = vmatpush3.bf16.msra.mxu0 %v7388_v45 }
0x23fa   :  { %7095 = vmatprep.subr.mxu0 %v7669_v60 }
0x24c7   :  { %v7051_v14 = vpop.f32.mrb[42].mxu0 }
0x24c8   :  { %v4464_v15 = vadd.f32 %v7051_v14, %v6350_v2  ;;  %v4458_v16 = vpop.f32.mrb[43].mxu0 }
0x24c9   :  { %v4459_v17 = vadd.f32 %v6350_v2, %v4458_v16 }
0x24ca   :  { %v8324_v18 = vadd.f32 %v4464_v15, %v8294_v9 }
0x24cb   :  { %v8327_v19 = vadd.f32 %v4459_v17, %v8297_v11 }
0x24cc   :  { %v4476_v54 = vsel %vm346_vm2, %v8324_v18, 0.0 }
0x24cd   :  { %4477 = vadd.xlane.f32.xlu1 %v4476_v54  ;;  %v4473_v20 = vsel %vm346_vm2, %v8327_v19, 0.0 }
0x24ce   :  { %4474 = vadd.xlane.f32.xlu0 %v4473_v20 }
0x255a   :  { %v4478_v55 = vpop.xlane.xlu1 %4477 }
0x255b   :  { %v4480_v25 = vmul.f32 0.03125, %v4478_v55  ;;  %v4475_v26 = vpop.xlane.xlu0 %4474 }
0x255c   :  { %v4479_v9 = vmul.f32 0.03125, %v4475_v26 }
0x255d   :  { %v4482_v11 = vsub.f32 %v8324_v18, %v4480_v25 }
0x255e   :  { %v4481_v27 = vsub.f32 %v8327_v19, %v4479_v9 }
0x255f   :  { %v4484_v28 = vmul.f32 %v4482_v11, %v4482_v11 }
0x2560   :  { %v4483_v22 = vmul.f32 %v4481_v27, %v4481_v27 }
0x2561   :  { %v4488_v30 = vsel %vm346_vm2, %v4484_v28, 0.0 }
0x2562   :  { %4489 = vadd.xlane.f32.xlu1 %v4488_v30  ;;  %v4485_v31 = vsel %vm346_vm2, %v4483_v22, 0.0 }
0x2563   :  { %4486 = vadd.xlane.f32.xlu0 %v4485_v31 }
0x25ef   :  { %v4490_v49 = vpop.xlane.xlu1 %4489 }
0x25f0   :  { %v4492_v50 = vmul.f32 0.03125, %v4490_v49  ;;  %v4487_v51 = vpop.xlane.xlu0 %4486 }
0x25f1   :  { %v4491_v53 = vmul.f32 0.03125, %v4487_v51 }
0x25f2   :  { %v4494_v56 = vadd.f32 1e-06, %v4492_v50 }
0x25f3   :  { %v4493_v57 = vadd.f32 1e-06, %v4491_v53 }
0x25f4   :  { %7548 = vrsqrt.f32 %v4494_v56 }
0x25f5   :  { %7550 = vrsqrt.f32 %v4493_v57 }
0x25fe   :  { %v7549_v58 = vpop.eup %7548 }
0x25ff   :  { %v7551_v52 = vpop.eup %7550  ;;  %v4498_v61 = vmul.f32 %v7549_v58, %v4482_v11 }
0x2600   :  { %v4497_v6 = vmul.f32 %v7551_v52, %v4481_v27 }
0x2601   :  { %v4506_v63 = vmul.f32 %v6355_v59, %v4498_v61 }
0x2602   :  { %v4505_v0 = vmul.f32 %v6355_v59, %v4497_v6 }
0x2603   :  { %v4514_v5 = vadd.f32 %v6356_v62, %v4506_v63 }
0x2604   :  { %v4513_v4 = vadd.f32 %v6356_v62, %v4505_v0 }
0x2606   :  { %7060 = vmatprep.mubr.msk.f32.mxu1 %vm346_vm2, %v4513_v4  ;;  %7082 = vmatprep.mubr.msk.f32.mxu0 %vm346_vm2, %v4513_v4 }
0x2607   :  { %7061 = vmatmul.mubr.msk.f32.vlgmr.msra.gmra.mrb[46].mxu1 %vm346_vm2, %v4514_v5  ;;  %7083 = vmatmul.mubr.msk.f32.vlgmr.msra.gmra.mrb[44].mxu0 %vm346_vm2, %v4514_v5 }
0x2608   :  { %7379 = vmatpush3.bf16.msra.mxu1 %v7376_v48  ;;  %7071 = vmatprep.mubr.msk.f32.mxu1 %vm346_vm2, %v4513_v4 }
0x2609   :  { %7381 = vmatprep.subr.bf16.mxu1 %v7380_v7  ;;  %7097 = vmatprep.mubr.msk.f32.mxu0 %vm7670_vm3, %v7669_v60 }
0x260c   :  { %7383 = vmatpush3.bf16.msra.mxu1 %v7380_v7 }
0x260d   :  { %7085 = vmatprep.subr.mxu1 %v7669_v60 }
0x260f   :  { %7072 = vmatmul.mubr.msk.f32.vlgmr.msra.gmra.mrb[48].mxu1 %vm346_vm2, %v4514_v5 }
0x2610   :  { %7087 = vmatprep.mubr.msk.f32.mxu1 %vm7670_vm3, %v7669_v60 }
0x26da   :  { %v7062_v8 = vpop.f32.mrb[46].mxu1  ;;  %v8363_v10 = vpop.f32.mrb[44].mxu0 }
0x26db   :  { %v4592_v2 = vpop.f32.mrb[47].mxu1  ;;  %v8365_v14 = vpop.f32.mrb[45].mxu0 }
0x26dc   :  { %7096 = vmatpush3.msra.mxu0 %v8365_v14 }
0x26dd   :  { %7105 = vmatprep.subr.mxu0 %v7669_v60 }
0x26e2   :  { %v7073_v15 = vpop.f32.mrb[48].mxu1 }
0x26e3   :  { %v4672_v16 = vpop.f32.mrb[49].mxu1 }
0x26e4   :  { %7086 = vmatpush3.xpose.msk.msra.mxu1 %vm633_vm4, %v4672_v16 }
0x26e5   :  { %7090 = vmatprep.subr.mxu1 %v7669_v60 }
0x26e7   :  { %7088 = vmatmul.mubr.msk.f32.vlgmr.msra.gmra.mrb[50].mxu1 %vm633_vm4, %v4592_v2 }
0x26e8   :  { %7091 = vmatpush3.xpose.msk.msra.mxu1 %vm633_vm4, %v7073_v15  ;;  %7092 = vmatprep.mubr.msk.f32.mxu1 %vm7670_vm3, %v7669_v60 }
0x26e9   :  { %7100 = vmatprep.subr.mxu1 %v7669_v60 }
0x26eb   :  { %7093 = vmatmul.mubr.msk.f32.vlgmr.msra.gmra.mrb[52].mxu1 %vm633_vm4, %v7062_v8 }
0x26ec   :  { %7101 = vmatpush3.msra.mxu1 %v8363_v10  ;;  %7102 = vmatprep.mubr.msk.f32.mxu1 %vm7670_vm3, %v7669_v60 }
0x26ed   :  { %7110 = vmatprep.subr.mxu1 %v7669_v60 }
0x27ba   :  { %v4833_v17 = vpop.f32.mrb[50].mxu1 }
0x27bb   :  { %v7089_v54 = vpop.f32.mrb[51].mxu1  ;;  %v4913_v20 = vsel %vm790_vm6, %v4833_v17, -inf }
0x27bc   :  { %4914 = vmax.xlane.f32.xlu0 %v4913_v20  ;;  %v5426_v54 = vld [vmem:[#allocation2 + $0x60] sm:$0xff] }
0x27be   :  { %v4909_v55 = vpop.f32.mrb[52].mxu1 }
0x27bf   :  { %v7094_v25 = vpop.f32.mrb[53].mxu1  ;;  %v4916_v26 = vsel %vm790_vm6, %v4909_v55, -inf }
0x27c0   :  { %4917 = vmax.xlane.f32.xlu1 %v4916_v26  ;;  %v5429_v25 = vld [vmem:[#allocation2 + $0x78] sm:$0xff] }
0x27d1   :  { %5161 = vrot.lane.b32.xlu1 %v7073_v15, %s7671_s14 }
0x27d5   :  { %5081 = vrot.lane.b32.xlu1 %v4592_v2, %s7671_s14 }
0x2849   :  { %v4915_v9 = vpop.xlane.xlu0 %4914 }
0x284a   :  { %v4919_v11 = vsub.f32 %v4833_v17, %v4915_v9 }
0x284c   :  { %v4921_v27 = vmul.f32 1.442695, %v4919_v11 }
0x284d   :  { %v4918_v28 = vpop.xlane.xlu1 %4917 }
0x284e   :  { %7552 = vpow2.f32 %v4921_v27  ;;  %v4920_v22 = vsub.f32 %v4909_v55, %v4918_v28  ;;  %v5428_v55 = vld [vmem:[#allocation2 + $0x70] sm:$0xff] }
0x284f   :  { %v7396_v26 = vpack.c.bf16 %v5429_v25, %v5428_v55 }
0x2850   :  { %v4923_v30 = vmul.f32 1.442695, %v4920_v22 }
0x2851   :  { %v5162_v33 = vpop.permute.xlu1 %5161 }
0x2852   :  { %7554 = vpow2.f32 %v4923_v30 }
0x2855   :  { %v5082_v29 = vpop.permute.xlu1 %5081 }
0x2858   :  { %v7553_v31 = vpop.eup %7552 }
0x2859   :  { %v4925_v13 = vsel %vm790_vm6, %v7553_v31, 0.0 }
0x285a   :  { %4926 = vadd.xlane.f32.xlu0 %v4925_v13 }
0x285c   :  { %v7555_v32 = vpop.eup %7554 }
0x285d   :  { %v4928_v12 = vsel %vm790_vm6, %v7555_v32, 0.0 }
0x285e   :  { %4929 = vadd.xlane.f32.xlu1 %v4928_v12 }
0x286f   :  { %5159 = vrot.lane.b32.xlu1 %v7062_v8, %s7671_s14 }
0x2870   :  { %5083 = vrot.lane.b32.xlu0 %v4672_v16, %s7671_s14 }
0x28e7   :  { %v4927_v24 = vpop.xlane.xlu0 %4926 }
0x28e8   :  { %7556 = vrcp.f32 %v4927_v24 }
0x28eb   :  { %v4930_v23 = vpop.xlane.xlu1 %4929  ;;  %v5084_v42 = vpop.permute.xlu0 %5083 }
0x28ec   :  { %7558 = vrcp.f32 %v4930_v23 }
0x28ef   :  { %v5160_v46 = vpop.permute.xlu1 %5159 }
0x28f2   :  { %v7557_v38 = vpop.eup %7556 }
0x28f3   :  { %v8389_v39 = vmul.f32 %v7557_v38, %v7553_v31 }
0x28f5   :  { %7098 = vmatmul.mubr.msk.f32.vlgmr.msra.gmra.mrb[46].mxu0 %vm790_vm6, %v8389_v39 }
0x28f6   :  { %v7559_v44 = vpop.eup %7558  ;;  %7106 = vmatpush3.xpose.msk.msra.mxu0 %vm633_vm4, %v5084_v42  ;;  %7107 = vmatprep.mubr.msk.f32.mxu0 %vm7670_vm3, %v7669_v60 }
0x28f7   :  { %v8396_v45 = vmul.f32 %v7559_v44, %v7555_v32  ;;  %7115 = vmatprep.subr.mxu0 %v7669_v60 }
0x28f9   :  { %7103 = vmatmul.mubr.msk.f32.vlgmr.msra.gmra.mrb[54].mxu1 %vm790_vm6, %v8396_v45  ;;  %7108 = vmatmul.mubr.msk.f32.vlgmr.msra.gmra.mrb[48].mxu0 %vm633_vm4, %v5082_v29 }
0x28fa   :  { %7111 = vmatpush3.xpose.msk.msra.mxu1 %vm633_vm4, %v5162_v33  ;;  %7112 = vmatprep.mubr.msk.f32.mxu1 %vm7670_vm3, %v7669_v60 }
0x28fb   :  { %7120 = vmatprep.subr.mxu1 %v7669_v60  ;;  %7117 = vmatprep.mubr.msk.f32.mxu0 %vm7670_vm3, %v7669_v60 }
0x28fd   :  { %7113 = vmatmul.mubr.msk.f32.vlgmr.msra.gmra.mrb[56].mxu1 %vm633_vm4, %v5160_v46 }
0x28fe   :  { %7122 = vmatprep.mubr.msk.f32.mxu1 %vm7670_vm3, %v7669_v60 }
0x29c8   :  { %v5004_v47 = vpop.f32.mrb[46].mxu0 }
0x29c9   :  { %v7099_v48 = vpop.f32.mrb[47].mxu0 }
0x29cc   :  { %v5077_v49 = vpop.f32.mrb[54].mxu1  ;;  %v5155_v50 = vpop.f32.mrb[48].mxu0 }
0x29cd   :  { %v7104_v51 = vpop.f32.mrb[55].mxu1  ;;  %v7109_v53 = vpop.f32.mrb[49].mxu0  ;;  %v5237_v56 = vsel %vm790_vm6, %v5155_v50, -inf }
0x29ce   :  { %5238 = vmax.xlane.f32.xlu0 %v5237_v56  ;;  %v5558_v51 = vld [vmem:[#allocation4 + $0x60] sm:$0xff]  ;;  %v5559_v53 = vld [vmem:[#allocation4 + $0x68] sm:$0xff] }
0x29cf   :  { %v7400_v56 = vpack.c.bf16 %v5559_v53, %v5558_v51 }
0x29d0   :  { %v5233_v57 = vpop.f32.mrb[56].mxu1 }
0x29d1   :  { %v7114_v58 = vpop.f32.mrb[57].mxu1  ;;  %v5240_v59 = vsel %vm790_vm6, %v5233_v57, -inf }
0x29d2   :  { %5241 = vmax.xlane.f32.xlu1 %v5240_v59  ;;  %v5561_v58 = vld [vmem:[#allocation4 + $0x78] sm:$0xff] }
0x29e3   :  { %5337 = vrot.lane.b32.xlu1 %v8363_v10, %s7671_s14 }
0x2a5b   :  { %v5239_v52 = vpop.xlane.xlu0 %5238 }
0x2a5c   :  { %v5243_v61 = vsub.f32 %v5155_v50, %v5239_v52  ;;  %v6397_v52 = vld [vmem:[%s7751_s12 + $0xc0] sm:$0xff] }
0x2a5e   :  { %v5245_v60 = vmul.f32 1.442695, %v5243_v61  ;;  %v6398_v61 = vld [vmem:[%s7751_s12 + $0xc8] sm:$0xff] }
0x2a5f   :  { %v5242_v6 = vpop.xlane.xlu1 %5241 }
0x2a60   :  { %7560 = vpow2.f32 %v5245_v60  ;;  %v5244_v62 = vsub.f32 %v5233_v57, %v5242_v6  ;;  %v5560_v57 = vld [vmem:[#allocation4 + $0x70] sm:$0xff]  ;;  %v7408_v6 = vpack.c.bf16 %v6398_v61, %v6397_v52  ;;  %v6409_v52 = vld [vmem:[%s8544_s21] ss:$0 sm:$0xff] }
0x2a61   :  { %v7404_v59 = vpack.c.bf16 %v5561_v58, %v5560_v57  ;;  %v6399_v60 = vld [vmem:[%s7751_s12 + $0xd0] sm:$0xff]  ;;  %v5849_v58 = vld [vmem:[%s8542_s13] sm:$0xf] }
0x2a62   :  { %v5247_v63 = vmul.f32 1.442695, %v5244_v62  ;;  %v6400_v62 = vld [vmem:[%s7751_s12 + $0xd8] sm:$0xff] }
0x2a63   :  { %v5338_v0 = vpop.permute.xlu1 %5337 }
0x2a64   :  { %7562 = vpow2.f32 %v5247_v63  ;;  %7121 = vmatpush3.msra.mxu1 %v5338_v0  ;;  %v7412_v63 = vpack.c.bf16 %v6400_v62, %v6399_v60  ;;  %v6401_v0 = vld [vmem:[%s7751_s12 + $0xe0] sm:$0xff] }
0x2a65   :  { %7401 = vmatprep.subr.bf16.mxu1 %v7400_v56 }
0x2a6a   :  { %v7561_v1 = vpop.eup %7560 }
0x2a6b   :  { %v5249_v3 = vsel %vm790_vm6, %v7561_v1, 0.0 }
0x2a6c   :  { %5250 = vadd.xlane.f32.xlu0 %v5249_v3 }
0x2a6e   :  { %v7563_v4 = vpop.eup %7562 }
0x2a6f   :  { %v5252_v5 = vsel %vm790_vm6, %v7563_v4, 0.0 }
0x2a70   :  { %5253 = vadd.xlane.f32.xlu0 %v5252_v5 }
0x2a86   :  { %5260 = vrot.lane.b32.xlu0 %v8365_v14, %s7671_s14  ;;  %v5427_v14 = vld [vmem:[#allocation2 + $0x68] sm:$0xff] }
0x2a87   :  { %v7392_v20 = vpack.c.bf16 %v5427_v14, %v5426_v54  ;;  %v6391_v54 = vld [vmem:[%s8535_s7 + $0x3] ss:$0 sm:$0xff] }
0x2af9   :  { %v5251_v7 = vpop.xlane.xlu0 %5250 }
0x2afa   :  { %7564 = vrcp.f32 %v5251_v7 }
0x2afd   :  { %v5254_v8 = vpop.xlane.xlu0 %5253 }
0x2afe   :  { %7566 = vrcp.f32 %v5254_v8 }
0x2b01   :  { %v5261_v10 = vpop.permute.xlu0 %5260 }
0x2b02   :  { %7116 = vmatpush3.msra.mxu0 %v5261_v10 }
0x2b03   :  { %7393 = vmatprep.subr.bf16.mxu0 %v7392_v20 }
0x2b04   :  { %v7565_v2 = vpop.eup %7564 }
0x2b05   :  { %v8419_v15 = vmul.f32 %v7565_v2, %v7561_v1  ;;  %v6402_v1 = vld [vmem:[%s7751_s12 + $0xe8] sm:$0xff] }
0x2b06   :  { %v7416_v3 = vpack.c.bf16 %v6402_v1, %v6401_v0 }
0x2b07   :  { %7118 = vmatmul.mubr.msk.f32.vlgmr.msra.gmra.mrb[50].mxu0 %vm790_vm6, %v8419_v15 }
0x2b08   :  { %v7567_v16 = vpop.eup %7566  ;;  %7395 = vmatpush3.bf16.msra.mxu0 %v7392_v20  ;;  %v6392_v20 = vld [vmem:[%s8536_s10 + $0x3] ss:$0 sm:$0xff] }
0x2b09   :  { %v8423_v17 = vmul.f32 %v7567_v16, %v7563_v4  ;;  %7397 = vmatprep.subr.bf16.mxu0 %v7396_v26 }
0x2b0b   :  { %7123 = vmatmul.mubr.msk.f32.vlgmr.msra.gmra.mrb[58].mxu1 %vm790_vm6, %v8423_v17  ;;  %v5414_v0 = vadd.f32 %v8423_v17, %v8396_v45  ;;  %v7585_v45 = vld [vmem:[%s7686_s9] sm:$0xff] }
0x2b0c   :  { %7399 = vmatpush3.bf16.msra.mxu0 %v7396_v26  ;;  %7403 = vmatpush3.bf16.msra.mxu1 %v7400_v56  ;;  %v6412_v17 = vld [vmem:[%s8546_s29] ss:$0 sm:$0xff] }
0x2b0d   :  { %7405 = vmatprep.subr.bf16.mxu1 %v7404_v59  ;;  %7409 = vmatprep.subr.bf16.mxu0 %v7408_v6 }
0x2b10   :  { %7407 = vmatpush3.bf16.msra.mxu1 %v7404_v59  ;;  %v5942_v59 = vld [vmem:[%s8543_s17] sm:$0xff] }
0x2bda   :  { %v5332_v9 = vpop.f32.mrb[50].mxu0 }
0x2bdb   :  { %5417 = vrot.lane.b32.xlu1 %v5332_v9, %s7672_s30  ;;  %v7119_v11 = vpop.f32.mrb[51].mxu0 }
0x2bde   :  { %v5409_v27 = vpop.f32.mrb[58].mxu1 }
0x2bdf   :  { %5419 = vrot.lane.b32.xlu1 %v5409_v27, %s7672_s30  ;;  %v7124_v28 = vpop.f32.mrb[59].mxu1 }
0x2be0   :  { %v6403_v28 = vld [vmem:[%s7751_s12 + $0xf0] sm:$0xff] }
0x2c4d   :  { %v5418_v22 = vpop.permute.xlu1 %5417 }
0x2c4e   :  { %v5423_v30 = vsel %vm633_vm4, %v5004_v47, %v5418_v22  ;;  %v6404_v22 = vld [vmem:[%s7751_s12 + $0xf8] sm:$0xff] }
0x2c4f   :  { %7133 = vmatprep.mubr.msk.f32.mxu0 %vm346_vm2, %v5423_v30  ;;  %v7420_v30 = vpack.c.bf16 %v6404_v22, %v6403_v28 }
0x2c51   :  { %v5420_v31 = vpop.permute.xlu1 %5419 }
0x2c52   :  { %v5424_v13 = vsel %vm633_vm4, %v5077_v49, %v5420_v31  ;;  %v5755_v31 = vld [vmem:[%s8541_s5] sm:$0xff] }
0x2c53   :  { %7134 = vmatmul.mubr.msk.f32.vlgmr.msra.gmra.mrb[52].mxu0 %vm346_vm2, %v5424_v13  ;;  %v5756_v13 = vld [vmem:[%s8541_s5 + $0x8] sm:$0xff] }
0x2c54   :  { %7411 = vmatpush3.bf16.msra.mxu0 %v7408_v6 }
0x2c55   :  { %7413 = vmatprep.subr.bf16.mxu0 %v7412_v63 }
0x2c58   :  { %7415 = vmatpush3.bf16.msra.mxu0 %v7412_v63 }
0x2c59   :  { %7417 = vmatprep.subr.bf16.mxu0 %v7416_v3 }
0x2c5c   :  { %7419 = vmatpush3.bf16.msra.mxu0 %v7416_v3  ;;  %v5941_v3 = vld [vmem:[%s8545_s25] sm:$0xf] }
0x2c5d   :  { %7421 = vmatprep.subr.bf16.mxu0 %v7420_v30 }
0x2c60   :  { %7423 = vmatpush3.bf16.msra.mxu0 %v7420_v30 }
0x2d26   :  { %v7135_v32 = vpop.f32.mrb[52].mxu0 }
0x2d27   :  { %v8434_v12 = vadd.f32 %v7135_v32, %v8324_v18  ;;  %v5502_v33 = vpop.f32.mrb[53].mxu0  ;;  %v7424_v32 = vpack.c.bf16 %v5756_v13, %v5755_v31 }
0x2d28   :  { %v8437_v29 = vadd.f32 %v5502_v33, %v8327_v19  ;;  %v6394_v33 = vld [vmem:[%s8537_s11 + $0x3] ss:$0 sm:$0xff] }
0x2d29   :  { %v5518_v24 = vsel %vm346_vm2, %v8434_v12, 0.0  ;;  %7425 = vmatprep.subr.bf16.mxu1 %v7424_v32 }
0x2d2a   :  { %5519 = vadd.xlane.f32.xlu1 %v5518_v24  ;;  %v5515_v23 = vsel %vm346_vm2, %v8437_v29, 0.0 }
0x2d2b   :  { %5516 = vadd.xlane.f32.xlu0 %v5515_v23 }
0x2db7   :  { %v5520_v38 = vpop.xlane.xlu1 %5519 }
0x2db8   :  { %v5522_v42 = vmul.f32 0.03125, %v5520_v38  ;;  %v5517_v44 = vpop.xlane.xlu0 %5516 }
0x2db9   :  { %v5521_v46 = vmul.f32 0.03125, %v5517_v44 }
0x2dba   :  { %v5524_v47 = vsub.f32 %v8434_v12, %v5522_v42 }
0x2dbb   :  { %v5523_v18 = vsub.f32 %v8437_v29, %v5521_v46 }
0x2dbc   :  { %v5526_v49 = vmul.f32 %v5524_v47, %v5524_v47 }
0x2dbd   :  { %v5525_v48 = vmul.f32 %v5523_v18, %v5523_v18 }
0x2dbe   :  { %v5530_v50 = vsel %vm346_vm2, %v5526_v49, 0.0 }
0x2dbf   :  { %v5527_v19 = vsel %vm346_vm2, %v5525_v48, 0.0 }
0x2dc0   :  { %5528 = vadd.xlane.f32.xlu0 %v5527_v19  ;;  %v6406_v19 = vld [vmem:[%s8538_s15 + $0x3] ss:$0 sm:$0xff] }
0x2dc4   :  { %5531 = vadd.xlane.f32.xlu0 %v5530_v50 }
0x2e4d   :  { %v5529_v4 = vpop.xlane.xlu0 %5528 }
0x2e4e   :  { %v5533_v5 = vmul.f32 0.03125, %v5529_v4 }
0x2e50   :  { %v5535_v7 = vadd.f32 1e-06, %v5533_v5 }
0x2e51   :  { %v5532_v8 = vpop.xlane.xlu0 %5531 }
0x2e52   :  { %7568 = vrsqrt.f32 %v5535_v7  ;;  %v5534_v10 = vmul.f32 0.03125, %v5532_v8 }
0x2e54   :  { %v5536_v2 = vadd.f32 1e-06, %v5534_v10  ;;  %v6421_v10 = vld [vmem:[%s8547_s3] ss:$0 sm:$0xff] }
0x2e56   :  { %7570 = vrsqrt.f32 %v5536_v2 }
0x2e5c   :  { %v7569_v16 = vpop.eup %7568 }
0x2e5d   :  { %v5539_v14 = vmul.f32 %v7569_v16, %v5523_v18  ;;  %v5758_v18 = vld [vmem:[%s8541_s5 + $0x18] sm:$0xff] }
0x2e5f   :  { %v5547_v55 = vmul.f32 %v6391_v54, %v5539_v14 }
0x2e60   :  { %v7571_v25 = vpop.eup %7570 }
0x2e61   :  { %v5540_v26 = vmul.f32 %v7571_v25, %v5524_v47  ;;  %v5555_v9 = vadd.f32 %v6392_v20, %v5547_v55  ;;  %v5757_v47 = vld [vmem:[%s8541_s5 + $0x10] sm:$0xff] }
0x2e62   :  { %v7428_v48 = vpack.c.bf16 %v5758_v18, %v5757_v47 }
0x2e63   :  { %v5548_v11 = vmul.f32 %v6391_v54, %v5540_v26  ;;  %7144 = vmatprep.mubr.msk.f32.mxu1 %vm346_vm2, %v5555_v9 }
0x2e65   :  { %v5556_v27 = vadd.f32 %v6392_v20, %v5548_v11 }
0x2e67   :  { %7145 = vmatmul.mubr.msk.f32.vlgmr.msra.gmra.mrb[60].mxu1 %vm346_vm2, %v5556_v27 }
0x2e68   :  { %7427 = vmatpush3.bf16.msra.mxu1 %v7424_v32 }
0x2e69   :  { %7429 = vmatprep.subr.bf16.mxu1 %v7428_v48 }
0x2e6c   :  { %7431 = vmatpush3.bf16.msra.mxu1 %v7428_v48 }
0x2e6d   :  { %7177 = vmatprep.subr.msk.mxu1 %vm170_vm0, %v5849_v58 }
0x2f3a   :  { %v7146_v24 = vpop.f32.mrb[60].mxu1 }
0x2f3b   :  { %v5648_v23 = vadd.f32 %v7146_v24, %v6394_v33  ;;  %v5642_v38 = vpop.f32.mrb[61].mxu1 }
0x2f3c   :  { %v5643_v42 = vadd.f32 %v6394_v33, %v5642_v38 }
0x2f3d   :  { %v5652_v46 = vmax.f32 %v5648_v23, 0.0 }
0x2f3e   :  { %v5651_v44 = vmax.f32 %v5643_v42, 0.0 }
0x2f40   :  { %7163 = vmatprep.mubr.msk.f32.mxu0 %vm1541_vm7, %v5651_v44 }
0x2f41   :  { %7164 = vmatmul.mubr.msk.f32.vlgmr.msra.gmra.mrb[54].mxu0 %vm1541_vm7, %v5652_v46 }
0x3014   :  { %v7165_v49 = vpop.f32.mrb[54].mxu0 }
0x3015   :  { %v5748_v50 = vadd.f32 %v7165_v49, %v6406_v19  ;;  %v5742_v51 = vpop.f32.mrb[55].mxu0 }
0x3016   :  { %v5743_v53 = vadd.f32 %v6406_v19, %v5742_v51 }
0x3017   :  { %v5752_v57 = vadd.f32 %v5748_v50, %v8434_v12  ;;  %v5413_v12 = vadd.f32 %v8419_v15, %v8389_v39  ;;  %v5754_v39 = vmul.f32 0.5, %v5414_v0  ;;  %v7586_v15 = vld [vmem:[%s7686_s9 + $0x8] sm:$0xff] }
0x3018   :  { %v5751_v56 = vadd.f32 %v5743_v53, %v8437_v29 }
0x3019   :  { %v5753_v1 = vmul.f32 0.5, %v5413_v12 }
0x301a   :  { %7174 = vmatprep.mubr.msk.f32.mxu1 %vm346_vm2, %v5751_v56 }
0x301b   :  { %7175 = vmatmul.mubr.msk.f32.vlgmr.msra.gmra.mrb[62].mxu1 %vm346_vm2, %v5752_v57 }
0x301c   :  { %7178 = vmatpush3.msk.msra.mxu1 %vm170_vm0, %v5849_v58 }
0x301d   :  { %7182 = vmatprep.subr.mxu1 %v5942_v59 }
0x30ee   :  { %v7176_v61 = vpop.f32.mrb[62].mxu1 }
0x30ef   :  { %v5844_v60 = vadd.f32 %v7176_v61, %v6409_v52  ;;  %v5838_v6 = vpop.f32.mrb[63].mxu1 }
0x30f0   :  { %v5839_v29 = vadd.f32 %v6409_v52, %v5838_v6 }
0x30f1   :  { %v5848_v63 = vmax.f32 %v5844_v60, 0.0 }
0x30f2   :  { %v5847_v62 = vmax.f32 %v5839_v29, 0.0 }
0x30f4   :  { %7179 = vmatprep.mubr.msk.f32.mxu1 %vm163_vm1, %v5847_v62 }
0x30f5   :  { %7180 = vmatmul.mubr.msk.f32.vlgmr.msra.gmra.mrb[64].mxu1 %vm163_vm1, %v5848_v63 }
0x30f6   :  { %7183 = vmatpush3.msra.mxu1 %v5942_v59  ;;  %7184 = vmatprep.mubr.msk.f32.mxu1 %vm790_vm6, %v5753_v1 }
0x30f7   :  { %7187 = vmatprep.subr.msk.mxu1 %vm170_vm0, %v5941_v3 }
0x30f9   :  { %7185 = vmatmul.mubr.msk.f32.vlgmr.msra.gmra.mrb[66].mxu1 %vm790_vm6, %v5754_v39 }
0x30fa   :  { %7188 = vmatpush3.msk.msra.mxu1 %vm170_vm0, %v5941_v3  ;;  %7189 = vmatprep.mubr.msk.f32.mxu1 %vm163_vm1, %v7585_v45 }
0x3101   :  { %7190 = vmatmul.mubr.msk.f32.vlgmr.msra.gmra.mrb[66].mxu1 %vm163_vm1, %v7586_v15 }
0x31c8   :  { %v7181_v4 = vpop.f32.mrb[64].mxu1 }
0x31c9   :  { %v5938_v5 = vadd.f32 %v7181_v4, %v6412_v17  ;;  %v5932_v7 = vpop.f32.mrb[65].mxu1 }
0x31ca   :  { %v5933_v8 = vadd.f32 %v6412_v17, %v5932_v7 }
0x31cb   :  { %6140 = vst.msk [vmem:[%s7826_s4 + $0x8] sm:$0xff] %vm163_vm1, %v5938_v5 }
0x31cc   :  { %6139 = vst.msk [vmem:[%s7826_s4] sm:$0xff] %vm163_vm1, %v5933_v8 }
0x31d4   :  { %v7191_v2 = vpop.f32.mrb[66].mxu1 }
0x31d5   :  { %v6110_v16 = vadd.f32 %v7191_v2, %v6421_v10  ;;  %v6093_v54 = vpop.f32.mrb[67].mxu1 }
0x31d6   :  { %v6109_v14 = vadd.f32 %v6421_v10, %v6093_v54 }
0x31d7   :  { %v6112_v20 = vsub.f32 0.0, %v6110_v16 }
0x31d8   :  { %v6111_v55 = vsub.f32 0.0, %v6109_v14 }
0x31d9   :  { %v6115_v25 = vmul.f32 1.442695, %v6112_v20 }
0x31da   :  { %v6113_v26 = vmul.f32 1.442695, %v6111_v55 }
0x31db   :  { %7572 = vpow2.f32 %v6115_v25 }
0x31dc   :  { %7574 = vpow2.f32 %v6113_v26 }
0x31e5   :  { %v7573_v9 = vpop.eup %7572 }
0x31e6   :  { %v7575_v11 = vpop.eup %7574  ;;  %v6118_v27 = vadd.f32 1.0, %v7573_v9 }
0x31e7   :  { %v6117_v28 = vadd.f32 1.0, %v7575_v11 }
0x31e8   :  { %7576 = vrcp.f32 %v6118_v27 }
0x31e9   :  { %7578 = vrcp.f32 %v6117_v28 }
0x31f2   :  { %v7577_v22 = vpop.eup %7576 }
0x31f3   :  { %v7579_v30 = vpop.eup %7578  ;;  %v6124_v31 = vsub.f32 1.0, %v7577_v22  ;;  %v6128_v33 = vmul.f32 %v7577_v22, %v8167_v37 }
0x31f4   :  { %v6123_v13 = vsub.f32 1.0, %v7579_v30  ;;  %v6127_v23 = vmul.f32 %v7579_v30, %v8173_v41 }
0x31f5   :  { %v6126_v32 = vmul.f32 %v6124_v31, %v5938_v5 }
0x31f6   :  { %v6125_v24 = vmul.f32 %v6123_v13, %v5933_v8 }
0x31f7   :  { %v6130_v38 = vadd.f32 %v6128_v33, %v6126_v32 }
0x31f8   :  { %v6129_v42 = vadd.f32 %v6127_v23, %v6125_v24 }
0x31f9   :  { %v6132_v44 = vmul.f32 %v6130_v38, %v154_v35  ;;  %6142 = vst.msk [vmem:[%s7831_s6 + $0x8] sm:$0xff] %vm163_vm1, %v6130_v38 }
0x31fa   :  { %v6131_v46 = vmul.f32 %v6129_v42, %v153_v36  ;;  %6141 = vst.msk [vmem:[%s7831_s6] sm:$0xff] %vm163_vm1, %v6129_v42 }
0x31fb   :  { %v6134_v47 = vadd.f32 %v6132_v44, %v8177_v43 }
0x31fc   :  { %v6133_v18 = vadd.f32 %v6131_v46, %v8171_v40 }
0x31fd   :  { %6136 = vst.msk [vmem:[%s7816_s20 + $0x8] sm:$0xff] %vm163_vm1, %v6134_v47 }
0x31fe   :  { %6135 = vst.msk [vmem:[%s7816_s20] sm:$0xff] %vm163_vm1, %v6133_v18 }
0x31ff   :  { %6159 = vsyncpa [#allocation3], 1 }
0x3200   :  { %6160 = vsyncpa [#allocation5], 1 }

</bundles_post_ra>
